<compile_context>
chip_gen: v7x
topology: tpu7x:2x2x1
jax: 0.10.0
libtpu: 0.0.40
codegen_flags: <defaults>
</compile_context>

<pallas_src>
import functools

import jax
import jax.numpy as jnp
from jax.experimental import pallas as pl
from jax.experimental.pallas import tpu as pltpu

EPS = 1e-5          # nn.InstanceNorm2d default eps
LANES = 128         # TPU lane width / C_out tile size


def _round_up(x, m):
    return -(-x // m) * m


def _conv_in_act_kernel(x_ref, w_ref, o_ref, *, K, C_in, Wp, HPW, valid_hw,
                        Ho, Wo, stride, inv_n, neg_slope, needs_mask, fold):
    """One (batch, C_out-tile) block.

    x_ref : (L_ext, C_in)     padded + flattened input (compute dtype, bf16/f32)
    w_ref : (K*K*C_in, TCO)   weights, tap-major rows, compute dtype
    o_ref : (HPW, TCO)        output tile (out dtype), written exactly once
    """
    # ---- Convolution -----------------------------------------------------
    # K*K taps are shifted (static-offset) views of the flattened input.
    if fold:
        # Fold all taps into the MXU contraction dim: one
        # (HPW, K*K*C_in) x (K*K*C_in, TCO) matmul per block.
        cols = []
        for kh in range(K):
            for kw in range(K):
                d = kh * Wp + kw                       # flat spatial shift
                cols.append(x_ref[pl.ds(d, HPW), :])
        lhs = jnp.concatenate(cols, axis=1)            # (HPW, K*K*C_in)
        acc = jnp.dot(lhs, w_ref[...], preferred_element_type=jnp.float32)
    else:
        # Large C_in: per-tap matmuls, accumulated in a traced f32 value
        # (no per-tap VMEM read-modify-write).
        acc = None
        for kh in range(K):
            for kw in range(K):
                t = kh * K + kw
                d = kh * Wp + kw
                c = jnp.dot(x_ref[pl.ds(d, HPW), :],
                            w_ref[pl.ds(t * C_in, C_in), :],
                            preferred_element_type=jnp.float32)
                acc = c if acc is None else acc + c

    # ---- InstanceNorm2d (affine=False, biased variance) --------------------
    # Statistics over valid output pixels only (the dense stride-1 plane also
    # contains positions that are not real conv outputs).  The {0,1} mask is
    # rebuilt in-kernel (no lane-padded HBM/VMEM mask stream) with
    # division-free index math; centered (two-pass) variance on the resident
    # f32 tile avoids E[y^2]-mean^2 cancellation.
    if needs_mask:
        r = jax.lax.broadcasted_iota(jnp.int32, (HPW, 1), 0)
        # h = r // Wp without vector integer division (exact for planes
        # well below ~4M pixels; asserted in the wrapper).
        h = jnp.floor((r.astype(jnp.float32) + 0.5) * (1.0 / Wp)).astype(jnp.int32)
        w = r - h * Wp
        if stride == 1:
            ok = (r < valid_hw) & (h < Ho) & (w < Wo)
        else:
            hs = jnp.floor((h.astype(jnp.float32) + 0.5) *
                           (1.0 / stride)).astype(jnp.int32)
            ws = jnp.floor((w.astype(jnp.float32) + 0.5) *
                           (1.0 / stride)).astype(jnp.int32)
            ok = ((r < valid_hw) & (h == hs * stride) & (hs < Ho)
                  & (w == ws * stride) & (ws < Wo))
        m = ok.astype(jnp.float32)                     # (HPW, 1), broadcasts over lanes
        ym = acc * m
        s1 = jnp.sum(ym, axis=0, keepdims=True)        # (1, TCO)
        mean = s1 * inv_n
        cen = ym - mean * m                            # (y - mean) on valid rows, 0 elsewhere
    else:
        s1 = jnp.sum(acc, axis=0, keepdims=True)
        mean = s1 * inv_n
        cen = acc - mean
    var = jnp.sum(cen * cen, axis=0, keepdims=True) * inv_n
    inv_std = jax.lax.rsqrt(var + EPS)                 # EUP (free slot)
    shift = -mean * inv_std
    y = acc * inv_std + shift                          # one fused scale/shift pass

    # ---- Activation + single lane-dense store ------------------------------
    if neg_slope == 0.0:
        y = jnp.maximum(y, 0.0)
    else:
        y = jnp.where(y >= 0.0, y, neg_slope * y)
    o_ref[...] = y.astype(o_ref.dtype)


def conv_norm_act(x_nchw, weight, bias=None, *, stride, padding,
                  act_type="relu", compute_dtype=jnp.bfloat16,
                  out_dtype=jnp.float32):
    """Conv2d -> InstanceNorm2d(affine=False) -> ReLU / LeakyReLU(0.2).

    x_nchw : (N, C_in, H, W) float32 (PyTorch layout)
    weight : (C_out, C_in, K, K)     (PyTorch Conv2d layout)
    bias   : (C_out,) or None. Ignored: a per-channel constant cancels exactly
             under affine=False InstanceNorm (mean subtraction).
    """
    del bias
    if act_type == "relu":
        neg_slope = 0.0
    elif act_type == "lrelu":
        neg_slope = 0.2
    else:
        raise ValueError(f"unsupported act_type: {act_type}")

    N, C_in, H, W = x_nchw.shape
    C_out, C_in_w, K, K2 = weight.shape
    assert C_in_w == C_in and K == K2

    Hp, Wp = H + 2 * padding, W + 2 * padding
    Ho = (Hp - K) // stride + 1
    Wo = (Wp - K) // stride + 1
    assert Hp * Wp < (1 << 22), "in-kernel mask index math assumes < 4M pixels"
    # TODO(synk): stride > 1 computes the dense stride-1 plane and masks; a
    # dedicated strided path would gather only the Ho*Wo valid rows (saves
    # stride^2 MXU work, output VMEM and writeback).

    HPW = _round_up(Hp * Wp, 16)                   # rows of the dense output tile
    max_shift = (K - 1) * Wp + (K - 1)             # largest flat tap offset
    L_ext = _round_up(HPW + max_shift, 16)         # flattened, extended input rows

    TCO = LANES
    Cp_out = _round_up(C_out, TCO)
    n_co = Cp_out // TCO
    KKC = K * K * C_in
    fold = KKC <= 512                              # fold taps into contraction dim
    needs_mask = not (stride == 1 and Ho == Hp and Wo == Wp and HPW == Hp * Wp)

    # --- layout glue (NCHW -> padded, flattened NHWC; done once in XLA) -----
    x = jnp.transpose(x_nchw, (0, 2, 3, 1))                        # (N, H, W, C)
    x = jnp.pad(x, ((0, 0), (padding, padding), (padding, padding), (0, 0)))
    x = x.reshape(N, Hp * Wp, C_in)
    x = jnp.pad(x, ((0, 0), (0, L_ext - Hp * Wp), (0, 0)))
    x = x.astype(compute_dtype)                                    # bf16 HBM stream

    # Weights: (C_out, C_in, K, K) -> (K*K*C_in rows tap-major, Cp_out), bf16.
    w = jnp.transpose(weight, (2, 3, 1, 0)).reshape(KKC, C_out)
    w = jnp.pad(w, ((0, 0), (0, Cp_out - C_out))).astype(compute_dtype)

    kernel = functools.partial(
        _conv_in_act_kernel, K=K, C_in=C_in, Wp=Wp, HPW=HPW,
        valid_hw=Hp * Wp, Ho=Ho, Wo=Wo, stride=stride,
        inv_n=1.0 / float(Ho * Wo), neg_slope=neg_slope,
        needs_mask=needs_mask, fold=fold)

    # --- VMEM budget, clamped to the chip's physical VMEM -------------------
    in_bpe = jnp.dtype(compute_dtype).itemsize
    out_bpe = jnp.dtype(out_dtype).itemsize
    cin_lanes = _round_up(C_in, LANES)
    x_buf = L_ext * cin_lanes * in_bpe
    w_buf = _round_up(KKC, 16) * TCO * in_bpe
    o_buf = HPW * TCO * out_bpe
    work = (HPW * TCO * 4                                           # f32 acc
            + HPW * _round_up(KKC if fold else C_in, LANES) * in_bpe   # lhs
            + 2 * HPW * cin_lanes * in_bpe)                         # shifted slices
    needed = 2 * (x_buf + w_buf + o_buf) + work
    try:
        cap = int(pltpu.get_tpu_info().vmem_capacity_bytes)
    except Exception:
        cap = 64 << 20                                  # conservative (v7x per-TC)
    vmem_limit = int(min(max(2 * needed, 32 << 20), cap - (4 << 20)))

    out_full = pl.pallas_call(
        kernel,
        out_shape=jax.ShapeDtypeStruct((N, HPW, Cp_out), out_dtype),
        grid_spec=pltpu.PrefetchScalarGridSpec(
            num_scalar_prefetch=0,
            grid=(N, n_co),
            in_specs=[
                pl.BlockSpec((None, L_ext, C_in), lambda n, co: (n, 0, 0)),
                pl.BlockSpec((KKC, TCO), lambda n, co: (0, co)),
            ],
            out_specs=pl.BlockSpec((None, HPW, TCO), lambda n, co: (n, 0, co)),
        ),
        compiler_params=pltpu.CompilerParams(
            dimension_semantics=("parallel", "parallel"),
            vmem_limit_bytes=vmem_limit),
    )(x, w)
    # TODO(synk): for very large Hp*Wp (whole-plane residency vs v7x's 64 MiB
    # VMEM) add an 'arbitrary' spatial grid axis with per-tile conv + sum/sumsq
    # scratch and a second normalize pass instead of a resident plane.

    # Dense padded output -> strided valid outputs -> NCHW (PyTorch semantics).
    out = out_full[:, : Hp * Wp, :].reshape(N, Hp, Wp, Cp_out)
    out = out[:, : Ho * stride : stride, : Wo * stride : stride, :C_out]
    # TODO(synk): NHWC-consuming callers could skip this transpose.
    return jnp.transpose(out, (0, 3, 1, 2))


def _reference(x, weight, bias, stride, padding, act_type="relu"):
    y = jax.lax.conv_general_dilated(
        x, weight,
        window_strides=(stride, stride),
        padding=[(padding, padding), (padding, padding)],
        dimension_numbers=("NCHW", "OIHW", "NCHW"),
    ) + bias.reshape(1, -1, 1, 1)
    mean = jnp.mean(y, axis=(2, 3), keepdims=True)
    var = jnp.mean((y - mean) ** 2, axis=(2, 3), keepdims=True)
    y = (y - mean) / jnp.sqrt(var + EPS)
    if act_type == "relu":
        return jnp.maximum(y, 0.0)
    return jnp.where(y >= 0.0, y, 0.2 * y)


if __name__ == "__main__":
    # Small shapes consistent with the module's forward.
    N, C_in, H, W = 2, 4, 16, 16
    C_out, K, stride, padding = 8, 3, 1, 1

    key = jax.random.PRNGKey(0)
    kx, kw, kb = jax.random.split(key, 3)

    x = jax.random.normal(kx, (N, C_in, H, W), dtype=jnp.float32)
    fan_in = C_in * K * K
    bound = 1.0 / (fan_in ** 0.5)
    weight = jax.random.uniform(kw, (C_out, C_in, K, K), jnp.float32, -bound, bound)
    bias = jax.random.uniform(kb, (C_out,), jnp.float32, -bound, bound)

    ref = _reference(x, weight, bias, stride, padding, "relu")

    # f32 debug path: near-exact against the f32 XLA reference.
    out32 = conv_norm_act(x, weight, bias, stride=stride, padding=padding,
                          act_type="relu", compute_dtype=jnp.float32,
                          out_dtype=jnp.float32)
    out32 = jax.block_until_ready(out32)
    assert out32.shape == (N, C_out, H, W), out32.shape
    err32 = float(jnp.max(jnp.abs(out32 - ref)))
    assert err32 < 1e-4, err32

    # Default (performance) path: bf16 input/weight stream, bf16 MXU matmuls,
    # f32 statistics, bf16 output writeback.
    out16 = conv_norm_act(x, weight, bias, stride=stride, padding=padding,
                          act_type="relu", out_dtype=jnp.bfloat16)
    out16 = jax.block_until_ready(out16).astype(jnp.float32)
    assert out16.shape == (N, C_out, H, W), out16.shape
    err16 = float(jnp.max(jnp.abs(out16 - ref)))
    assert err16 < 1e-1, err16

    # LeakyReLU variant of the module.
    ref_l = _reference(x, weight, bias, stride, padding, "lrelu")
    out_l = conv_norm_act(x, weight, bias, stride=stride, padding=padding,
                          act_type="lrelu", compute_dtype=jnp.float32,
                          out_dtype=jnp.float32)
    out_l = jax.block_until_ready(out_l)
    err_l = float(jnp.max(jnp.abs(out_l - ref_l)))
    assert err_l < 1e-4, err_l

    print("KERNEL_OK")
</pallas_src>

<mosaic_0001>
module attributes {stable_mosaic.version = 11 : i64} {
  func.func @_conv_in_act_kernel(%arg0: i32, %arg1: i32, %arg2: memref<1x384x4xf32, #tpu.memory_space<vmem>>, %arg3: memref<36x128xf32, #tpu.memory_space<vmem>>, %arg4: memref<1x336x128xf32, #tpu.memory_space<vmem>>) attributes {dimension_semantics = [#tpu.dimension_semantics<parallel>, #tpu.dimension_semantics<parallel>], iteration_bounds = array<i64: 2, 1>, scalar_prefetch = 0 : i64, scratch_operands = 0 : i64, tpu.core_type = #tpu.core_type<tc>, window_params = [{transform_indices = @transform_0, window_bounds = array<i64: 1, 384, 4>}, {transform_indices = @transform_1, window_bounds = array<i64: 36, 128>}, {transform_indices = @transform_2, window_bounds = array<i64: 1, 336, 128>}]} {
    %c0 = arith.constant 0 : index
    %c0_0 = arith.constant 0 : index
    %c0_1 = arith.constant 0 : index
    %0 = vector.load %arg2[%c0, %c0_0, %c0_1] : memref<1x384x4xf32, #tpu.memory_space<vmem>>, vector<1x336x4xf32>
    %1 = vector.shape_cast %0 : vector<1x336x4xf32> to vector<336x4xf32>
    %c0_2 = arith.constant 0 : index
    %c1 = arith.constant 1 : index
    %c0_3 = arith.constant 0 : index
    %2 = vector.load %arg2[%c0_2, %c1, %c0_3] : memref<1x384x4xf32, #tpu.memory_space<vmem>>, vector<1x336x4xf32>
    %3 = vector.shape_cast %2 : vector<1x336x4xf32> to vector<336x4xf32>
    %c0_4 = arith.constant 0 : index
    %c2 = arith.constant 2 : index
    %c0_5 = arith.constant 0 : index
    %4 = vector.load %arg2[%c0_4, %c2, %c0_5] : memref<1x384x4xf32, #tpu.memory_space<vmem>>, vector<1x336x4xf32>
    %5 = vector.shape_cast %4 : vector<1x336x4xf32> to vector<336x4xf32>
    %c0_6 = arith.constant 0 : index
    %c18 = arith.constant 18 : index
    %c0_7 = arith.constant 0 : index
    %6 = vector.load %arg2[%c0_6, %c18, %c0_7] : memref<1x384x4xf32, #tpu.memory_space<vmem>>, vector<1x336x4xf32>
    %7 = vector.shape_cast %6 : vector<1x336x4xf32> to vector<336x4xf32>
    %c0_8 = arith.constant 0 : index
    %c19 = arith.constant 19 : index
    %c0_9 = arith.constant 0 : index
    %8 = vector.load %arg2[%c0_8, %c19, %c0_9] : memref<1x384x4xf32, #tpu.memory_space<vmem>>, vector<1x336x4xf32>
    %9 = vector.shape_cast %8 : vector<1x336x4xf32> to vector<336x4xf32>
    %c0_10 = arith.constant 0 : index
    %c20 = arith.constant 20 : index
    %c0_11 = arith.constant 0 : index
    %10 = vector.load %arg2[%c0_10, %c20, %c0_11] : memref<1x384x4xf32, #tpu.memory_space<vmem>>, vector<1x336x4xf32>
    %11 = vector.shape_cast %10 : vector<1x336x4xf32> to vector<336x4xf32>
    %c0_12 = arith.constant 0 : index
    %c36 = arith.constant 36 : index
    %c0_13 = arith.constant 0 : index
    %12 = vector.load %arg2[%c0_12, %c36, %c0_13] : memref<1x384x4xf32, #tpu.memory_space<vmem>>, vector<1x336x4xf32>
    %13 = vector.shape_cast %12 : vector<1x336x4xf32> to vector<336x4xf32>
    %c0_14 = arith.constant 0 : index
    %c37 = arith.constant 37 : index
    %c0_15 = arith.constant 0 : index
    %14 = vector.load %arg2[%c0_14, %c37, %c0_15] : memref<1x384x4xf32, #tpu.memory_space<vmem>>, vector<1x336x4xf32>
    %15 = vector.shape_cast %14 : vector<1x336x4xf32> to vector<336x4xf32>
    %c0_16 = arith.constant 0 : index
    %c38 = arith.constant 38 : index
    %c0_17 = arith.constant 0 : index
    %16 = vector.load %arg2[%c0_16, %c38, %c0_17] : memref<1x384x4xf32, #tpu.memory_space<vmem>>, vector<1x336x4xf32>
    %17 = vector.shape_cast %16 : vector<1x336x4xf32> to vector<336x4xf32>
    %18 = tpu.concatenate %1, %3, %5, %7, %9, %11, %13, %15, %17 in 1 : vector<336x4xf32>, vector<336x4xf32>, vector<336x4xf32>, vector<336x4xf32>, vector<336x4xf32>, vector<336x4xf32>, vector<336x4xf32>, vector<336x4xf32>, vector<336x4xf32> -> vector<336x36xf32>
    %c0_18 = arith.constant 0 : index
    %c0_19 = arith.constant 0 : index
    %19 = vector.load %arg3[%c0_18, %c0_19] : memref<36x128xf32, #tpu.memory_space<vmem>>, vector<36x128xf32>
    %cst = arith.constant dense<0.000000e+00> : vector<336x128xf32>
    %20 = tpu.matmul %18, %19, %cst {dimension_numbers = #tpu.dot_dimension_numbers<[1], [0], [0], [1], [0, 0, 1, 1], [], []>} : vector<336x36xf32>, vector<36x128xf32>, vector<336x128xf32> -> vector<336x128xf32>
    %21 = tpu.iota {dimensions = array<i32: 0>} : vector<336x1xi32>
    %22 = arith.sitofp %21 : vector<336x1xi32> to vector<336x1xf32>
    %cst_20 = arith.constant 5.000000e-01 : f32
    %23 = vector.broadcast %cst_20 : f32 to vector<336x1xf32>
    %24 = arith.addf %22, %23 : vector<336x1xf32>
    %cst_21 = arith.constant 0.055555556 : f32
    %25 = vector.broadcast %cst_21 : f32 to vector<336x1xf32>
    %26 = arith.mulf %24, %25 : vector<336x1xf32>
    %27 = math.floor %26 : vector<336x1xf32>
    %28 = arith.fptosi %27 : vector<336x1xf32> to vector<336x1xi32>
    %c18_i32 = arith.constant 18 : i32
    %29 = vector.broadcast %c18_i32 : i32 to vector<336x1xi32>
    %30 = arith.muli %28, %29 : vector<336x1xi32>
    %31 = arith.subi %21, %30 : vector<336x1xi32>
    %c324_i32 = arith.constant 324 : i32
    %32 = vector.broadcast %c324_i32 : i32 to vector<336x1xi32>
    %33 = arith.cmpi slt, %21, %32 : vector<336x1xi32>
    %c16_i32 = arith.constant 16 : i32
    %34 = vector.broadcast %c16_i32 : i32 to vector<336x1xi32>
    %35 = arith.cmpi slt, %28, %34 : vector<336x1xi32>
    %36 = arith.andi %33, %35 : vector<336x1xi1>
    %c16_i32_22 = arith.constant 16 : i32
    %37 = vector.broadcast %c16_i32_22 : i32 to vector<336x1xi32>
    %38 = arith.cmpi slt, %31, %37 : vector<336x1xi32>
    %39 = arith.andi %36, %38 : vector<336x1xi1>
    %40 = arith.extui %39 : vector<336x1xi1> to vector<336x1xi32>
    %41 = arith.sitofp %40 : vector<336x1xi32> to vector<336x1xf32>
    %42 = vector.broadcast %41 : vector<336x1xf32> to vector<336x128xf32>
    %43 = arith.mulf %20, %42 : vector<336x128xf32>
    %cst_23 = arith.constant dense<0.000000e+00> : vector<128xf32>
    %44 = vector.multi_reduction <add>, %43, %cst_23 [0] : vector<336x128xf32> to vector<128xf32>
    %45 = vector.shape_cast %44 : vector<128xf32> to vector<1x128xf32>
    %cst_24 = arith.constant 3.906250e-03 : f32
    %46 = vector.broadcast %cst_24 : f32 to vector<1x128xf32>
    %47 = arith.mulf %45, %46 : vector<1x128xf32>
    %48 = vector.broadcast %47 : vector<1x128xf32> to vector<336x128xf32>
    %49 = vector.broadcast %41 : vector<336x1xf32> to vector<336x128xf32>
    %50 = arith.mulf %48, %49 : vector<336x128xf32>
    %51 = arith.subf %43, %50 : vector<336x128xf32>
    %52 = arith.mulf %51, %51 : vector<336x128xf32>
    %cst_25 = arith.constant dense<0.000000e+00> : vector<128xf32>
    %53 = vector.multi_reduction <add>, %52, %cst_25 [0] : vector<336x128xf32> to vector<128xf32>
    %54 = vector.shape_cast %53 : vector<128xf32> to vector<1x128xf32>
    %cst_26 = arith.constant 3.906250e-03 : f32
    %55 = vector.broadcast %cst_26 : f32 to vector<1x128xf32>
    %56 = arith.mulf %54, %55 : vector<1x128xf32>
    %cst_27 = arith.constant 9.99999974E-6 : f32
    %57 = vector.broadcast %cst_27 : f32 to vector<1x128xf32>
    %58 = arith.addf %56, %57 : vector<1x128xf32>
    %59 = math.rsqrt %58 : vector<1x128xf32>
    %cst_28 = arith.constant 0.000000e+00 : f32
    %60 = vector.broadcast %cst_28 : f32 to vector<1x128xf32>
    %61 = arith.subf %60, %47 : vector<1x128xf32>
    %62 = arith.mulf %61, %59 : vector<1x128xf32>
    %63 = vector.broadcast %59 : vector<1x128xf32> to vector<336x128xf32>
    %64 = arith.mulf %20, %63 : vector<336x128xf32>
    %65 = vector.broadcast %62 : vector<1x128xf32> to vector<336x128xf32>
    %66 = arith.addf %64, %65 : vector<336x128xf32>
    %cst_29 = arith.constant 0.000000e+00 : f32
    %67 = vector.broadcast %cst_29 : f32 to vector<336x128xf32>
    %68 = arith.maximumf %66, %67 : vector<336x128xf32>
    %c0_30 = arith.constant 0 : index
    %c0_31 = arith.constant 0 : index
    %c0_32 = arith.constant 0 : index
    %69 = vector.load %arg4[%c0_30, %c0_31, %c0_32] : memref<1x336x128xf32, #tpu.memory_space<vmem>>, vector<1x336x128xf32>
    %70 = vector.shape_cast %69 : vector<1x336x128xf32> to vector<336x128xf32>
    %71 = vector.shape_cast %68 : vector<336x128xf32> to vector<1x336x128xf32>
    tpu.vector_store %arg4[%c0_30, %c0_31, %c0_32], %71 {strides = array<i32>} : memref<1x336x128xf32, #tpu.memory_space<vmem>>, vector<1x336x128xf32>,
    return
  }
  func.func @transform_0(%arg0: i32, %arg1: i32) -> (i32, i32, i32) {
    %c0_i32 = arith.constant 0 : i32
    %c0_i32_0 = arith.constant 0 : i32
    %c0_i32_1 = arith.constant 0 : i32
    return %arg0, %c0_i32, %c0_i32_0 : i32, i32, i32
  }
  func.func @transform_1(%arg0: i32, %arg1: i32) -> (i32, i32) {
    %c0_i32 = arith.constant 0 : i32
    %c0_i32_0 = arith.constant 0 : i32
    return %c0_i32, %arg1 : i32, i32
  }
  func.func @transform_2(%arg0: i32, %arg1: i32) -> (i32, i32, i32) {
    %c0_i32 = arith.constant 0 : i32
    %c0_i32_0 = arith.constant 0 : i32
    return %arg0, %c0_i32, %arg1 : i32, i32, i32
  }
}

</mosaic_0001>

<bundles_post_ra>
// kernel: tpu_custom_call.1
= control target key start
LH: loop header
LB: loop body
LE: loop exit
PB: predicated region body
PF: predicated region fallthrough
CT: control target
= control target key end

     0   :  { %7 = vsyncpa [#allocation3], 0  ;;  %s7300_s0 = inlined_call_operand.vmem [shape: f32[2,384,4], index: 0, kind: input, shape index: {}]   ;;  %s7301_s1 = inlined_call_operand.vmem [shape: f32[36,128], index: 1, kind: input, shape index: {}]   ;;  %s7302_s2 = inlined_call_operand.hbm [shape: f32[2,336,128], index: 2, kind: output, shape index: {}]  }
   0x1   :  { %9 = vsyncpa [#allocation3 + $0x1], 0  ;;  %s4163_s9 = smov 0   ;;  %s4165_s10 = smov 0  }
   0x2   :  { %s4167_s11 = smov 0   ;;  %s4169_s12 = smov 0  }
   0x3   :  { %s4171_s13 = smov 0   ;;  %s4173_s14 = smov 0  }
   0x4 LB: > { %s3659_s15 = sadd.s32 4294967295, %s4135_s14   ;;  %s3660_s16 = sadd.s32 4294967294, %s4135_s14   ;;  %s4135_s14 = sphi %s4173_s14, %s15_s14   ;;  %s4131_s13 = sphi %s4171_s13, %s7808_s13   ;;  %s4127_s12 = sphi %s4169_s12, %s7807_s12   ;;  %s4123_s11 = sphi %s4167_s11, %s7806_s11   ;;  %s4119_s10 = sphi %s4165_s10, %s7805_s10   ;;  %s4115_s9 = sphi %s4163_s9, %s7804_s9  }
   0x5   : > { %s27_s17 = sadd.s32 1, %s4131_s13  ;;  %s88_s18 = sadd.s32 1, %s4123_s11 }
   0x6   : > { %p29_p0 = scmp.ge.s32.totalorder %s27_s17, 2  ;;  %p98_p1 = scmp.ne.s32.totalorder %s4123_s11, %s4119_s10 }
   0x7   : > { %p99_p2 = scmp.eq.s32.totalorder %s3659_s15, 1  ;;  %p104_p3 = scmp.ne.s32.totalorder %s4119_s10, %s4115_s9 }
   0x8   : > { %s7810_s17 = smov (%p29_p0, %s27_s17), 0  ;;  %p105_p5 = scmp.eq.s32.totalorder %s3660_s16, 1 }
   0x9   : > { %p4203_p4 = por %p99_p2, %p98_p1  ;;  %s83_s20 = ssub.s32 %s4131_s13, %s7810_s17 }
   0xa   : > { %p3664_p6 = scmp.ge.s32.totalorder %s4135_s14, 1  ;;  %p86_p7 = scmp.eq.s32.totalorder %s83_s20, 0 }
   0xb   : > { %p4210_p8 = por %p105_p5, %p104_p3  ;;  %p138_p9 = scmp.lt.s32.totalorder %s4135_s14, 3 }
   0xc   : > { %s4216_s22 = scalar_select %p86_p7, %s4123_s11, %s88_s18  }
   0xd   : > { %p139_p10 = pnand %p3664_p6, %p138_p9 }
   0xf   : > { %142 = sbr.rel (%p139_p10) target bundleno = 1222 (0x4c6), region = 28 }
  0x16   : > { %p164_p11 = scmp.lt.s32.totalorder %s4127_s12, 1  ;;  %s4137_s28 = smov 4   ;;  %vm2211_vm0 = vcmask 1043456   ;;  %vm1735_vm1 = vcmask 31744   ;;  %vm1778_vm2 = vcmask 64512   ;;  %vm1821_vm3 = vcmask 97280  }
  0x17   : > { %s4138_s29 = smov 8   ;;  %s4139_s30 = smov 12   ;;  %vm1864_vm4 = vcmask 130048   ;;  %vm1907_vm5 = vcmask 162816   ;;  %vm1950_vm6 = vcmask 195584   ;;  %vm1993_vm7 = vcmask 228352  }
  0x18   : > { %s165_s23 = scalar_select %p164_p11, %s4127_s12, 1  ;;  %vm2036_vm8 = vcmask 261120   ;;  %vm2084_vm9 = vcmask 293888  }
  0x19   : > { %s4140_s3 = smov 16   ;;  %s4141_s6 = smov 20  }
  0x1a   : > { %s3888_s24 = smul.u32 384, %s165_s23  ;;  %s4142_s15 = smov 24  }
  0x1b   : > { %s3971_s4 = smul.u32 5376, %s4127_s12  ;;  %s4146_s16 = smov [#allocation2]  }
  0x1c   : > { %s4223_s27 = scalar_lea.vmem %s7300_s0, %s3888_s24  ;;  %s4143_s24 = smov 28  }
  0x1d   : > { %v217_v0 = vld [vmem:[%s4223_s27 + $0x11] sm:$0xff]  ;;  %v215_v1 = vld [vmem:[%s4223_s27 + $0x1] sm:$0xff]  ;;  %v218_v2 = vld [vmem:[%s4223_s27 + $0x19] sm:$0xff]  ;;  %s7233_s8 = scalar_lea.hbm %s7302_s2, %s3971_s4  ;;  %s4061_s18 = sshll.u32 %s4146_s16, 4  ;;  %s4062_s18 = int_to_ptr.vmem [resolvable:$false] %s4061_s18 }
  0x1e   : > { %517 = vrot.lane.b32.xlu1 %v217_v0, %s4137_s28  ;;  %513 = vrot.lane.b32.xlu0 %v215_v1, %s4137_s28  ;;  %v216_v3 = vld [vmem:[%s4223_s27 + $0x9] sm:$0xff]  ;;  %v219_v5 = vld [vmem:[%s4223_s27 + $0x21] sm:$0xff]  ;;  %s4063_s20 = scalar_lea.vmem %s4062_s18, 10752 }
  0x1f   : > { %v220_v4 = vld [vmem:[%s4223_s27 + $0x29] sm:$0xff]  ;;  %v222_v6 = vld [vmem:[%s4223_s27 + $0x39] sm:$0xff]  ;;  %v221_v7 = vld [vmem:[%s4223_s27 + $0x31] sm:$0xff] }
  0x20   : > { %v224_v8 = vld [vmem:[%s4223_s27 + $0x49] sm:$0xff]  ;;  %v223_v9 = vld [vmem:[%s4223_s27 + $0x41] sm:$0xff]  ;;  %v226_v10 = vld [vmem:[%s4223_s27 + $0x59] sm:$0xff] }
  0x21   : > { %v225_v11 = vld [vmem:[%s4223_s27 + $0x51] sm:$0xff]  ;;  %v228_v12 = vld [vmem:[%s4223_s27 + $0x69] sm:$0xff]  ;;  %v227_v13 = vld [vmem:[%s4223_s27 + $0x61] sm:$0xff] }
  0x22   : > { %519 = vrot.lane.b32.xlu1 %v218_v2, %s4137_s28  ;;  %515 = vrot.lane.b32.xlu0 %v216_v3, %s4137_s28  ;;  %v230_v14 = vld [vmem:[%s4223_s27 + $0x79] sm:$0xff]  ;;  %v229_v15 = vld [vmem:[%s4223_s27 + $0x71] sm:$0xff] }
  0x23   : > { %v232_v16 = vld [vmem:[%s4223_s27 + $0x89] sm:$0xff]  ;;  %v231_v17 = vld [vmem:[%s4223_s27 + $0x81] sm:$0xff]  ;;  %v234_v18 = vld [vmem:[%s4223_s27 + $0x99] sm:$0xff] }
  0x24   : > { %v233_v19 = vld [vmem:[%s4223_s27 + $0x91] sm:$0xff]  ;;  %v236_v20 = vld [vmem:[%s4223_s27 + $0xa9] sm:$0xff]  ;;  %v235_v21 = vld [vmem:[%s4223_s27 + $0xa1] sm:$0xff] }
  0x25   : > { %v238_v22 = vld [vmem:[%s4223_s27 + $0xb9] sm:$0xff]  ;;  %v237_v23 = vld [vmem:[%s4223_s27 + $0xb1] sm:$0xff]  ;;  %v240_v24 = vld [vmem:[%s4223_s27 + $0xc9] sm:$0xff] }
  0x26   : > { %523 = vrot.lane.b32.xlu1 %v220_v4, %s4137_s28  ;;  %521 = vrot.lane.b32.xlu0 %v219_v5, %s4137_s28  ;;  %v239_v25 = vld [vmem:[%s4223_s27 + $0xc1] sm:$0xff]  ;;  %v242_v26 = vld [vmem:[%s4223_s27 + $0xd9] sm:$0xff] }
  0x27   : > { %v241_v27 = vld [vmem:[%s4223_s27 + $0xd1] sm:$0xff]  ;;  %v244_v28 = vld [vmem:[%s4223_s27 + $0xe9] sm:$0xff]  ;;  %v243_v29 = vld [vmem:[%s4223_s27 + $0xe1] sm:$0xff] }
  0x28   : > { %v246_v30 = vld [vmem:[%s4223_s27 + $0xf9] sm:$0xff]  ;;  %v245_v31 = vld [vmem:[%s4223_s27 + $0xf1] sm:$0xff]  ;;  %v248_v32 = vld [vmem:[%s4223_s27 + $0x109] sm:$0xff] }
  0x29   : > { %v247_v33 = vld [vmem:[%s4223_s27 + $0x101] sm:$0xff]  ;;  %v250_v34 = vld [vmem:[%s4223_s27 + $0x119] sm:$0xff]  ;;  %v249_v35 = vld [vmem:[%s4223_s27 + $0x111] sm:$0xff] }
  0x2a   : > { %527 = vrot.lane.b32.xlu1 %v222_v6, %s4137_s28  ;;  %525 = vrot.lane.b32.xlu0 %v221_v7, %s4137_s28  ;;  %v252_v36 = vld [vmem:[%s4223_s27 + $0x129] sm:$0xff]  ;;  %v251_v37 = vld [vmem:[%s4223_s27 + $0x121] sm:$0xff] }
  0x2b   : > { %v254_v38 = vld [vmem:[%s4223_s27 + $0x139] sm:$0xff]  ;;  %v253_v39 = vld [vmem:[%s4223_s27 + $0x131] sm:$0xff]  ;;  %v256_v40 = vld [vmem:[%s4223_s27 + $0x149] sm:$0xff] }
  0x2c   : > { %v255_v41 = vld [vmem:[%s4223_s27 + $0x141] sm:$0xff]  ;;  %v258_v42 = vld [vmem:[%s4223_s27 + $0xa] sm:$0xff]  ;;  %v4317_v45 = vld [vmem:[%s4223_s27 + $0x12] sm:$0xff] }
  0x2d   : > { %v257_v43 = vld [vmem:[%s4223_s27 + $0x2] sm:$0xff]  ;;  %v4314_v44 = vld [vmem:[%s4223_s27 + $0x1a] sm:$0xff]  ;;  %v4324_v46 = vld [vmem:[%s4223_s27 + $0x2a] sm:$0xff] }
  0x2e   : > { %531 = vrot.lane.b32.xlu1 %v224_v8, %s4137_s28  ;;  %529 = vrot.lane.b32.xlu0 %v223_v9, %s4137_s28  ;;  %v4327_v47 = vld [vmem:[%s4223_s27 + $0x22] sm:$0xff]  ;;  %v4334_v48 = vld [vmem:[%s4223_s27 + $0x3a] sm:$0xff] }
  0x2f   : > { %v4337_v49 = vld [vmem:[%s4223_s27 + $0x32] sm:$0xff]  ;;  %v4344_v50 = vld [vmem:[%s4223_s27 + $0x4a] sm:$0xff]  ;;  %v4347_v51 = vld [vmem:[%s4223_s27 + $0x42] sm:$0xff] }
  0x30   : > { %v4354_v52 = vld [vmem:[%s4223_s27 + $0x5a] sm:$0xff]  ;;  %v4357_v53 = vld [vmem:[%s4223_s27 + $0x52] sm:$0xff]  ;;  %v4364_v54 = vld [vmem:[%s4223_s27 + $0x6a] sm:$0xff] }
  0x31   : > { %v4367_v55 = vld [vmem:[%s4223_s27 + $0x62] sm:$0xff]  ;;  %v4374_v56 = vld [vmem:[%s4223_s27 + $0x7a] sm:$0xff]  ;;  %v4377_v57 = vld [vmem:[%s4223_s27 + $0x72] sm:$0xff] }
  0x32   : > { %535 = vrot.lane.b32.xlu1 %v226_v10, %s4137_s28  ;;  %533 = vrot.lane.b32.xlu0 %v225_v11, %s4137_s28  ;;  %v4384_v58 = vld [vmem:[%s4223_s27 + $0x8a] sm:$0xff]  ;;  %v4387_v59 = vld [vmem:[%s4223_s27 + $0x82] sm:$0xff] }
  0x33   : > { %v4398_v62 = vld [vmem:[%s4223_s27 + $0x9a] sm:$0xff]  ;;  %v4401_v63 = vld [vmem:[%s4223_s27 + $0x92] sm:$0xff]  ;;  %v4412_v2 = vld [vmem:[%s4223_s27 + $0xaa] sm:$0xff] }
  0x34   : > { %v4415_v3 = vld [vmem:[%s4223_s27 + $0xa2] sm:$0xff]  ;;  %v4426_v6 = vld [vmem:[%s4223_s27 + $0xba] sm:$0xff]  ;;  %v4429_v7 = vld [vmem:[%s4223_s27 + $0xb2] sm:$0xff] }
  0x35   : > { %v282_v10 = vld [vmem:[%s4223_s27 + $0xca] sm:$0xff]  ;;  %v281_v11 = vld [vmem:[%s4223_s27 + $0xc2] sm:$0xff] }
  0x36   : > { %539 = vrot.lane.b32.xlu1 %v228_v12, %s4137_s28  ;;  %537 = vrot.lane.b32.xlu0 %v227_v13, %s4137_s28 }
  0x3a   : > { %543 = vrot.lane.b32.xlu1 %v230_v14, %s4137_s28  ;;  %541 = vrot.lane.b32.xlu0 %v229_v15, %s4137_s28  ;;  %v284_v14 = vld [vmem:[%s4223_s27 + $0xda] sm:$0xff]  ;;  %v283_v15 = vld [vmem:[%s4223_s27 + $0xd2] sm:$0xff] }
  0x3e   : > { %547 = vrot.lane.b32.xlu1 %v232_v16, %s4137_s28  ;;  %545 = vrot.lane.b32.xlu0 %v231_v17, %s4137_s28 }
  0x42   : > { %551 = vrot.lane.b32.xlu1 %v234_v18, %s4137_s28  ;;  %549 = vrot.lane.b32.xlu0 %v233_v19, %s4137_s28  ;;  %v286_v18 = vld [vmem:[%s4223_s27 + $0xea] sm:$0xff]  ;;  %v285_v19 = vld [vmem:[%s4223_s27 + $0xe2] sm:$0xff] }
  0x46   : > { %555 = vrot.lane.b32.xlu1 %v236_v20, %s4137_s28  ;;  %553 = vrot.lane.b32.xlu0 %v235_v21, %s4137_s28 }
  0x4a   : > { %559 = vrot.lane.b32.xlu1 %v238_v22, %s4137_s28  ;;  %557 = vrot.lane.b32.xlu0 %v237_v23, %s4137_s28  ;;  %v288_v22 = vld [vmem:[%s4223_s27 + $0xfa] sm:$0xff]  ;;  %v287_v23 = vld [vmem:[%s4223_s27 + $0xf2] sm:$0xff] }
  0x4e   : > { %563 = vrot.lane.b32.xlu1 %v240_v24, %s4137_s28  ;;  %561 = vrot.lane.b32.xlu0 %v239_v25, %s4137_s28 }
  0x52   : > { %567 = vrot.lane.b32.xlu1 %v242_v26, %s4137_s28  ;;  %565 = vrot.lane.b32.xlu0 %v241_v27, %s4137_s28  ;;  %v290_v26 = vld [vmem:[%s4223_s27 + $0x10a] sm:$0xff]  ;;  %v289_v27 = vld [vmem:[%s4223_s27 + $0x102] sm:$0xff] }
  0x56   : > { %571 = vrot.lane.b32.xlu1 %v244_v28, %s4137_s28  ;;  %569 = vrot.lane.b32.xlu0 %v243_v29, %s4137_s28 }
  0x5a   : > { %575 = vrot.lane.b32.xlu1 %v246_v30, %s4137_s28  ;;  %573 = vrot.lane.b32.xlu0 %v245_v31, %s4137_s28  ;;  %v292_v30 = vld [vmem:[%s4223_s27 + $0x11a] sm:$0xff]  ;;  %v291_v31 = vld [vmem:[%s4223_s27 + $0x112] sm:$0xff] }
  0x5e   : > { %579 = vrot.lane.b32.xlu1 %v248_v32, %s4137_s28  ;;  %577 = vrot.lane.b32.xlu0 %v247_v33, %s4137_s28 }
  0x62   : > { %583 = vrot.lane.b32.xlu1 %v250_v34, %s4137_s28  ;;  %581 = vrot.lane.b32.xlu0 %v249_v35, %s4137_s28  ;;  %v294_v34 = vld [vmem:[%s4223_s27 + $0x12a] sm:$0xff]  ;;  %v293_v35 = vld [vmem:[%s4223_s27 + $0x122] sm:$0xff] }
  0x66   : > { %587 = vrot.lane.b32.xlu1 %v252_v36, %s4137_s28  ;;  %585 = vrot.lane.b32.xlu0 %v251_v37, %s4137_s28 }
  0x6a   : > { %591 = vrot.lane.b32.xlu1 %v254_v38, %s4137_s28  ;;  %589 = vrot.lane.b32.xlu0 %v253_v39, %s4137_s28  ;;  %v296_v38 = vld [vmem:[%s4223_s27 + $0x13a] sm:$0xff]  ;;  %v295_v39 = vld [vmem:[%s4223_s27 + $0x132] sm:$0xff] }
  0x6e   : > { %595 = vrot.lane.b32.xlu1 %v256_v40, %s4137_s28  ;;  %593 = vrot.lane.b32.xlu0 %v255_v41, %s4137_s28  ;;  %s4144_s28 = smov 32  }
  0x72   : > { %683 = vrot.lane.b32.xlu1 %v258_v42, %s4138_s29  ;;  %681 = vrot.lane.b32.xlu0 %v257_v43, %s4138_s29  ;;  %v298_v42 = vld [vmem:[%s4223_s27 + $0x14a] sm:$0xff]  ;;  %v297_v43 = vld [vmem:[%s4223_s27 + $0x142] sm:$0xff] }
  0x76   : > { %687 = vrot.lane.b32.xlu1 %v4314_v44, %s4138_s29  ;;  %685 = vrot.lane.b32.xlu0 %v4317_v45, %s4138_s29 }
  0x7a   : > { %691 = vrot.lane.b32.xlu1 %v4324_v46, %s4138_s29  ;;  %689 = vrot.lane.b32.xlu0 %v4327_v47, %s4138_s29 }
  0x7e   : > { %695 = vrot.lane.b32.xlu1 %v4334_v48, %s4138_s29  ;;  %693 = vrot.lane.b32.xlu0 %v4337_v49, %s4138_s29 }
  0x82   : > { %699 = vrot.lane.b32.xlu1 %v4344_v50, %s4138_s29  ;;  %697 = vrot.lane.b32.xlu0 %v4347_v51, %s4138_s29 }
  0x86   : > { %703 = vrot.lane.b32.xlu1 %v4354_v52, %s4138_s29  ;;  %701 = vrot.lane.b32.xlu0 %v4357_v53, %s4138_s29 }
  0x8a   : > { %707 = vrot.lane.b32.xlu1 %v4364_v54, %s4138_s29  ;;  %705 = vrot.lane.b32.xlu0 %v4367_v55, %s4138_s29 }
  0x8e   : > { %711 = vrot.lane.b32.xlu1 %v4374_v56, %s4138_s29  ;;  %709 = vrot.lane.b32.xlu0 %v4377_v57, %s4138_s29 }
  0x90   : > { %v4389_v60 = vpop.permute.xlu1 %517  ;;  %v4391_v61 = vpop.permute.xlu0 %513 }
  0x92   : > { %715 = vrot.lane.b32.xlu1 %v4384_v58, %s4138_s29  ;;  %713 = vrot.lane.b32.xlu0 %v4387_v59, %s4138_s29 }
  0x94   : > { %v4403_v0 = vpop.permute.xlu1 %519  ;;  %v4405_v1 = vpop.permute.xlu0 %515 }
  0x96   : > { %719 = vrot.lane.b32.xlu1 %v4398_v62, %s4138_s29  ;;  %717 = vrot.lane.b32.xlu0 %v4401_v63, %s4138_s29 }
  0x98   : > { %v4417_v4 = vpop.permute.xlu1 %523  ;;  %v4419_v5 = vpop.permute.xlu0 %521 }
  0x9a   : > { %723 = vrot.lane.b32.xlu1 %v4412_v2, %s4138_s29  ;;  %721 = vrot.lane.b32.xlu0 %v4415_v3, %s4138_s29 }
  0x9c   : > { %v4431_v8 = vpop.permute.xlu1 %527  ;;  %v4433_v9 = vpop.permute.xlu0 %525 }
  0x9e   : > { %727 = vrot.lane.b32.xlu1 %v4426_v6, %s4138_s29  ;;  %725 = vrot.lane.b32.xlu0 %v4429_v7, %s4138_s29 }
  0xa0   : > { %v4441_v12 = vpop.permute.xlu1 %531  ;;  %v4443_v13 = vpop.permute.xlu0 %529 }
  0xa2   : > { %731 = vrot.lane.b32.xlu1 %v282_v10, %s4138_s29  ;;  %729 = vrot.lane.b32.xlu0 %v281_v11, %s4138_s29 }
  0xa4   : > { %v4449_v16 = vpop.permute.xlu1 %535  ;;  %v4451_v17 = vpop.permute.xlu0 %533 }
  0xa6   : > { %735 = vrot.lane.b32.xlu1 %v284_v14, %s4138_s29  ;;  %733 = vrot.lane.b32.xlu0 %v283_v15, %s4138_s29 }
  0xa8   : > { %v4457_v20 = vpop.permute.xlu1 %539  ;;  %v4459_v21 = vpop.permute.xlu0 %537 }
  0xaa   : > { %739 = vrot.lane.b32.xlu1 %v286_v18, %s4138_s29  ;;  %737 = vrot.lane.b32.xlu0 %v285_v19, %s4138_s29  ;;  %v301_v18 = vld [vmem:[%s4223_s27 + $0x13] sm:$0xff] }
  0xac   : > { %v4465_v24 = vpop.permute.xlu1 %543  ;;  %v4467_v25 = vpop.permute.xlu0 %541 }
  0xae   : > { %743 = vrot.lane.b32.xlu1 %v288_v22, %s4138_s29  ;;  %741 = vrot.lane.b32.xlu0 %v287_v23, %s4138_s29  ;;  %v343_v23 = vld [vmem:[%s4223_s27 + $0x14] sm:$0xff] }
  0xb0   : > { %v4473_v28 = vpop.permute.xlu1 %547  ;;  %v4475_v29 = vpop.permute.xlu0 %545 }
  0xb1   : > { %7385 = vst [vmem:[#allocation5_spill] sm:$0xff] %v4473_v28 }
  0xb2   : > { %747 = vrot.lane.b32.xlu1 %v290_v26, %s4138_s29  ;;  %745 = vrot.lane.b32.xlu0 %v289_v27, %s4138_s29  ;;  %v302_v26 = vld [vmem:[%s4223_s27 + $0x1b] sm:$0xff] }
  0xb4   : > { %v4481_v32 = vpop.permute.xlu1 %551  ;;  %v4483_v33 = vpop.permute.xlu0 %549 }
  0xb5   : > { %7386 = vst [vmem:[#allocation6_spill] sm:$0xff] %v4481_v32  ;;  %7387 = vst [vmem:[#allocation7_spill] sm:$0xff] %v4483_v33 }
  0xb6   : > { %751 = vrot.lane.b32.xlu1 %v292_v30, %s4138_s29  ;;  %749 = vrot.lane.b32.xlu0 %v291_v31, %s4138_s29  ;;  %v345_v30 = vld [vmem:[%s4223_s27 + $0x24] sm:$0xff]  ;;  %v344_v31 = vld [vmem:[%s4223_s27 + $0x1c] sm:$0xff] }
  0xb8   : > { %v4489_v36 = vpop.permute.xlu1 %555  ;;  %v4491_v37 = vpop.permute.xlu0 %553 }
  0xb9   : > { %7388 = vst [vmem:[#allocation8_spill] sm:$0xff] %v4489_v36  ;;  %7389 = vst [vmem:[#allocation9_spill] sm:$0xff] %v4491_v37 }
  0xba   : > { %755 = vrot.lane.b32.xlu1 %v294_v34, %s4138_s29  ;;  %753 = vrot.lane.b32.xlu0 %v293_v35, %s4138_s29 }
  0xbc   : > { %v4497_v40 = vpop.permute.xlu1 %559  ;;  %v4499_v41 = vpop.permute.xlu0 %557 }
  0xbd   : > { %7390 = vst [vmem:[#allocation10_spill] sm:$0xff] %v4497_v40  ;;  %7391 = vst [vmem:[#allocation11_spill] sm:$0xff] %v4499_v41  ;;  %v392_v40 = vld [vmem:[%s4223_s27 + $0x4d] sm:$0xff] }
  0xbe   : > { %759 = vrot.lane.b32.xlu1 %v296_v38, %s4138_s29  ;;  %757 = vrot.lane.b32.xlu0 %v295_v39, %s4138_s29  ;;  %v2081_v39 = vld [vmem:[%s7301_s1 + $0x10] sm:$0xff] }
  0xc0   : > { %v4505_v10 = vpop.permute.xlu1 %563  ;;  %v4507_v11 = vpop.permute.xlu0 %561 }
  0xc1   : > { %7392 = vst [vmem:[#allocation12_spill] sm:$0xff] %v4505_v10  ;;  %7393 = vst [vmem:[#allocation13_spill] sm:$0xff] %v4507_v11 }
  0xc2   : > { %763 = vrot.lane.b32.xlu1 %v298_v42, %s4138_s29  ;;  %761 = vrot.lane.b32.xlu0 %v297_v43, %s4138_s29  ;;  %v2082_v42 = vld [vmem:[%s7301_s1 + $0x18] sm:$0xff]  ;;  %v387_v43 = vld [vmem:[%s4223_s27 + $0x25] sm:$0xff] }
  0xc4   : > { %v4511_v14 = vpop.permute.xlu1 %567  ;;  %v4513_v15 = vpop.permute.xlu0 %565 }
  0xc5   : > { %7394 = vst [vmem:[#allocation14_spill] sm:$0xff] %v4511_v14  ;;  %7395 = vst [vmem:[#allocation15_spill] sm:$0xff] %v4513_v15 }
  0xc6   : > { %811 = vrot.lane.b32.xlu1 %v4314_v44, %s4139_s30  ;;  %809 = vrot.lane.b32.xlu0 %v4317_v45, %s4139_s30  ;;  %v2079_v45 = vld [vmem:[%s7301_s1] sm:$0xff] }
  0xc8   : > { %v4520_v19 = vpop.permute.xlu1 %571  ;;  %v4522_v22 = vpop.permute.xlu0 %569 }
  0xc9   : > { %7396 = vst [vmem:[#allocation16_spill] sm:$0xff] %v4520_v19  ;;  %7397 = vst [vmem:[#allocation17_spill] sm:$0xff] %v4522_v22 }
  0xca   : > { %977 = vrot.lane.b32.xlu1 %v301_v18, %s4140_s3  ;;  %813 = vrot.lane.b32.xlu0 %v4327_v47, %s4139_s30  ;;  %v2080_v47 = vld [vmem:[%s7301_s1 + $0x8] sm:$0xff] }
  0xcb   : > { %v3873_v34 = vpack.c.bf16 %v2080_v47, %v2079_v45  ;;  %v346_v18 = vld [vmem:[%s4223_s27 + $0x2c] sm:$0xff]  ;;  %v2083_v47 = vld [vmem:[%s7301_s1 + $0x20] sm:$0xf] }
  0xcc   : > { %v4529_v27 = vpop.permute.xlu1 %575  ;;  %v4531_v44 = vpop.permute.xlu0 %573 }
  0xcd   : > { %7398 = vst [vmem:[#allocation18_spill] sm:$0xff] %v4529_v27  ;;  %7399 = vst [vmem:[#allocation19_spill] sm:$0xff] %v4531_v44  ;;  %3874 = vmatprep.subr.bf16.mxu0 %v3873_v34  ;;  %3881 = vmatprep.subr.bf16.mxu1 %v3873_v34 }
  0xce   : > { %1145 = vrot.lane.b32.xlu1 %v343_v23, %s4141_s6  ;;  %979 = vrot.lane.b32.xlu0 %v302_v26, %s4140_s3  ;;  %v3877_v23 = vpack.c.bf16 %v2082_v42, %v2081_v39  ;;  %v429_v42 = vld [vmem:[%s4223_s27 + $0x26] sm:$0xff] }
  0xcf   : > { %3876 = vmatpush3.bf16.msra.mxu0 %v3873_v34  ;;  %3884 = vmatpush3.bf16.msra.mxu1 %v3873_v34 }
  0xd0   : > { %v4543_v35 = vpop.permute.xlu1 %579  ;;  %v4545_v38 = vpop.permute.xlu0 %577  ;;  %3878 = vmatprep.subr.bf16.mxu0 %v3877_v23  ;;  %3882 = vmatprep.subr.bf16.mxu1 %v3877_v23 }
  0xd1   : > { %7400 = vst [vmem:[#allocation20_spill] sm:$0xff] %v4543_v35  ;;  %7401 = vst [vmem:[#allocation21_spill] sm:$0xff] %v4545_v38  ;;  %v390_v35 = vld [vmem:[%s4223_s27 + $0x3d] sm:$0xff] }
  0xd2   : > { %1273 = vrot.lane.b32.xlu1 %v345_v30, %s4142_s15  ;;  %1147 = vrot.lane.b32.xlu0 %v344_v31, %s4141_s6  ;;  %v303_v31 = vld [vmem:[%s4223_s27 + $0x23] sm:$0xff] }
  0xd3   : > { %3880 = vmatpush3.bf16.msra.mxu0 %v3877_v23  ;;  %3885 = vmatpush3.bf16.msra.mxu1 %v3877_v23 }
  0xd4   : > { %v4557_v26 = vpop.permute.xlu1 %583  ;;  %v4559_v45 = vpop.permute.xlu0 %581  ;;  %3808 = vmatprep.subr.msk.mxu0 %vm2211_vm0, %v2083_v47  ;;  %3883 = vmatprep.subr.msk.mxu1 %vm2211_vm0, %v2083_v47 }
  0xd5   : > { %7402 = vst [vmem:[#allocation22_spill] sm:$0xff] %v4557_v26  ;;  %7403 = vst [vmem:[#allocation23_spill] sm:$0xff] %v4559_v45 }
  0xd6   : > { %1441 = vrot.lane.b32.xlu1 %v387_v43, %s4143_s24  ;;  %1275 = vrot.lane.b32.xlu0 %v346_v18, %s4142_s15  ;;  %v388_v43 = vld [vmem:[%s4223_s27 + $0x2d] sm:$0xff] }
  0xd7   : > { %3809 = vmatpush3.msk.msra.mxu0 %vm2211_vm0, %v2083_v47  ;;  %3886 = vmatpush3.msk.msra.mxu1 %vm2211_vm0, %v2083_v47  ;;  %v430_v47 = vld [vmem:[%s4223_s27 + $0x2e] sm:$0xff] }
  0xd8   : > { %v4567_v34 = vpop.permute.xlu1 %587  ;;  %v4569_v39 = vpop.permute.xlu0 %585 }
  0xd9   : > { %7404 = vst [vmem:[#allocation24_spill] sm:$0xff] %v4567_v34  ;;  %7405 = vst [vmem:[#allocation25_spill] sm:$0xff] %v4569_v39 }
  0xda   : > { %981 = vrot.lane.b32.xlu1 %v303_v31, %s4140_s3  ;;  %815 = vrot.lane.b32.xlu0 %v4324_v46, %s4139_s30  ;;  %v304_v31 = vld [vmem:[%s4223_s27 + $0x2b] sm:$0xff] }
  0xdc   : > { %v4576_v26 = vpop.permute.xlu1 %591  ;;  %v4578_v23 = vpop.permute.xlu0 %589 }
  0xdd   : > { %7406 = vst [vmem:[#allocation26_spill] sm:$0xff] %v4576_v26  ;;  %7407 = vst [vmem:[#allocation27_spill] sm:$0xff] %v4578_v23 }
  0xde   : > { %1609 = vrot.lane.b32.xlu1 %v429_v42, %s4144_s28  ;;  %1443 = vrot.lane.b32.xlu0 %v388_v43, %s4143_s24  ;;  %v347_v42 = vld [vmem:[%s4223_s27 + $0x34] sm:$0xff] }
  0xe0   : > { %v4583_v34 = vpop.permute.xlu1 %595  ;;  %v4585_v46 = vpop.permute.xlu0 %593 }
  0xe1   : > { %7408 = vst [vmem:[#allocation28_spill] sm:$0xff] %v4583_v34  ;;  %7409 = vst [vmem:[#allocation29_spill] sm:$0xff] %v4585_v46 }
  0xe2   : > { %1149 = vrot.lane.b32.xlu1 %v345_v30, %s4141_s6  ;;  %983 = vrot.lane.b32.xlu0 %v304_v31, %s4140_s3  ;;  %v389_v30 = vld [vmem:[%s4223_s27 + $0x35] sm:$0xff] }
  0xe3   : > { %v348_v31 = vld [vmem:[%s4223_s27 + $0x3c] sm:$0xff] }
  0xe4   : > { %v4590_v26 = vpop.permute.xlu1 %683  ;;  %v4592_v23 = vpop.permute.xlu0 %681 }
  0xe6   : > { %1151 = vrot.lane.b32.xlu1 %v346_v18, %s4141_s6  ;;  %1611 = vrot.lane.b32.xlu0 %v430_v47, %s4144_s28  ;;  %v305_v47 = vld [vmem:[%s4223_s27 + $0x33] sm:$0xff] }
  0xe8   : > { %v4597_v43 = vpop.permute.xlu1 %687  ;;  %v4599_v46 = vpop.permute.xlu0 %685 }
  0xea   : > { %817 = vrot.lane.b32.xlu1 %v4337_v49, %s4139_s30  ;;  %1277 = vrot.lane.b32.xlu0 %v347_v42, %s4142_s15  ;;  %v431_v49 = vld [vmem:[%s4223_s27 + $0x36] sm:$0xff] }
  0xec   : > { %v4606_v34 = vpop.permute.xlu1 %691  ;;  %v4608_v18 = vpop.permute.xlu0 %689 }
  0xee   : > { %1445 = vrot.lane.b32.xlu1 %v389_v30, %s4143_s24  ;;  %1279 = vrot.lane.b32.xlu0 %v348_v31, %s4142_s15  ;;  %v306_v30 = vld [vmem:[%s4223_s27 + $0x3b] sm:$0xff] }
  0xf0   : > { %v4613_v39 = vpop.permute.xlu1 %695  ;;  %v4615_v45 = vpop.permute.xlu0 %693 }
  0xf2   : > { %985 = vrot.lane.b32.xlu1 %v305_v47, %s4140_s3  ;;  %819 = vrot.lane.b32.xlu0 %v4334_v48, %s4139_s30  ;;  %v432_v48 = vld [vmem:[%s4223_s27 + $0x3e] sm:$0xff] }
  0xf4   : > { %v4622_v38 = vpop.permute.xlu1 %699  ;;  %v4624_v27 = vpop.permute.xlu0 %697 }
  0xf6   : > { %1613 = vrot.lane.b32.xlu1 %v431_v49, %s4144_s28  ;;  %1447 = vrot.lane.b32.xlu0 %v390_v35, %s4143_s24  ;;  %v349_v35 = vld [vmem:[%s4223_s27 + $0x44] sm:$0xff] }
  0xf8   : > { %v4629_v44 = vpop.permute.xlu1 %703  ;;  %v4631_v47 = vpop.permute.xlu0 %701 }
  0xfa   : > { %1153 = vrot.lane.b32.xlu1 %v347_v42, %s4141_s6  ;;  %987 = vrot.lane.b32.xlu0 %v306_v30, %s4140_s3  ;;  %v391_v42 = vld [vmem:[%s4223_s27 + $0x45] sm:$0xff] }
  0xfb   : > { %v350_v30 = vld [vmem:[%s4223_s27 + $0x4c] sm:$0xff] }
  0xfc   : > { %v4636_v19 = vpop.permute.xlu1 %707  ;;  %v4638_v22 = vpop.permute.xlu0 %705 }
  0xfe   : > { %1155 = vrot.lane.b32.xlu1 %v348_v31, %s4141_s6  ;;  %1615 = vrot.lane.b32.xlu0 %v432_v48, %s4144_s28  ;;  %v307_v48 = vld [vmem:[%s4223_s27 + $0x43] sm:$0xff] }
 0x100   : > { %v4643_v49 = vpop.permute.xlu1 %711  ;;  %v4645_v14 = vpop.permute.xlu0 %709 }
 0x102   : > { %821 = vrot.lane.b32.xlu1 %v4347_v51, %s4139_s30  ;;  %1281 = vrot.lane.b32.xlu0 %v349_v35, %s4142_s15  ;;  %v433_v51 = vld [vmem:[%s4223_s27 + $0x46] sm:$0xff] }
 0x104   : > { %v4652_v15 = vpop.permute.xlu1 %715  ;;  %v4654_v31 = vpop.permute.xlu0 %713 }
 0x105   : > { %7410 = vst [vmem:[#allocation30_spill] sm:$0xff] %v4652_v15 }
 0x106   : > { %1449 = vrot.lane.b32.xlu1 %v391_v42, %s4143_s24  ;;  %1283 = vrot.lane.b32.xlu0 %v350_v30, %s4142_s15  ;;  %v308_v42 = vld [vmem:[%s4223_s27 + $0x4b] sm:$0xff] }
 0x108   : > { %v4659_v10 = vpop.permute.xlu1 %719  ;;  %v4661_v11 = vpop.permute.xlu0 %717 }
 0x109   : > { %7411 = vst [vmem:[#allocation31_spill] sm:$0xff] %v4659_v10  ;;  %7412 = vst [vmem:[#allocation32_spill] sm:$0xff] %v4661_v11  ;;  %v355_v10 = vld [vmem:[%s4223_s27 + $0x74] sm:$0xff] }
 0x10a   : > { %989 = vrot.lane.b32.xlu1 %v307_v48, %s4140_s3  ;;  %823 = vrot.lane.b32.xlu0 %v4344_v50, %s4139_s30  ;;  %v434_v50 = vld [vmem:[%s4223_s27 + $0x4e] sm:$0xff] }
 0x10c   : > { %v4668_v41 = vpop.permute.xlu1 %723  ;;  %v4670_v36 = vpop.permute.xlu0 %721 }
 0x10d   : > { %7413 = vst [vmem:[#allocation33_spill] sm:$0xff] %v4668_v41  ;;  %7414 = vst [vmem:[#allocation34_spill] sm:$0xff] %v4670_v36 }
 0x10e   : > { %1617 = vrot.lane.b32.xlu1 %v433_v51, %s4144_s28  ;;  %1451 = vrot.lane.b32.xlu0 %v392_v40, %s4143_s24  ;;  %v351_v40 = vld [vmem:[%s4223_s27 + $0x54] sm:$0xff] }
 0x110   : > { %v4675_v37 = vpop.permute.xlu1 %727  ;;  %v4677_v48 = vpop.permute.xlu0 %725 }
 0x111   : > { %7415 = vst [vmem:[#allocation35_spill] sm:$0xff] %v4675_v37  ;;  %7416 = vst [vmem:[#allocation36_spill] sm:$0xff] %v4677_v48 }
 0x112   : > { %1157 = vrot.lane.b32.xlu1 %v349_v35, %s4141_s6  ;;  %991 = vrot.lane.b32.xlu0 %v308_v42, %s4140_s3  ;;  %v393_v35 = vld [vmem:[%s4223_s27 + $0x55] sm:$0xff] }
 0x113   : > { %v352_v42 = vld [vmem:[%s4223_s27 + $0x5c] sm:$0xff] }
 0x114   : > { %v4682_v41 = vpop.permute.xlu1 %731  ;;  %v4684_v36 = vpop.permute.xlu0 %729 }
 0x115   : > { %7417 = vst [vmem:[#allocation37_spill] sm:$0xff] %v4682_v41  ;;  %7418 = vst [vmem:[#allocation38_spill] sm:$0xff] %v4684_v36 }
 0x116   : > { %1159 = vrot.lane.b32.xlu1 %v350_v30, %s4141_s6  ;;  %1619 = vrot.lane.b32.xlu0 %v434_v50, %s4144_s28  ;;  %v309_v50 = vld [vmem:[%s4223_s27 + $0x53] sm:$0xff] }
 0x118   : > { %v4689_v51 = vpop.permute.xlu1 %735  ;;  %v4691_v37 = vpop.permute.xlu0 %733 }
 0x119   : > { %7419 = vst [vmem:[#allocation39_spill] sm:$0xff] %v4689_v51  ;;  %7420 = vst [vmem:[#allocation40_spill] sm:$0xff] %v4691_v37 }
 0x11a   : > { %825 = vrot.lane.b32.xlu1 %v4357_v53, %s4139_s30  ;;  %1285 = vrot.lane.b32.xlu0 %v351_v40, %s4142_s15  ;;  %v435_v53 = vld [vmem:[%s4223_s27 + $0x56] sm:$0xff] }
 0x11c   : > { %v4698_v41 = vpop.permute.xlu1 %739  ;;  %v4700_v30 = vpop.permute.xlu0 %737 }
 0x11d   : > { %7421 = vst [vmem:[#allocation41_spill] sm:$0xff] %v4698_v41  ;;  %7422 = vst [vmem:[#allocation42_spill] sm:$0xff] %v4700_v30  ;;  %v394_v41 = vld [vmem:[%s4223_s27 + $0x5d] sm:$0xff] }
 0x11e   : > { %1453 = vrot.lane.b32.xlu1 %v393_v35, %s4143_s24  ;;  %1287 = vrot.lane.b32.xlu0 %v352_v42, %s4142_s15  ;;  %v310_v35 = vld [vmem:[%s4223_s27 + $0x5b] sm:$0xff] }
 0x120   : > { %v4705_v51 = vpop.permute.xlu1 %743  ;;  %v4707_v37 = vpop.permute.xlu0 %741 }
 0x121   : > { %7423 = vst [vmem:[#allocation43_spill] sm:$0xff] %v4705_v51  ;;  %7424 = vst [vmem:[#allocation44_spill] sm:$0xff] %v4707_v37 }
 0x122   : > { %993 = vrot.lane.b32.xlu1 %v309_v50, %s4140_s3  ;;  %827 = vrot.lane.b32.xlu0 %v4354_v52, %s4139_s30  ;;  %v436_v52 = vld [vmem:[%s4223_s27 + $0x5e] sm:$0xff] }
 0x124   : > { %v4714_v36 = vpop.permute.xlu1 %747  ;;  %v4716_v30 = vpop.permute.xlu0 %745 }
 0x125   : > { %7425 = vst [vmem:[#allocation45_spill] sm:$0xff] %v4714_v36  ;;  %7426 = vst [vmem:[#allocation46_spill] sm:$0xff] %v4716_v30 }
 0x126   : > { %1621 = vrot.lane.b32.xlu1 %v435_v53, %s4144_s28  ;;  %1455 = vrot.lane.b32.xlu0 %v394_v41, %s4143_s24  ;;  %v353_v41 = vld [vmem:[%s4223_s27 + $0x64] sm:$0xff] }
 0x128   : > { %v4721_v51 = vpop.permute.xlu1 %751  ;;  %v4723_v50 = vpop.permute.xlu0 %749 }
 0x129   : > { %7427 = vst [vmem:[#allocation47_spill] sm:$0xff] %v4721_v51  ;;  %7428 = vst [vmem:[#allocation48_spill] sm:$0xff] %v4723_v50 }
 0x12a   : > { %1161 = vrot.lane.b32.xlu1 %v351_v40, %s4141_s6  ;;  %995 = vrot.lane.b32.xlu0 %v310_v35, %s4140_s3  ;;  %v395_v40 = vld [vmem:[%s4223_s27 + $0x65] sm:$0xff] }
 0x12b   : > { %v354_v35 = vld [vmem:[%s4223_s27 + $0x6c] sm:$0xff] }
 0x12c   : > { %v4728_v36 = vpop.permute.xlu1 %755  ;;  %v4730_v30 = vpop.permute.xlu0 %753 }
 0x12d   : > { %7429 = vst [vmem:[#allocation49_spill] sm:$0xff] %v4728_v36  ;;  %7430 = vst [vmem:[#allocation50_spill] sm:$0xff] %v4730_v30  ;;  %v396_v30 = vld [vmem:[%s4223_s27 + $0x6d] sm:$0xff] }
 0x12e   : > { %1163 = vrot.lane.b32.xlu1 %v352_v42, %s4141_s6  ;;  %1623 = vrot.lane.b32.xlu0 %v436_v52, %s4144_s28  ;;  %v311_v52 = vld [vmem:[%s4223_s27 + $0x63] sm:$0xff] }
 0x130   : > { %v4735_v53 = vpop.permute.xlu1 %759  ;;  %v4737_v51 = vpop.permute.xlu0 %757 }
 0x131   : > { %7431 = vst [vmem:[#allocation51_spill] sm:$0xff] %v4735_v53  ;;  %7432 = vst [vmem:[#allocation52_spill] sm:$0xff] %v4737_v51 }
 0x132   : > { %829 = vrot.lane.b32.xlu1 %v4367_v55, %s4139_s30  ;;  %1289 = vrot.lane.b32.xlu0 %v353_v41, %s4142_s15  ;;  %v437_v55 = vld [vmem:[%s4223_s27 + $0x66] sm:$0xff] }
 0x134   : > { %v4744_v36 = vpop.permute.xlu1 %763  ;;  %v4746_v42 = vpop.permute.xlu0 %761 }
 0x135   : > { %7433 = vst [vmem:[#allocation53_spill] sm:$0xff] %v4744_v36  ;;  %7434 = vst [vmem:[#allocation54_spill] sm:$0xff] %v4746_v42 }
 0x136   : > { %1457 = vrot.lane.b32.xlu1 %v395_v40, %s4143_s24  ;;  %1291 = vrot.lane.b32.xlu0 %v354_v35, %s4142_s15  ;;  %v312_v40 = vld [vmem:[%s4223_s27 + $0x6b] sm:$0xff] }
 0x138   : > { %v812_v53 = vpop.permute.xlu1 %811  ;;  %v810_v51 = vpop.permute.xlu0 %809 }
 0x13a   : > { %997 = vrot.lane.b32.xlu1 %v311_v52, %s4140_s3  ;;  %831 = vrot.lane.b32.xlu0 %v4364_v54, %s4139_s30  ;;  %v438_v52 = vld [vmem:[%s4223_s27 + $0x6e] sm:$0xff] }
 0x13c   : > { %v978_v50 = vpop.permute.xlu1 %977  ;;  %v4756_v36 = vpop.permute.xlu0 %813 }
 0x13e   : > { %1625 = vrot.lane.b32.xlu1 %v437_v55, %s4144_s28  ;;  %1459 = vrot.lane.b32.xlu0 %v396_v30, %s4143_s24  ;;  %v173_v55 = vld [vmem:[%s4223_s27] sm:$0xff] }
 0x140   : > { %v1146_v42 = vpop.permute.xlu1 %1145  ;;  %v980_v37 = vpop.permute.xlu0 %979 }
 0x142   : > { %1165 = vrot.lane.b32.xlu1 %v353_v41, %s4141_s6  ;;  %999 = vrot.lane.b32.xlu0 %v312_v40, %s4140_s3  ;;  %v1736_v41 = vsel %vm1735_vm1, %v173_v55, %v4391_v61  ;;  %v397_v40 = vld [vmem:[%s4223_s27 + $0x75] sm:$0xff] }
 0x144   : > { %v1274_v54 = vpop.permute.xlu1 %1273  ;;  %v1148_v48 = vpop.permute.xlu0 %1147 }
 0x146   : > { %1167 = vrot.lane.b32.xlu1 %v354_v35, %s4141_s6  ;;  %1627 = vrot.lane.b32.xlu0 %v438_v52, %s4144_s28  ;;  %v1779_v35 = vsel %vm1778_vm2, %v1736_v41, %v4592_v23  ;;  %v356_v52 = vld [vmem:[%s4223_s27 + $0x7c] sm:$0xff]  ;;  %v174_v23 = vld [vmem:[%s4223_s27 + $0x8] sm:$0xff] }
 0x147   : > { %v1822_v11 = vsel %vm1821_vm3, %v1779_v35, %v810_v51  ;;  %v313_v51 = vld [vmem:[%s4223_s27 + $0x73] sm:$0xff] }
 0x148   : > { %v1442_v30 = vpop.permute.xlu1 %1441  ;;  %v1276_v32 = vpop.permute.xlu0 %1275  ;;  %v1865_v61 = vsel %vm1864_vm4, %v1822_v11, %v978_v50  ;;  %v1737_v50 = vsel %vm1735_vm1, %v174_v23, %v4405_v1 }
 0x14a   : > { %833 = vrot.lane.b32.xlu1 %v4377_v57, %s4139_s30  ;;  %1293 = vrot.lane.b32.xlu0 %v355_v10, %s4142_s15  ;;  %v1908_v57 = vsel %vm1907_vm5, %v1865_v61, %v1146_v42  ;;  %v1780_v42 = vsel %vm1778_vm2, %v1737_v50, %v4590_v26  ;;  %v314_v26 = vld [vmem:[%s4223_s27 + $0x7b] sm:$0xff] }
 0x14b   : > { %v1951_v55 = vsel %vm1950_vm6, %v1908_v57, %v1274_v54  ;;  %v439_v54 = vld [vmem:[%s4223_s27 + $0x76] sm:$0xff] }
 0x14c   : > { %v982_v33 = vpop.permute.xlu1 %981  ;;  %v4778_v15 = vpop.permute.xlu0 %815  ;;  %v1994_v41 = vsel %vm1993_vm7, %v1951_v55, %v1442_v30  ;;  %v398_v30 = vld [vmem:[%s4223_s27 + $0x7d] sm:$0xff] }
 0x14e   : > { %1461 = vrot.lane.b32.xlu1 %v397_v40, %s4143_s24  ;;  %1295 = vrot.lane.b32.xlu0 %v356_v52, %s4142_s15  ;;  %v1823_v40 = vsel %vm1821_vm3, %v1780_v42, %v812_v53 }
 0x14f   : > { %v1866_v55 = vsel %vm1864_vm4, %v1823_v40, %v980_v37  ;;  %v440_v37 = vld [vmem:[%s4223_s27 + $0x7e] sm:$0xff] }
 0x150   : > { %v1610_v35 = vpop.permute.xlu1 %1609  ;;  %v1444_v28 = vpop.permute.xlu0 %1443  ;;  %v1909_v1 = vsel %vm1907_vm5, %v1866_v55, %v1148_v48 }
 0x151   : > { %v2037_v11 = vsel %vm2036_vm8, %v1994_v41, %v1610_v35 }
 0x152   : > { %1001 = vrot.lane.b32.xlu1 %v313_v51, %s4140_s3  ;;  %835 = vrot.lane.b32.xlu0 %v4374_v56, %s4139_s30  ;;  %v1952_v56 = vsel %vm1950_vm6, %v1909_v1, %v1276_v32  ;;  %v357_v32 = vld [vmem:[%s4223_s27 + $0x84] sm:$0xff] }
 0x153   : > { %3810 = vmatprep.mubr.msk.f32.mxu0 %vm2084_vm9, %v2037_v11  ;;  %v1995_v23 = vsel %vm1993_vm7, %v1952_v56, %v1444_v28  ;;  %v175_v28 = vld [vmem:[%s4223_s27 + $0x10] sm:$0xff]  ;;  %v315_v56 = vld [vmem:[%s4223_s27 + $0x83] sm:$0xff] }
 0x154   : > { %v1150_v61 = vpop.permute.xlu1 %1149  ;;  %v984_v57 = vpop.permute.xlu0 %983 }
 0x156   : > { %1629 = vrot.lane.b32.xlu1 %v439_v54, %s4144_s28  ;;  %1463 = vrot.lane.b32.xlu0 %v398_v30, %s4143_s24  ;;  %v358_v54 = vld [vmem:[%s4223_s27 + $0x8c] sm:$0xff] }
 0x158   : > { %v1152_v51 = vpop.permute.xlu1 %1151  ;;  %v1612_v53 = vpop.permute.xlu0 %1611 }
 0x159   : > { %v2038_v41 = vsel %vm2036_vm8, %v1995_v23, %v1612_v53 }
 0x15a   : > { %1169 = vrot.lane.b32.xlu1 %v355_v10, %s4141_s6  ;;  %1003 = vrot.lane.b32.xlu0 %v314_v26, %s4140_s3  ;;  %v1738_v10 = vsel %vm1735_vm1, %v175_v28, %v4389_v60 }
 0x15b   : > { %3811 = vmatmul.mubr.msk.f32.vlgmr.msra.gmra.mrb[0].mxu0 %vm2084_vm9, %v2038_v41  ;;  %v1781_v42 = vsel %vm1778_vm2, %v1738_v10, %v4599_v46  ;;  %v441_v41 = vld [vmem:[%s4223_s27 + $0x86] sm:$0xff] }
 0x15c   : > { %v4812_v48 = vpop.permute.xlu1 %817  ;;  %v1278_v35 = vpop.permute.xlu0 %1277  ;;  %v1824_v30 = vsel %vm1821_vm3, %v1781_v42, %v4756_v36 }
 0x15d   : > { %v1867_v1 = vsel %vm1864_vm4, %v1824_v30, %v982_v33 }
 0x15e   : > { %1171 = vrot.lane.b32.xlu1 %v356_v52, %s4141_s6  ;;  %1631 = vrot.lane.b32.xlu0 %v440_v37, %s4144_s28  ;;  %v399_v52 = vld [vmem:[%s4223_s27 + $0x85] sm:$0xff]  ;;  %v1910_v60 = vsel %vm1907_vm5, %v1867_v1, %v1150_v61  ;;  %v400_v37 = vld [vmem:[%s4223_s27 + $0x8d] sm:$0xff] }
 0x15f   : > { %v1953_v46 = vsel %vm1950_vm6, %v1910_v60, %v1278_v35  ;;  %v359_v60 = vld [vmem:[%s4223_s27 + $0x94] sm:$0xff] }
 0x160   : > { %v1446_v11 = vpop.permute.xlu1 %1445  ;;  %v1280_v50 = vpop.permute.xlu0 %1279 }
 0x161   : > { %v1996_v26 = vsel %vm1993_vm7, %v1953_v46, %v1446_v11 }
 0x162   : > { %837 = vrot.lane.b32.xlu1 %v4387_v59, %s4139_s30  ;;  %1297 = vrot.lane.b32.xlu0 %v357_v32, %s4142_s15  ;;  %v176_v59 = vld [vmem:[%s4223_s27 + $0x18] sm:$0xff] }
 0x163   : > { %v1739_v33 = vsel %vm1735_vm1, %v176_v59, %v4403_v0 }
 0x164   : > { %v986_v40 = vpop.permute.xlu1 %985  ;;  %v4829_v55 = vpop.permute.xlu0 %819  ;;  %v1782_v61 = vsel %vm1778_vm2, %v1739_v33, %v4597_v43  ;;  %v316_v43 = vld [vmem:[%s4223_s27 + $0x8b] sm:$0xff] }
 0x165   : > { %v1825_v35 = vsel %vm1821_vm3, %v1782_v61, %v4778_v15  ;;  %v317_v61 = vld [vmem:[%s4223_s27 + $0x93] sm:$0xff] }
 0x166   : > { %1465 = vrot.lane.b32.xlu1 %v399_v52, %s4143_s24  ;;  %1299 = vrot.lane.b32.xlu0 %v358_v54, %s4142_s15  ;;  %v1868_v0 = vsel %vm1864_vm4, %v1825_v35, %v984_v57  ;;  %v442_v57 = vld [vmem:[%s4223_s27 + $0x8e] sm:$0xff] }
 0x167   : > { %v1911_v10 = vsel %vm1907_vm5, %v1868_v0, %v1152_v51  ;;  %v443_v0 = vld [vmem:[%s4223_s27 + $0x96] sm:$0xff] }
 0x168   : > { %v1614_v36 = vpop.permute.xlu1 %1613  ;;  %v1448_v23 = vpop.permute.xlu0 %1447 }
 0x169   : > { %v2039_v53 = vsel %vm2036_vm8, %v1996_v26, %v1614_v36  ;;  %v360_v26 = vld [vmem:[%s4223_s27 + $0x9c] sm:$0xff] }
 0x16a   : > { %1005 = vrot.lane.b32.xlu1 %v315_v56, %s4140_s3  ;;  %839 = vrot.lane.b32.xlu0 %v4384_v58, %s4139_s30  ;;  %v1954_v58 = vsel %vm1950_vm6, %v1911_v10, %v1280_v50  ;;  %v177_v50 = vld [vmem:[%s4223_s27 + $0x20] sm:$0xff] }
 0x16b   : > { %3813 = vmatprep.mubr.msk.f32.mxu0 %vm2084_vm9, %v2039_v53  ;;  %v1997_v42 = vsel %vm1993_vm7, %v1954_v58, %v1448_v23  ;;  %v402_v10 = vld [vmem:[%s4223_s27 + $0x9d] sm:$0xff] }
 0x16c   : > { %v1154_v28 = vpop.permute.xlu1 %1153  ;;  %v988_v11 = vpop.permute.xlu0 %987 }
 0x16e   : > { %1633 = vrot.lane.b32.xlu1 %v441_v41, %s4144_s28  ;;  %1467 = vrot.lane.b32.xlu0 %v400_v37, %s4143_s24 }
 0x170   : > { %v1156_v52 = vpop.permute.xlu1 %1155  ;;  %v1616_v15 = vpop.permute.xlu0 %1615 }
 0x171   : > { %v2040_v30 = vsel %vm2036_vm8, %v1997_v42, %v1616_v15 }
 0x172   : > { %1173 = vrot.lane.b32.xlu1 %v357_v32, %s4141_s6  ;;  %1007 = vrot.lane.b32.xlu0 %v316_v43, %s4140_s3  ;;  %v1740_v32 = vsel %vm1735_vm1, %v177_v50, %v4419_v5 }
 0x173   : > { %3814 = vmatmul.mubr.msk.f32.gmra.mrb[2].mxu0 %vm2084_vm9, %v2040_v30  ;;  %v1783_v56 = vsel %vm1778_vm2, %v1740_v32, %v4608_v18 }
 0x174   : > { %v4864_v51 = vpop.permute.xlu1 %821  ;;  %v1282_v1 = vpop.permute.xlu0 %1281  ;;  %v1826_v36 = vsel %vm1821_vm3, %v1783_v56, %v4812_v48 }
 0x175   : > { %v1869_v33 = vsel %vm1864_vm4, %v1826_v36, %v986_v40  ;;  %v362_v36 = vld [vmem:[%s4223_s27 + $0xac] sm:$0xff] }
 0x176   : > { %1175 = vrot.lane.b32.xlu1 %v358_v54, %s4141_s6  ;;  %1635 = vrot.lane.b32.xlu0 %v442_v57, %s4144_s28  ;;  %v401_v54 = vld [vmem:[%s4223_s27 + $0x95] sm:$0xff]  ;;  %v1912_v5 = vsel %vm1907_vm5, %v1869_v33, %v1154_v28 }
 0x177   : > { %v1955_v18 = vsel %vm1950_vm6, %v1912_v5, %v1282_v1 }
 0x178   : > { %v1450_v59 = vpop.permute.xlu1 %1449  ;;  %v1284_v46 = vpop.permute.xlu0 %1283 }
 0x179   : > { %v1998_v41 = vsel %vm1993_vm7, %v1955_v18, %v1450_v59  ;;  %v179_v59 = vld [vmem:[%s4223_s27 + $0x30] sm:$0xff] }
 0x17a   : > { %841 = vrot.lane.b32.xlu1 %v4401_v63, %s4139_s30  ;;  %1301 = vrot.lane.b32.xlu0 %v359_v60, %s4142_s15  ;;  %v178_v63 = vld [vmem:[%s4223_s27 + $0x28] sm:$0xff] }
 0x17b   : > { %v1741_v40 = vsel %vm1735_vm1, %v178_v63, %v4417_v4 }
 0x17c   : > { %v990_v23 = vpop.permute.xlu1 %989  ;;  %v4881_v53 = vpop.permute.xlu0 %823  ;;  %v1784_v28 = vsel %vm1778_vm2, %v1741_v40, %v4606_v34  ;;  %v318_v34 = vld [vmem:[%s4223_s27 + $0x9b] sm:$0xff]  ;;  %v445_v40 = vld [vmem:[%s4223_s27 + $0xa6] sm:$0xff] }
 0x17d   : > { %v1827_v58 = vsel %vm1821_vm3, %v1784_v28, %v4829_v55  ;;  %v404_v28 = vld [vmem:[%s4223_s27 + $0xad] sm:$0xff] }
 0x17e   : > { %1469 = vrot.lane.b32.xlu1 %v401_v54, %s4143_s24  ;;  %1303 = vrot.lane.b32.xlu0 %v360_v26, %s4142_s15  ;;  %v1870_v4 = vsel %vm1864_vm4, %v1827_v58, %v988_v11  ;;  %v444_v11 = vld [vmem:[%s4223_s27 + $0x9e] sm:$0xff] }
 0x17f   : > { %v1913_v15 = vsel %vm1907_vm5, %v1870_v4, %v1156_v52 }
 0x180   : > { %v1618_v48 = vpop.permute.xlu1 %1617  ;;  %v1452_v37 = vpop.permute.xlu0 %1451 }
 0x181   : > { %v2041_v35 = vsel %vm2036_vm8, %v1998_v41, %v1618_v48 }
 0x182   : > { %1009 = vrot.lane.b32.xlu1 %v317_v61, %s4140_s3  ;;  %843 = vrot.lane.b32.xlu0 %v4398_v62, %s4139_s30  ;;  %v1956_v62 = vsel %vm1950_vm6, %v1913_v15, %v1284_v46  ;;  %v361_v46 = vld [vmem:[%s4223_s27 + $0xa4] sm:$0xff] }
 0x183   : > { %3816 = vmatprep.mubr.msk.f32.mxu0 %vm2084_vm9, %v2041_v35  ;;  %v1999_v30 = vsel %vm1993_vm7, %v1956_v62, %v1452_v37  ;;  %v319_v61 = vld [vmem:[%s4223_s27 + $0xa3] sm:$0xff] }
 0x184   : > { %v1158_v43 = vpop.permute.xlu1 %1157  ;;  %v992_v42 = vpop.permute.xlu0 %991 }
 0x186   : > { %1637 = vrot.lane.b32.xlu1 %v443_v0, %s4144_s28  ;;  %1471 = vrot.lane.b32.xlu0 %v402_v10, %s4143_s24 }
 0x188   : > { %v1160_v57 = vpop.permute.xlu1 %1159  ;;  %v1620_v55 = vpop.permute.xlu0 %1619 }
 0x189   : > { %v2042_v1 = vsel %vm2036_vm8, %v1999_v30, %v1620_v55  ;;  %v363_v55 = vld [vmem:[%s4223_s27 + $0xb4] sm:$0xff] }
 0x18a   : > { %1177 = vrot.lane.b32.xlu1 %v359_v60, %s4141_s6  ;;  %1011 = vrot.lane.b32.xlu0 %v318_v34, %s4140_s3  ;;  %v1742_v60 = vsel %vm1735_vm1, %v179_v59, %v4433_v9 }
 0x18b   : > { %3817 = vmatmul.mubr.msk.f32.gmra.mrb[4].mxu0 %vm2084_vm9, %v2042_v1  ;;  %v1785_v54 = vsel %vm1778_vm2, %v1742_v60, %v4615_v45 }
 0x18c   : > { %v4916_v52 = vpop.permute.xlu1 %825  ;;  %v1286_v50 = vpop.permute.xlu0 %1285  ;;  %v1828_v33 = vsel %vm1821_vm3, %v1785_v54, %v4864_v51 }
 0x18d   : > { %v1871_v18 = vsel %vm1864_vm4, %v1828_v33, %v990_v23 }
 0x18e   : > { %1179 = vrot.lane.b32.xlu1 %v360_v26, %s4141_s6  ;;  %1639 = vrot.lane.b32.xlu0 %v444_v11, %s4144_s28  ;;  %v403_v26 = vld [vmem:[%s4223_s27 + $0xa5] sm:$0xff]  ;;  %v1914_v9 = vsel %vm1907_vm5, %v1871_v18, %v1158_v43 }
 0x18f   : > { %v1957_v45 = vsel %vm1950_vm6, %v1914_v9, %v1286_v50 }
 0x190   : > { %v1454_v32 = vpop.permute.xlu1 %1453  ;;  %v1288_v56 = vpop.permute.xlu0 %1287 }
 0x191   : > { %v2000_v41 = vsel %vm1993_vm7, %v1957_v45, %v1454_v32  ;;  %v364_v32 = vld [vmem:[%s4223_s27 + $0xbc] sm:$0xff] }
 0x192   : > { %845 = vrot.lane.b32.xlu1 %v4415_v3, %s4139_s30  ;;  %1305 = vrot.lane.b32.xlu0 %v361_v46, %s4142_s15  ;;  %v180_v3 = vld [vmem:[%s4223_s27 + $0x38] sm:$0xff] }
 0x193   : > { %v1743_v23 = vsel %vm1735_vm1, %v180_v3, %v4431_v8  ;;  %v447_v45 = vld [vmem:[%s4223_s27 + $0xb6] sm:$0xff] }
 0x194   : > { %v994_v5 = vpop.permute.xlu1 %993  ;;  %v4933_v63 = vpop.permute.xlu0 %827  ;;  %v1786_v35 = vsel %vm1778_vm2, %v1743_v23, %v4613_v39  ;;  %v320_v39 = vld [vmem:[%s4223_s27 + $0xab] sm:$0xff] }
 0x195   : > { %v1829_v0 = vsel %vm1821_vm3, %v1786_v35, %v4881_v53 }
 0x196   : > { %1473 = vrot.lane.b32.xlu1 %v403_v26, %s4143_s24  ;;  %1307 = vrot.lane.b32.xlu0 %v362_v36, %s4142_s15  ;;  %v1872_v8 = vsel %vm1864_vm4, %v1829_v0, %v992_v42  ;;  %v446_v42 = vld [vmem:[%s4223_s27 + $0xae] sm:$0xff] }
 0x197   : > { %v1915_v43 = vsel %vm1907_vm5, %v1872_v8, %v1160_v57  ;;  %v181_v57 = vld [vmem:[%s4223_s27 + $0x40] sm:$0xff] }
 0x198   : > { %v1622_v51 = vpop.permute.xlu1 %1621  ;;  %v1456_v48 = vpop.permute.xlu0 %1455  ;;  %v1744_v50 = vsel %vm1735_vm1, %v181_v57, %v4443_v13  ;;  %v365_v8 = vld [vmem:[%s4223_s27 + $0xc4] sm:$0xff] }
 0x199   : > { %v2043_v37 = vsel %vm2036_vm8, %v2000_v41, %v1622_v51  ;;  %v1787_v59 = vsel %vm1778_vm2, %v1744_v50, %v4624_v27 }
 0x19a   : > { %1013 = vrot.lane.b32.xlu1 %v319_v61, %s4140_s3  ;;  %847 = vrot.lane.b32.xlu0 %v4412_v2, %s4139_s30  ;;  %v1958_v2 = vsel %vm1950_vm6, %v1915_v43, %v1288_v56  ;;  %v1830_v56 = vsel %vm1821_vm3, %v1787_v59, %v4916_v52  ;;  %v406_v61 = vld [vmem:[%s4223_s27 + $0xbd] sm:$0xff] }
 0x19b   : > { %3819 = vmatprep.mubr.msk.f32.mxu0 %vm2084_vm9, %v2043_v37  ;;  %v2001_v4 = vsel %vm1993_vm7, %v1958_v2, %v1456_v48  ;;  %v1873_v26 = vsel %vm1864_vm4, %v1830_v56, %v994_v5  ;;  %v4040_v56 = vld [vmem:[%s4223_s27 + $0xca] sm:$0xff] }
 0x19c   : > { %v1162_v10 = vpop.permute.xlu1 %1161  ;;  %v996_v58 = vpop.permute.xlu0 %995 }
 0x19d   : > { %v1916_v13 = vsel %vm1907_vm5, %v1873_v26, %v1162_v10  ;;  %v449_v26 = vld [vmem:[%s4223_s27 + $0xc6] sm:$0xff] }
 0x19e   : > { %1641 = vrot.lane.b32.xlu1 %v445_v40, %s4144_s28  ;;  %1475 = vrot.lane.b32.xlu0 %v404_v28, %s4143_s24  ;;  %v448_v28 = vld [vmem:[%s4223_s27 + $0xbe] sm:$0xff] }
 0x1a0   : > { %v1164_v15 = vpop.permute.xlu1 %1163  ;;  %v1624_v53 = vpop.permute.xlu0 %1623 }
 0x1a1   : > { %v2044_v62 = vsel %vm2036_vm8, %v2001_v4, %v1624_v53  ;;  %v4039_v4 = vld [vmem:[%s4223_s27 + $0xc2] sm:$0xff] }
 0x1a2   : > { %1181 = vrot.lane.b32.xlu1 %v361_v46, %s4141_s6  ;;  %1015 = vrot.lane.b32.xlu0 %v320_v39, %s4140_s3  ;;  %v405_v46 = vld [vmem:[%s4223_s27 + $0xb5] sm:$0xff]  ;;  %v407_v53 = vld [vmem:[%s4223_s27 + $0xc5] sm:$0xff] }
 0x1a3   : > { %3820 = vmatmul.mubr.msk.f32.gmra.mrb[6].mxu0 %vm2084_vm9, %v2044_v62  ;;  %v366_v62 = vld [vmem:[%s4223_s27 + $0xcc] sm:$0xff] }
 0x1a4   : > { %v4968_v34 = vpop.permute.xlu1 %829  ;;  %v1290_v30 = vpop.permute.xlu0 %1289 }
 0x1a5   : > { %v1959_v27 = vsel %vm1950_vm6, %v1916_v13, %v1290_v30  ;;  %v408_v13 = vld [vmem:[%s4223_s27 + $0xcd] sm:$0xff] }
 0x1a6   : > { %1183 = vrot.lane.b32.xlu1 %v362_v36, %s4141_s6  ;;  %1643 = vrot.lane.b32.xlu0 %v446_v42, %s4144_s28  ;;  %v321_v36 = vld [vmem:[%s4223_s27 + $0xb3] sm:$0xff] }
 0x1a8   : > { %v1458_v1 = vpop.permute.xlu1 %1457  ;;  %v1292_v11 = vpop.permute.xlu0 %1291 }
 0x1a9   : > { %v2002_v33 = vsel %vm1993_vm7, %v1959_v27, %v1458_v1 }
 0x1aa   : > { %849 = vrot.lane.b32.xlu1 %v4429_v7, %s4139_s30  ;;  %1309 = vrot.lane.b32.xlu0 %v363_v55, %s4142_s15  ;;  %v182_v7 = vld [vmem:[%s4223_s27 + $0x48] sm:$0xff] }
 0x1ab   : > { %v1745_v5 = vsel %vm1735_vm1, %v182_v7, %v4441_v12 }
 0x1ac   : > { %v998_v60 = vpop.permute.xlu1 %997  ;;  %v4985_v54 = vpop.permute.xlu0 %831  ;;  %v1788_v3 = vsel %vm1778_vm2, %v1745_v5, %v4622_v38  ;;  %v322_v38 = vld [vmem:[%s4223_s27 + $0xbb] sm:$0xff] }
 0x1ad   : > { %v1831_v41 = vsel %vm1821_vm3, %v1788_v3, %v4933_v63  ;;  %v450_v3 = vld [vmem:[%s4223_s27 + $0xce] sm:$0xff] }
 0x1ae   : > { %1477 = vrot.lane.b32.xlu1 %v405_v46, %s4143_s24  ;;  %1311 = vrot.lane.b32.xlu0 %v364_v32, %s4142_s15  ;;  %v1874_v12 = vsel %vm1864_vm4, %v1831_v41, %v996_v58  ;;  %v183_v58 = vld [vmem:[%s4223_s27 + $0x50] sm:$0xff]  ;;  %v185_v41 = vld [vmem:[%s4223_s27 + $0x60] sm:$0xff] }
 0x1af   : > { %v1917_v37 = vsel %vm1907_vm5, %v1874_v12, %v1164_v15  ;;  %v1746_v39 = vsel %vm1735_vm1, %v183_v58, %v4451_v17 }
 0x1b0   : > { %v1626_v52 = vpop.permute.xlu1 %1625  ;;  %v1460_v18 = vpop.permute.xlu0 %1459  ;;  %v1789_v15 = vsel %vm1778_vm2, %v1746_v39, %v4631_v47  ;;  %v184_v47 = vld [vmem:[%s4223_s27 + $0x58] sm:$0xff] }
 0x1b1   : > { %v2045_v9 = vsel %vm2036_vm8, %v2002_v33, %v1626_v52  ;;  %v1832_v42 = vsel %vm1821_vm3, %v1789_v15, %v4968_v34  ;;  %v324_v52 = vld [vmem:[%s4223_s27 + $0xcb] sm:$0xff]  ;;  %v4042_v15 = vld [vmem:[%s4223_s27 + $0xda] sm:$0xff] }
 0x1b2   : > { %1017 = vrot.lane.b32.xlu1 %v321_v36, %s4140_s3  ;;  %851 = vrot.lane.b32.xlu0 %v4426_v6, %s4139_s30  ;;  %v1960_v6 = vsel %vm1950_vm6, %v1917_v37, %v1292_v11  ;;  %v1875_v17 = vsel %vm1864_vm4, %v1832_v42, %v998_v60  ;;  %v323_v11 = vld [vmem:[%s4223_s27 + $0xc3] sm:$0xff]  ;;  %v1748_v37 = vsel %vm1735_vm1, %v185_v41, %v4459_v21 }
 0x1b3   : > { %3822 = vmatprep.mubr.msk.f32.mxu0 %vm2084_vm9, %v2045_v9  ;;  %v2003_v23 = vsel %vm1993_vm7, %v1960_v6, %v1460_v18  ;;  %v4041_v6 = vld [vmem:[%s4223_s27 + $0xd2] sm:$0xff]  ;;  %v410_v42 = vld [vmem:[%s4223_s27 + $0xdd] sm:$0xff] }
 0x1b4   : > { %v1166_v51 = vpop.permute.xlu1 %1165  ;;  %v1000_v48 = vpop.permute.xlu0 %999 }
 0x1b6   : > { %1645 = vrot.lane.b32.xlu1 %v447_v45, %s4144_s28  ;;  %1479 = vrot.lane.b32.xlu0 %v406_v61, %s4143_s24 }
 0x1b8   : > { %v1168_v35 = vpop.permute.xlu1 %1167  ;;  %v1628_v63 = vpop.permute.xlu0 %1627 }
 0x1b9   : > { %v2046_v40 = vsel %vm2036_vm8, %v2003_v23, %v1628_v63  ;;  %v409_v23 = vld [vmem:[%s4223_s27 + $0xd5] sm:$0xff] }
 0x1ba   : > { %1185 = vrot.lane.b32.xlu1 %v363_v55, %s4141_s6  ;;  %1019 = vrot.lane.b32.xlu0 %v322_v38, %s4140_s3  ;;  %v1918_v55 = vsel %vm1907_vm5, %v1875_v17, %v1166_v51  ;;  %v367_v51 = vld [vmem:[%s4223_s27 + $0xd4] sm:$0xff]  ;;  %v1791_v38 = vsel %vm1778_vm2, %v1748_v37, %v4638_v22  ;;  %v186_v22 = vld [vmem:[%s4223_s27 + $0x68] sm:$0xff] }
 0x1bb   : > { %3823 = vmatmul.mubr.msk.f32.gmra.mrb[8].mxu0 %vm2084_vm9, %v2046_v40  ;;  %v453_v37 = vld [vmem:[%s4223_s27 + $0xe6] sm:$0xff] }
 0x1bc   : > { %v5020_v0 = vpop.permute.xlu1 %833  ;;  %v1294_v10 = vpop.permute.xlu0 %1293 }
 0x1bd   : > { %v1961_v1 = vsel %vm1950_vm6, %v1918_v55, %v1294_v10  ;;  %v1834_v63 = vsel %vm1821_vm3, %v1791_v38, %v5020_v0 }
 0x1be   : > { %1187 = vrot.lane.b32.xlu1 %v364_v32, %s4141_s6  ;;  %1647 = vrot.lane.b32.xlu0 %v448_v28, %s4144_s28  ;;  %v1747_v32 = vsel %vm1735_vm1, %v184_v47, %v4449_v16 }
 0x1bf   : > { %v1790_v60 = vsel %vm1778_vm2, %v1747_v32, %v4629_v44 }
 0x1c0   : > { %v1462_v43 = vpop.permute.xlu1 %1461  ;;  %v1296_v2 = vpop.permute.xlu0 %1295  ;;  %v1833_v7 = vsel %vm1821_vm3, %v1790_v60, %v4985_v54  ;;  %v369_v60 = vld [vmem:[%s4223_s27 + $0xe4] sm:$0xff] }
 0x1c1   : > { %v2004_v34 = vsel %vm1993_vm7, %v1961_v1, %v1462_v43  ;;  %v1876_v16 = vsel %vm1864_vm4, %v1833_v7, %v1000_v48  ;;  %v326_v1 = vld [vmem:[%s4223_s27 + $0xdb] sm:$0xff] }
 0x1c2   : > { %853 = vrot.lane.b32.xlu1 %v4039_v4, %s4139_s30  ;;  %1313 = vrot.lane.b32.xlu0 %v365_v8, %s4142_s15  ;;  %v1919_v33 = vsel %vm1907_vm5, %v1876_v16, %v1168_v35  ;;  %v368_v35 = vld [vmem:[%s4223_s27 + $0xdc] sm:$0xff]  ;;  %v1749_v4 = vsel %vm1735_vm1, %v186_v22, %v4457_v20  ;;  %v411_v16 = vld [vmem:[%s4223_s27 + $0xe5] sm:$0xff] }
 0x1c3   : > { %v1962_v44 = vsel %vm1950_vm6, %v1919_v33, %v1296_v2  ;;  %v370_v33 = vld [vmem:[%s4223_s27 + $0xec] sm:$0xff] }
 0x1c4   : > { %v1002_v30 = vpop.permute.xlu1 %1001  ;;  %v5037_v57 = vpop.permute.xlu0 %835 }
 0x1c5   : > { %v1877_v21 = vsel %vm1864_vm4, %v1834_v63, %v1002_v30 }
 0x1c6   : > { %1481 = vrot.lane.b32.xlu1 %v407_v53, %s4143_s24  ;;  %1315 = vrot.lane.b32.xlu0 %v366_v62, %s4142_s15  ;;  %v1792_v53 = vsel %vm1778_vm2, %v1749_v4, %v4636_v19 }
 0x1c7   : > { %v1835_v30 = vsel %vm1821_vm3, %v1792_v53, %v5037_v57  ;;  %v4045_v53 = vld [vmem:[%s4223_s27 + $0xf2] sm:$0xff] }
 0x1c8   : > { %v1630_v50 = vpop.permute.xlu1 %1629  ;;  %v1464_v59 = vpop.permute.xlu0 %1463 }
 0x1c9   : > { %v2047_v46 = vsel %vm2036_vm8, %v2004_v34, %v1630_v50  ;;  %v2005_v18 = vsel %vm1993_vm7, %v1962_v44, %v1464_v59  ;;  %v452_v59 = vld [vmem:[%s4223_s27 + $0xde] sm:$0xff] }
 0x1ca   : > { %1021 = vrot.lane.b32.xlu1 %v323_v11, %s4140_s3  ;;  %855 = vrot.lane.b32.xlu0 %v4040_v56, %s4139_s30  ;;  %v187_v56 = vld [vmem:[%s4223_s27 + $0x70] sm:$0xff] }
 0x1cb   : > { %3825 = vmatprep.mubr.msk.f32.mxu0 %vm2084_vm9, %v2047_v46  ;;  %v1750_v7 = vsel %vm1735_vm1, %v187_v56, %v4467_v25  ;;  %v7436_v56 = vld [vmem:[#allocation30_spill] sm:$0xff] }
 0x1cc   : > { %v1170_v27 = vpop.permute.xlu1 %1169  ;;  %v1004_v36 = vpop.permute.xlu0 %1003 }
 0x1cd   : > { %v1920_v10 = vsel %vm1907_vm5, %v1877_v21, %v1170_v27  ;;  %v1878_v20 = vsel %vm1864_vm4, %v1835_v30, %v1004_v36  ;;  %v4043_v27 = vld [vmem:[%s4223_s27 + $0xe2] sm:$0xff]  ;;  %v1793_v36 = vsel %vm1778_vm2, %v1750_v7, %v4645_v14  ;;  %v188_v14 = vld [vmem:[%s4223_s27 + $0x78] sm:$0xff] }
 0x1ce   : > { %1649 = vrot.lane.b32.xlu1 %v449_v26, %s4144_s28  ;;  %1483 = vrot.lane.b32.xlu0 %v408_v13, %s4143_s24  ;;  %v372_v30 = vld [vmem:[%s4223_s27 + $0xfc] sm:$0xff] }
 0x1d0   : > { %v1172_v9 = vpop.permute.xlu1 %1171  ;;  %v1632_v54 = vpop.permute.xlu0 %1631 }
 0x1d1   : > { %v2048_v5 = vsel %vm2036_vm8, %v2005_v18, %v1632_v54  ;;  %v1921_v47 = vsel %vm1907_vm5, %v1878_v20, %v1172_v9 }
 0x1d2   : > { %1189 = vrot.lane.b32.xlu1 %v365_v8, %s4141_s6  ;;  %1023 = vrot.lane.b32.xlu0 %v324_v52, %s4140_s3  ;;  %v325_v8 = vld [vmem:[%s4223_s27 + $0xd3] sm:$0xff] }
 0x1d3   : > { %3826 = vmatmul.mubr.msk.f32.gmra.mrb[10].mxu0 %vm2084_vm9, %v2048_v5  ;;  %v327_v5 = vld [vmem:[%s4223_s27 + $0xe3] sm:$0xff] }
 0x1d4   : > { %v5072_v45 = vpop.permute.xlu1 %837  ;;  %v1298_v61 = vpop.permute.xlu0 %1297 }
 0x1d5   : > { %v1963_v58 = vsel %vm1950_vm6, %v1920_v10, %v1298_v61  ;;  %v1836_v44 = vsel %vm1821_vm3, %v1793_v36, %v5072_v45 }
 0x1d6   : > { %1191 = vrot.lane.b32.xlu1 %v366_v62, %s4141_s6  ;;  %1651 = vrot.lane.b32.xlu0 %v450_v3, %s4144_s28  ;;  %v451_v62 = vld [vmem:[%s4223_s27 + $0xd6] sm:$0xff] }
 0x1d8   : > { %v1466_v48 = vpop.permute.xlu1 %1465  ;;  %v1300_v12 = vpop.permute.xlu0 %1299 }
 0x1d9   : > { %v2006_v0 = vsel %vm1993_vm7, %v1963_v58, %v1466_v48  ;;  %v1964_v19 = vsel %vm1950_vm6, %v1921_v47, %v1300_v12  ;;  %v4044_v48 = vld [vmem:[%s4223_s27 + $0xea] sm:$0xff] }
 0x1da   : > { %857 = vrot.lane.b32.xlu1 %v4041_v6, %s4139_s30  ;;  %1317 = vrot.lane.b32.xlu0 %v367_v51, %s4142_s15  ;;  %v412_v6 = vld [vmem:[%s4223_s27 + $0xed] sm:$0xff] }
 0x1db   : > { %v454_v58 = vld [vmem:[%s4223_s27 + $0xee] sm:$0xff] }
 0x1dc   : > { %v1006_v40 = vpop.permute.xlu1 %1005  ;;  %v5089_v28 = vpop.permute.xlu0 %839 }
 0x1dd   : > { %v1879_v25 = vsel %vm1864_vm4, %v1836_v44, %v1006_v40  ;;  %v328_v40 = vld [vmem:[%s4223_s27 + $0xeb] sm:$0xff] }
 0x1de   : > { %1485 = vrot.lane.b32.xlu1 %v409_v23, %s4143_s24  ;;  %1319 = vrot.lane.b32.xlu0 %v368_v35, %s4142_s15 }
 0x1e0   : > { %v1634_v43 = vpop.permute.xlu1 %1633  ;;  %v1468_v2 = vpop.permute.xlu0 %1467 }
 0x1e1   : > { %v2049_v39 = vsel %vm2036_vm8, %v2006_v0, %v1634_v43  ;;  %v2007_v11 = vsel %vm1993_vm7, %v1964_v19, %v1468_v2  ;;  %v189_v43 = vld [vmem:[%s4223_s27 + $0x80] sm:$0xff]  ;;  %v371_v2 = vld [vmem:[%s4223_s27 + $0xf4] sm:$0xff] }
 0x1e2   : > { %1025 = vrot.lane.b32.xlu1 %v325_v8, %s4140_s3  ;;  %859 = vrot.lane.b32.xlu0 %v4042_v15, %s4139_s30  ;;  %v1752_v15 = vsel %vm1735_vm1, %v189_v43, %v4475_v29 }
 0x1e3   : > { %3828 = vmatprep.mubr.msk.f32.mxu0 %vm2084_vm9, %v2049_v39 }
 0x1e4   : > { %v1174_v17 = vpop.permute.xlu1 %1173  ;;  %v1008_v55 = vpop.permute.xlu0 %1007 }
 0x1e5   : > { %v1922_v9 = vsel %vm1907_vm5, %v1879_v25, %v1174_v17 }
 0x1e6   : > { %1653 = vrot.lane.b32.xlu1 %v451_v62, %s4144_s28  ;;  %1487 = vrot.lane.b32.xlu0 %v410_v42, %s4143_s24  ;;  %v1795_v62 = vsel %vm1778_vm2, %v1752_v15, %v4654_v31  ;;  %v413_v42 = vld [vmem:[%s4223_s27 + $0xf5] sm:$0xff]  ;;  %v190_v31 = vld [vmem:[%s4223_s27 + $0x88] sm:$0xff] }
 0x1e7   : > { %v7440_v15 = vld [vmem:[#allocation31_spill] sm:$0xff] }
 0x1e8   : > { %v1176_v34 = vpop.permute.xlu1 %1175  ;;  %v1636_v57 = vpop.permute.xlu0 %1635 }
 0x1e9   : > { %v2050_v50 = vsel %vm2036_vm8, %v2007_v11, %v1636_v57 }
 0x1ea   : > { %1193 = vrot.lane.b32.xlu1 %v367_v51, %s4141_s6  ;;  %1027 = vrot.lane.b32.xlu0 %v326_v1, %s4140_s3  ;;  %v1751_v51 = vsel %vm1735_vm1, %v188_v14, %v4465_v24  ;;  %v329_v1 = vld [vmem:[%s4223_s27 + $0xf3] sm:$0xff] }
 0x1eb   : > { %3829 = vmatmul.mubr.msk.f32.gmra.mrb[12].mxu0 %vm2084_vm9, %v2050_v50  ;;  %v1794_v12 = vsel %vm1778_vm2, %v1751_v51, %v4643_v49 }
 0x1ec   : > { %v5124_v46 = vpop.permute.xlu1 %841  ;;  %v1302_v32 = vpop.permute.xlu0 %1301  ;;  %v1837_v38 = vsel %vm1821_vm3, %v1794_v12, %v5089_v28 }
 0x1ed   : > { %v1965_v54 = vsel %vm1950_vm6, %v1922_v9, %v1302_v32  ;;  %v1880_v24 = vsel %vm1864_vm4, %v1837_v38, %v1008_v55  ;;  %v1838_v17 = vsel %vm1821_vm3, %v1795_v62, %v5124_v46  ;;  %v4046_v32 = vld [vmem:[%s4223_s27 + $0xfa] sm:$0xff]  ;;  %v457_v62 = vld [vmem:[%s4223_s27 + $0x106] sm:$0xff] }
 0x1ee   : > { %1195 = vrot.lane.b32.xlu1 %v368_v35, %s4141_s6  ;;  %1655 = vrot.lane.b32.xlu0 %v452_v59, %s4144_s28  ;;  %v1923_v63 = vsel %vm1907_vm5, %v1880_v24, %v1176_v34  ;;  %v7435_v59 = vld [vmem:[#allocation5_spill] sm:$0xff] }
 0x1ef   : > { %v1753_v46 = vsel %vm1735_vm1, %v190_v31, %v7435_v59  ;;  %v458_v59 = vld [vmem:[%s4223_s27 + $0x10e] sm:$0xff] }
 0x1f0   : > { %v1470_v26 = vpop.permute.xlu1 %1469  ;;  %v1304_v13 = vpop.permute.xlu0 %1303 }
 0x1f1   : > { %v2008_v3 = vsel %vm1993_vm7, %v1965_v54, %v1470_v26  ;;  %v1966_v49 = vsel %vm1950_vm6, %v1923_v63, %v1304_v13  ;;  %v455_v26 = vld [vmem:[%s4223_s27 + $0xf6] sm:$0xff]  ;;  %v456_v54 = vld [vmem:[%s4223_s27 + $0xfe] sm:$0xff] }
 0x1f2   : > { %861 = vrot.lane.b32.xlu1 %v4043_v27, %s4139_s30  ;;  %1321 = vrot.lane.b32.xlu0 %v369_v60, %s4142_s15  ;;  %v414_v13 = vld [vmem:[%s4223_s27 + $0xfd] sm:$0xff] }
 0x1f4   : > { %v1010_v52 = vpop.permute.xlu1 %1009  ;;  %v5141_v18 = vpop.permute.xlu0 %843 }
 0x1f5   : > { %v1881_v29 = vsel %vm1864_vm4, %v1838_v17, %v1010_v52  ;;  %v330_v52 = vld [vmem:[%s4223_s27 + $0xfb] sm:$0xff] }
 0x1f6   : > { %1489 = vrot.lane.b32.xlu1 %v411_v16, %s4143_s24  ;;  %1323 = vrot.lane.b32.xlu0 %v370_v33, %s4142_s15 }
 0x1f8   : > { %v1638_v45 = vpop.permute.xlu1 %1637  ;;  %v1472_v61 = vpop.permute.xlu0 %1471 }
 0x1f9   : > { %v2051_v41 = vsel %vm2036_vm8, %v2008_v3, %v1638_v45  ;;  %v2009_v21 = vsel %vm1993_vm7, %v1966_v49, %v1472_v61  ;;  %v191_v45 = vld [vmem:[%s4223_s27 + $0x90] sm:$0xff]  ;;  %v373_v61 = vld [vmem:[%s4223_s27 + $0x104] sm:$0xff] }
 0x1fa   : > { %1029 = vrot.lane.b32.xlu1 %v327_v5, %s4140_s3  ;;  %863 = vrot.lane.b32.xlu0 %v4044_v48, %s4139_s30  ;;  %v7437_v48 = vld [vmem:[#allocation7_spill] sm:$0xff] }
 0x1fb   : > { %3831 = vmatprep.mubr.msk.f32.mxu0 %vm2084_vm9, %v2051_v41  ;;  %v1754_v12 = vsel %vm1735_vm1, %v191_v45, %v7437_v48 }
 0x1fc   : > { %v1178_v23 = vpop.permute.xlu1 %1177  ;;  %v1012_v35 = vpop.permute.xlu0 %1011 }
 0x1fd   : > { %v1924_v47 = vsel %vm1907_vm5, %v1881_v29, %v1178_v23  ;;  %v415_v23 = vld [vmem:[%s4223_s27 + $0x105] sm:$0xff] }
 0x1fe   : > { %1657 = vrot.lane.b32.xlu1 %v453_v37, %s4144_s28  ;;  %1491 = vrot.lane.b32.xlu0 %v412_v6, %s4143_s24  ;;  %v4047_v37 = vld [vmem:[%s4223_s27 + $0x102] sm:$0xff]  ;;  %v7438_v6 = vld [vmem:[#allocation32_spill] sm:$0xff] }
 0x1ff   : > { %v1797_v38 = vsel %vm1778_vm2, %v1754_v12, %v7438_v6  ;;  %v7445_v12 = vld [vmem:[#allocation8_spill] sm:$0xff] }
 0x200   : > { %v1180_v10 = vpop.permute.xlu1 %1179  ;;  %v1640_v28 = vpop.permute.xlu0 %1639  ;;  %v4050_v6 = vld [vmem:[%s4223_s27 + $0x11a] sm:$0xff] }
 0x201   : > { %v2052_v22 = vsel %vm2036_vm8, %v2009_v21, %v1640_v28 }
 0x202   : > { %1197 = vrot.lane.b32.xlu1 %v369_v60, %s4141_s6  ;;  %1031 = vrot.lane.b32.xlu0 %v328_v40, %s4140_s3  ;;  %v1796_v60 = vsel %vm1778_vm2, %v1753_v46, %v7436_v56  ;;  %v193_v56 = vld [vmem:[%s4223_s27 + $0xa0] sm:$0xff] }
 0x203   : > { %3832 = vmatmul.mubr.msk.f32.gmra.mrb[14].mxu0 %vm2084_vm9, %v2052_v22  ;;  %v1839_v7 = vsel %vm1821_vm3, %v1796_v60, %v5141_v18  ;;  %v331_v22 = vld [vmem:[%s4223_s27 + $0x103] sm:$0xff]  ;;  %v375_v60 = vld [vmem:[%s4223_s27 + $0x114] sm:$0xff] }
 0x204   : > { %v5176_v8 = vpop.permute.xlu1 %845  ;;  %v1306_v0 = vpop.permute.xlu0 %1305  ;;  %v1882_v16 = vsel %vm1864_vm4, %v1839_v7, %v1012_v35  ;;  %v374_v35 = vld [vmem:[%s4223_s27 + $0x10c] sm:$0xff]  ;;  %v7443_v7 = vld [vmem:[#allocation9_spill] sm:$0xff] }
 0x205   : > { %v1967_v19 = vsel %vm1950_vm6, %v1924_v47, %v1306_v0  ;;  %v1840_v24 = vsel %vm1821_vm3, %v1797_v38, %v5176_v8  ;;  %v7446_v38 = vld [vmem:[#allocation33_spill] sm:$0xff] }
 0x206   : > { %1199 = vrot.lane.b32.xlu1 %v370_v33, %s4141_s6  ;;  %1659 = vrot.lane.b32.xlu0 %v454_v58, %s4144_s28  ;;  %v1925_v33 = vsel %vm1907_vm5, %v1882_v16, %v1180_v10  ;;  %v192_v10 = vld [vmem:[%s4223_s27 + $0x98] sm:$0xff]  ;;  %v7444_v16 = vld [vmem:[#allocation34_spill] sm:$0xff] }
 0x208   : > { %v1474_v39 = vpop.permute.xlu1 %1473  ;;  %v1308_v4 = vpop.permute.xlu0 %1307 }
 0x209   : > { %v2010_v11 = vsel %vm1993_vm7, %v1967_v19, %v1474_v39  ;;  %v1968_v44 = vsel %vm1950_vm6, %v1925_v33, %v1308_v4  ;;  %v4048_v4 = vld [vmem:[%s4223_s27 + $0x10a] sm:$0xff] }
 0x20a   : > { %865 = vrot.lane.b32.xlu1 %v4045_v53, %s4139_s30  ;;  %1325 = vrot.lane.b32.xlu0 %v371_v2, %s4142_s15 }
 0x20c   : > { %v1014_v55 = vpop.permute.xlu1 %1013  ;;  %v5193_v20 = vpop.permute.xlu0 %847 }
 0x20d   : > { %v1883_v40 = vsel %vm1864_vm4, %v1840_v24, %v1014_v55  ;;  %v418_v24 = vld [vmem:[%s4223_s27 + $0x11d] sm:$0xff] }
 0x20e   : > { %1493 = vrot.lane.b32.xlu1 %v413_v42, %s4143_s24  ;;  %1327 = vrot.lane.b32.xlu0 %v372_v30, %s4142_s15  ;;  %v416_v42 = vld [vmem:[%s4223_s27 + $0x10d] sm:$0xff] }
 0x210   : > { %v1642_v34 = vpop.permute.xlu1 %1641  ;;  %v1476_v57 = vpop.permute.xlu0 %1475 }
 0x211   : > { %v2053_v50 = vsel %vm2036_vm8, %v2010_v11, %v1642_v34  ;;  %v2011_v25 = vsel %vm1993_vm7, %v1968_v44, %v1476_v57  ;;  %v417_v44 = vld [vmem:[%s4223_s27 + $0x115] sm:$0xff] }
 0x212   : > { %1033 = vrot.lane.b32.xlu1 %v329_v1, %s4140_s3  ;;  %867 = vrot.lane.b32.xlu0 %v4046_v32, %s4139_s30 }
 0x213   : > { %3834 = vmatprep.mubr.msk.f32.mxu0 %vm2084_vm9, %v2053_v50 }
 0x214   : > { %v1182_v27 = vpop.permute.xlu1 %1181  ;;  %v1016_v36 = vpop.permute.xlu0 %1015 }
 0x215   : > { %v1926_v21 = vsel %vm1907_vm5, %v1883_v40, %v1182_v27  ;;  %v1756_v27 = vsel %vm1735_vm1, %v193_v56, %v7443_v7 }
 0x216   : > { %1661 = vrot.lane.b32.xlu1 %v455_v26, %s4144_s28  ;;  %1495 = vrot.lane.b32.xlu0 %v414_v13, %s4143_s24  ;;  %v1799_v33 = vsel %vm1778_vm2, %v1756_v27, %v7444_v16  ;;  %v7451_v16 = vld [vmem:[#allocation10_spill] sm:$0xff] }
 0x218   : > { %v1184_v9 = vpop.permute.xlu1 %1183  ;;  %v1644_v18 = vpop.permute.xlu0 %1643 }
 0x219   : > { %v2054_v14 = vsel %vm2036_vm8, %v2011_v25, %v1644_v18 }
 0x21a   : > { %1201 = vrot.lane.b32.xlu1 %v371_v2, %s4141_s6  ;;  %1035 = vrot.lane.b32.xlu0 %v330_v52, %s4140_s3  ;;  %v7439_v2 = vld [vmem:[#allocation6_spill] sm:$0xff]  ;;  %v376_v52 = vld [vmem:[%s4223_s27 + $0x11c] sm:$0xff] }
 0x21b   : > { %3835 = vmatmul.mubr.msk.f32.gmra.mrb[16].mxu0 %vm2084_vm9, %v2054_v14  ;;  %v1755_v39 = vsel %vm1735_vm1, %v192_v10, %v7439_v2 }
 0x21c   : > { %v5228_v5 = vpop.permute.xlu1 %849  ;;  %v1310_v3 = vpop.permute.xlu0 %1309  ;;  %v1798_v53 = vsel %vm1778_vm2, %v1755_v39, %v7440_v15 }
 0x21d   : > { %v1969_v28 = vsel %vm1950_vm6, %v1926_v21, %v1310_v3  ;;  %v1842_v25 = vsel %vm1821_vm3, %v1799_v33, %v5228_v5  ;;  %v194_v3 = vld [vmem:[%s4223_s27 + $0xa8] sm:$0xff] }
 0x21e   : > { %1203 = vrot.lane.b32.xlu1 %v372_v30, %s4141_s6  ;;  %1663 = vrot.lane.b32.xlu0 %v456_v54, %s4144_s28  ;;  %v1841_v30 = vsel %vm1821_vm3, %v1798_v53, %v5193_v20  ;;  %v332_v20 = vld [vmem:[%s4223_s27 + $0x10b] sm:$0xff] }
 0x21f   : > { %v1884_v29 = vsel %vm1864_vm4, %v1841_v30, %v1016_v36  ;;  %v4049_v36 = vld [vmem:[%s4223_s27 + $0x112] sm:$0xff] }
 0x220   : > { %v1478_v41 = vpop.permute.xlu1 %1477  ;;  %v1312_v51 = vpop.permute.xlu0 %1311  ;;  %v1927_v47 = vsel %vm1907_vm5, %v1884_v29, %v1184_v9 }
 0x221   : > { %v2012_v58 = vsel %vm1993_vm7, %v1969_v28, %v1478_v41  ;;  %v1970_v19 = vsel %vm1950_vm6, %v1927_v47, %v1312_v51  ;;  %v4051_v47 = vld [vmem:[%s4223_s27 + $0x122] sm:$0xff] }
 0x222   : > { %869 = vrot.lane.b32.xlu1 %v4047_v37, %s4139_s30  ;;  %1329 = vrot.lane.b32.xlu0 %v373_v61, %s4142_s15  ;;  %v1757_v37 = vsel %vm1735_vm1, %v194_v3, %v7445_v12 }
 0x224   : > { %v1018_v63 = vpop.permute.xlu1 %1017  ;;  %v5245_v49 = vpop.permute.xlu0 %851 }
 0x225   : > { %v1885_v14 = vsel %vm1864_vm4, %v1842_v25, %v1018_v63 }
 0x226   : > { %1497 = vrot.lane.b32.xlu1 %v415_v23, %s4143_s24  ;;  %1331 = vrot.lane.b32.xlu0 %v374_v35, %s4142_s15  ;;  %v1800_v23 = vsel %vm1778_vm2, %v1757_v37, %v7446_v38 }
 0x227   : > { %v1843_v63 = vsel %vm1821_vm3, %v1800_v23, %v5245_v49  ;;  %v334_v49 = vld [vmem:[%s4223_s27 + $0x11b] sm:$0xff]  ;;  %v462_v23 = vld [vmem:[%s4223_s27 + $0x12e] sm:$0xff] }
 0x228   : > { %v1646_v8 = vpop.permute.xlu1 %1645  ;;  %v1480_v0 = vpop.permute.xlu0 %1479 }
 0x229   : > { %v2055_v43 = vsel %vm2036_vm8, %v2012_v58, %v1646_v8  ;;  %v2013_v11 = vsel %vm1993_vm7, %v1970_v19, %v1480_v0  ;;  %v7450_v19 = vld [vmem:[#allocation36_spill] sm:$0xff] }
 0x22a   : > { %1037 = vrot.lane.b32.xlu1 %v331_v22, %s4140_s3  ;;  %871 = vrot.lane.b32.xlu0 %v4048_v4, %s4139_s30  ;;  %v460_v4 = vld [vmem:[%s4223_s27 + $0x11e] sm:$0xff] }
 0x22b   : > { %3837 = vmatprep.mubr.msk.f32.mxu0 %vm2084_vm9, %v2055_v43 }
 0x22c   : > { %v1186_v17 = vpop.permute.xlu1 %1185  ;;  %v1020_v55 = vpop.permute.xlu0 %1019 }
 0x22d   : > { %v1928_v54 = vsel %vm1907_vm5, %v1885_v14, %v1186_v17  ;;  %v1886_v10 = vsel %vm1864_vm4, %v1843_v63, %v1020_v55  ;;  %v7449_v55 = vld [vmem:[#allocation11_spill] sm:$0xff]  ;;  %v197_v63 = vld [vmem:[%s4223_s27 + $0xc0] sm:$0xff] }
 0x22e   : > { %v5270_v31 = vpop.f32.mrb[0].mxu0  ;;  %1665 = vrot.lane.b32.xlu1 %v457_v62, %s4144_s28  ;;  %1499 = vrot.lane.b32.xlu0 %v416_v42, %s4143_s24  ;;  %v195_v62 = vld [vmem:[%s4223_s27 + $0xb0] sm:$0xff]  ;;  %v377_v42 = vld [vmem:[%s4223_s27 + $0x124] sm:$0xff] }
 0x22f   : > { %7441 = vst [vmem:[#allocation5_spill] sm:$0xff] %v5270_v31  ;;  %v5275_v1 = vpop.f32.mrb[1].mxu0  ;;  %v1758_v29 = vsel %vm1735_vm1, %v195_v62, %v7449_v55  ;;  %v420_v14 = vld [vmem:[%s4223_s27 + $0x12d] sm:$0xff] }
 0x230   : > { %7442 = vst [vmem:[#allocation30_spill] sm:$0xff] %v5275_v1  ;;  %v1188_v34 = vpop.permute.xlu1 %1187  ;;  %v1648_v57 = vpop.permute.xlu0 %1647 }
 0x231   : > { %v2056_v50 = vsel %vm2036_vm8, %v2013_v11, %v1648_v57  ;;  %v1929_v28 = vsel %vm1907_vm5, %v1886_v10, %v1188_v34  ;;  %v419_v11 = vld [vmem:[%s4223_s27 + $0x125] sm:$0xff] }
 0x232   : > { %1205 = vrot.lane.b32.xlu1 %v373_v61, %s4141_s6  ;;  %1039 = vrot.lane.b32.xlu0 %v332_v20, %s4140_s3  ;;  %v333_v61 = vld [vmem:[%s4223_s27 + $0x113] sm:$0xff]  ;;  %v1801_v20 = vsel %vm1778_vm2, %v1758_v29, %v7450_v19 }
 0x233   : > { %3838 = vmatmul.mubr.msk.f32.gmra.mrb[18].mxu0 %vm2084_vm9, %v2056_v50  ;;  %v378_v34 = vld [vmem:[%s4223_s27 + $0x12c] sm:$0xff] }
 0x234   : > { %v5284_v46 = vpop.permute.xlu1 %853  ;;  %v1314_v32 = vpop.permute.xlu0 %1313  ;;  %v337_v29 = vld [vmem:[%s4223_s27 + $0x133] sm:$0xff] }
 0x235   : > { %v1971_v45 = vsel %vm1950_vm6, %v1928_v54, %v1314_v32  ;;  %v1844_v57 = vsel %vm1821_vm3, %v1801_v20, %v5284_v46 }
 0x236   : > { %1207 = vrot.lane.b32.xlu1 %v374_v35, %s4141_s6  ;;  %1667 = vrot.lane.b32.xlu0 %v458_v59, %s4144_s28  ;;  %v459_v35 = vld [vmem:[%s4223_s27 + $0x116] sm:$0xff] }
 0x238   : > { %v1482_v26 = vpop.permute.xlu1 %1481  ;;  %v1316_v13 = vpop.permute.xlu0 %1315 }
 0x239   : > { %v2014_v5 = vsel %vm1993_vm7, %v1971_v45, %v1482_v26  ;;  %v1972_v58 = vsel %vm1950_vm6, %v1929_v28, %v1316_v13  ;;  %v335_v13 = vld [vmem:[%s4223_s27 + $0x123] sm:$0xff] }
 0x23a   : > { %873 = vrot.lane.b32.xlu1 %v4049_v36, %s4139_s30  ;;  %1333 = vrot.lane.b32.xlu0 %v375_v60, %s4142_s15  ;;  %v7455_v28 = vld [vmem:[#allocation13_spill] sm:$0xff] }
 0x23c   : > { %v1022_v9 = vpop.permute.xlu1 %1021  ;;  %v5301_v18 = vpop.permute.xlu0 %855 }
 0x23d   : > { %v1887_v32 = vsel %vm1864_vm4, %v1844_v57, %v1022_v9  ;;  %v461_v9 = vld [vmem:[%s4223_s27 + $0x126] sm:$0xff]  ;;  %v4054_v57 = vld [vmem:[%s4223_s27 + $0x13a] sm:$0xff] }
 0x23e   : > { %1501 = vrot.lane.b32.xlu1 %v417_v44, %s4143_s24  ;;  %1335 = vrot.lane.b32.xlu0 %v376_v52, %s4142_s15  ;;  %v4052_v44 = vld [vmem:[%s4223_s27 + $0x12a] sm:$0xff] }
 0x240   : > { %v1650_v41 = vpop.permute.xlu1 %1649  ;;  %v1484_v51 = vpop.permute.xlu0 %1483 }
 0x241   : > { %v2057_v48 = vsel %vm2036_vm8, %v2014_v5, %v1650_v41  ;;  %v2015_v0 = vsel %vm1993_vm7, %v1972_v58, %v1484_v51  ;;  %v1760_v58 = vsel %vm1735_vm1, %v197_v63, %v7455_v28 }
 0x242   : > { %1041 = vrot.lane.b32.xlu1 %v333_v61, %s4140_s3  ;;  %875 = vrot.lane.b32.xlu0 %v4050_v6, %s4139_s30 }
 0x243   : > { %3840 = vmatprep.mubr.msk.f32.mxu0 %vm2084_vm9, %v2057_v48 }
 0x244   : > { %v1190_v40 = vpop.permute.xlu1 %1189  ;;  %v1024_v21 = vpop.permute.xlu0 %1023 }
 0x245   : > { %v1930_v56 = vsel %vm1907_vm5, %v1887_v32, %v1190_v40  ;;  %v379_v40 = vld [vmem:[%s4223_s27 + $0x134] sm:$0xff] }
 0x246   : > { %v5326_v22 = vpop.f32.mrb[2].mxu0  ;;  %1669 = vrot.lane.b32.xlu1 %v459_v35, %s4144_s28  ;;  %1503 = vrot.lane.b32.xlu0 %v418_v24, %s4143_s24 }
 0x247   : > { %7447 = vst [vmem:[#allocation7_spill] sm:$0xff] %v5326_v22  ;;  %v5331_v8 = vpop.f32.mrb[3].mxu0 }
 0x248   : > { %7448 = vst [vmem:[#allocation32_spill] sm:$0xff] %v5331_v8  ;;  %v1192_v43 = vpop.permute.xlu1 %1191  ;;  %v1652_v2 = vpop.permute.xlu0 %1651 }
 0x249   : > { %v2058_v39 = vsel %vm2036_vm8, %v2015_v0, %v1652_v2  ;;  %v7456_v0 = vld [vmem:[#allocation38_spill] sm:$0xff]  ;;  %v421_v2 = vld [vmem:[%s4223_s27 + $0x135] sm:$0xff] }
 0x24a   : > { %1209 = vrot.lane.b32.xlu1 %v375_v60, %s4141_s6  ;;  %1043 = vrot.lane.b32.xlu0 %v334_v49, %s4140_s3  ;;  %v196_v60 = vld [vmem:[%s4223_s27 + $0xb8] sm:$0xff] }
 0x24b   : > { %3841 = vmatmul.mubr.msk.f32.gmra.mrb[20].mxu0 %vm2084_vm9, %v2058_v39  ;;  %v1759_v33 = vsel %vm1735_vm1, %v196_v60, %v7451_v16  ;;  %v4053_v49 = vld [vmem:[%s4223_s27 + $0x132] sm:$0xff]  ;;  %v380_v39 = vld [vmem:[%s4223_s27 + $0x13c] sm:$0xff] }
 0x24c   : > { %v5340_v15 = vpop.permute.xlu1 %857  ;;  %v1318_v53 = vpop.permute.xlu0 %1317  ;;  %v422_v60 = vld [vmem:[%s4223_s27 + $0x13d] sm:$0xff] }
 0x24d   : > { %v1973_v26 = vsel %vm1950_vm6, %v1930_v56, %v1318_v53  ;;  %v463_v56 = vld [vmem:[%s4223_s27 + $0x136] sm:$0xff] }
 0x24e   : > { %1211 = vrot.lane.b32.xlu1 %v376_v52, %s4141_s6  ;;  %1671 = vrot.lane.b32.xlu0 %v460_v4, %s4144_s28  ;;  %v7452_v52 = vld [vmem:[#allocation35_spill] sm:$0xff] }
 0x24f   : > { %v1802_v25 = vsel %vm1778_vm2, %v1759_v33, %v7452_v52 }
 0x250   : > { %v1486_v30 = vpop.permute.xlu1 %1485  ;;  %v1320_v17 = vpop.permute.xlu0 %1319  ;;  %v1845_v54 = vsel %vm1821_vm3, %v1802_v25, %v5301_v18  ;;  %v336_v18 = vld [vmem:[%s4223_s27 + $0x12b] sm:$0xff] }
 0x251   : > { %v2016_v46 = vsel %vm1993_vm7, %v1973_v26, %v1486_v30  ;;  %v1888_v61 = vsel %vm1864_vm4, %v1845_v54, %v1024_v21 }
 0x252   : > { %877 = vrot.lane.b32.xlu1 %v4051_v47, %s4139_s30  ;;  %1337 = vrot.lane.b32.xlu0 %v377_v42, %s4142_s15  ;;  %v1931_v5 = vsel %vm1907_vm5, %v1888_v61, %v1192_v43  ;;  %v1803_v43 = vsel %vm1778_vm2, %v1760_v58, %v7456_v0  ;;  %v381_v61 = vld [vmem:[%s4223_s27 + $0x144] sm:$0xff]  ;;  %v200_v58 = vld [vmem:[%s4223_s27 + $0xd8] sm:$0xff] }
 0x253   : > { %v1974_v51 = vsel %vm1950_vm6, %v1931_v5, %v1320_v17  ;;  %v1846_v4 = vsel %vm1821_vm3, %v1803_v43, %v5340_v15  ;;  %v198_v17 = vld [vmem:[%s4223_s27 + $0xc8] sm:$0xff] }
 0x254   : > { %v1026_v50 = vpop.permute.xlu1 %1025  ;;  %v5357_v59 = vpop.permute.xlu0 %859  ;;  %v339_v0 = vld [vmem:[%s4223_s27 + $0x143] sm:$0xff] }
 0x256   : > { %1505 = vrot.lane.b32.xlu1 %v419_v11, %s4143_s24  ;;  %1339 = vrot.lane.b32.xlu0 %v378_v34, %s4142_s15  ;;  %v7457_v11 = vld [vmem:[#allocation12_spill] sm:$0xff] }
 0x258   : > { %v1654_v7 = vpop.permute.xlu1 %1653  ;;  %v1488_v27 = vpop.permute.xlu0 %1487 }
 0x259   : > { %v2059_v36 = vsel %vm2036_vm8, %v2016_v46, %v1654_v7  ;;  %v2017_v12 = vsel %vm1993_vm7, %v1974_v51, %v1488_v27 }
 0x25a   : > { %1045 = vrot.lane.b32.xlu1 %v335_v13, %s4140_s3  ;;  %879 = vrot.lane.b32.xlu0 %v4052_v44, %s4139_s30 }
 0x25b   : > { %3843 = vmatprep.mubr.msk.f32.mxu1 %vm2084_vm9, %v2059_v36 }
 0x25c   : > { %v1194_v3 = vpop.permute.xlu1 %1193  ;;  %v1028_v45 = vpop.permute.xlu0 %1027 }
 0x25e   : > { %v5382_v41 = vpop.f32.mrb[4].mxu0  ;;  %1673 = vrot.lane.b32.xlu1 %v461_v9, %s4144_s28  ;;  %1507 = vrot.lane.b32.xlu0 %v420_v14, %s4143_s24  ;;  %v464_v14 = vld [vmem:[%s4223_s27 + $0x13e] sm:$0xff] }
 0x25f   : > { %7453 = vst [vmem:[#allocation6_spill] sm:$0xff] %v5382_v41  ;;  %v5387_v48 = vpop.f32.mrb[5].mxu0 }
 0x260   : > { %7454 = vst [vmem:[#allocation31_spill] sm:$0xff] %v5387_v48  ;;  %v1196_v37 = vpop.permute.xlu1 %1195  ;;  %v1656_v6 = vpop.permute.xlu0 %1655 }
 0x261   : > { %v2060_v38 = vsel %vm2036_vm8, %v2017_v12, %v1656_v6  ;;  %v7462_v6 = vld [vmem:[#allocation40_spill] sm:$0xff] }
 0x262   : > { %1213 = vrot.lane.b32.xlu1 %v377_v42, %s4141_s6  ;;  %1047 = vrot.lane.b32.xlu0 %v336_v18, %s4140_s3  ;;  %v1889_v42 = vsel %vm1864_vm4, %v1846_v4, %v1026_v50  ;;  %v7458_v50 = vld [vmem:[#allocation37_spill] sm:$0xff]  ;;  %v7461_v18 = vld [vmem:[#allocation15_spill] sm:$0xff]  ;;  %v7463_v4 = vld [vmem:[#allocation14_spill] sm:$0xff] }
 0x263   : > { %3844 = vmatmul.mubr.msk.f32.vlgmr.msra.gmra.mrb[0].mxu1 %vm2084_vm9, %v2060_v38  ;;  %v1932_v30 = vsel %vm1907_vm5, %v1889_v42, %v1194_v3  ;;  %v4056_v42 = vld [vmem:[%s4223_s27 + $0x14a] sm:$0xff] }
 0x264   : > { %v5396_v35 = vpop.permute.xlu1 %861  ;;  %v1322_v24 = vpop.permute.xlu0 %1321 }
 0x265   : > { %v1975_v55 = vsel %vm1950_vm6, %v1932_v30, %v1322_v24  ;;  %v382_v24 = vld [vmem:[%s4223_s27 + $0x14c] sm:$0xff] }
 0x266   : > { %1215 = vrot.lane.b32.xlu1 %v378_v34, %s4141_s6  ;;  %1675 = vrot.lane.b32.xlu0 %v462_v23, %s4144_s28  ;;  %v1761_v34 = vsel %vm1735_vm1, %v198_v17, %v7457_v11  ;;  %v423_v23 = vld [vmem:[%s4223_s27 + $0x145] sm:$0xff]  ;;  %v7464_v30 = vld [vmem:[#allocation39_spill] sm:$0xff] }
 0x267   : > { %v1804_v32 = vsel %vm1778_vm2, %v1761_v34, %v7458_v50 }
 0x268   : > { %v1490_v21 = vpop.permute.xlu1 %1489  ;;  %v1324_v10 = vpop.permute.xlu0 %1323  ;;  %v1847_v26 = vsel %vm1821_vm3, %v1804_v32, %v5357_v59  ;;  %v338_v59 = vld [vmem:[%s4223_s27 + $0x13b] sm:$0xff] }
 0x269   : > { %v2018_v15 = vsel %vm1993_vm7, %v1975_v55, %v1490_v21  ;;  %v1890_v7 = vsel %vm1864_vm4, %v1847_v26, %v1028_v45  ;;  %v199_v45 = vld [vmem:[%s4223_s27 + $0xd0] sm:$0xff]  ;;  %v465_v55 = vld [vmem:[%s4223_s27 + $0x146] sm:$0xff] }
 0x26a   : > { %881 = vrot.lane.b32.xlu1 %v4053_v49, %s4139_s30  ;;  %1341 = vrot.lane.b32.xlu0 %v379_v40, %s4142_s15  ;;  %v1933_v27 = vsel %vm1907_vm5, %v1890_v7, %v1196_v37  ;;  %v1762_v12 = vsel %vm1735_vm1, %v199_v45, %v7461_v18  ;;  %v4055_v37 = vld [vmem:[%s4223_s27 + $0x142] sm:$0xff]  ;;  %v425_v45 = vld [vmem:[%s4223_s27 + $0x155] sm:$0xff] }
 0x26b   : > { %v1976_v16 = vsel %vm1950_vm6, %v1933_v27, %v1324_v10  ;;  %v1805_v38 = vsel %vm1778_vm2, %v1762_v12, %v7462_v6  ;;  %v201_v27 = vld [vmem:[%s4223_s27 + $0xe0] sm:$0xff]  ;;  %v202_v6 = vld [vmem:[%s4223_s27 + $0xe8] sm:$0xff] }
 0x26c   : > { %v1030_v53 = vpop.permute.xlu1 %1029  ;;  %v5413_v62 = vpop.permute.xlu0 %863  ;;  %v1848_v63 = vsel %vm1821_vm3, %v1805_v38, %v5396_v35 }
 0x26d   : > { %v1891_v10 = vsel %vm1864_vm4, %v1848_v63, %v1030_v53  ;;  %v1763_v53 = vsel %vm1735_vm1, %v200_v58, %v7463_v4 }
 0x26e   : > { %1509 = vrot.lane.b32.xlu1 %v421_v2, %s4143_s24  ;;  %1343 = vrot.lane.b32.xlu0 %v380_v39, %s4142_s15  ;;  %v1806_v17 = vsel %vm1778_vm2, %v1763_v53, %v7464_v30 }
 0x270   : > { %v1658_v47 = vpop.permute.xlu1 %1657  ;;  %v1492_v19 = vpop.permute.xlu0 %1491 }
 0x271   : > { %v2061_v20 = vsel %vm2036_vm8, %v2018_v15, %v1658_v47  ;;  %v2019_v44 = vsel %vm1993_vm7, %v1976_v16, %v1492_v19  ;;  %v1849_v15 = vsel %vm1821_vm3, %v1806_v17, %v5413_v62  ;;  %v340_v62 = vld [vmem:[%s4223_s27 + $0x14b] sm:$0xff] }
 0x272   : > { %1049 = vrot.lane.b32.xlu1 %v337_v29, %s4140_s3  ;;  %883 = vrot.lane.b32.xlu0 %v4054_v57, %s4139_s30  ;;  %v424_v29 = vld [vmem:[%s4223_s27 + $0x14d] sm:$0xff] }
 0x273   : > { %3846 = vmatprep.mubr.msk.f32.mxu1 %vm2084_vm9, %v2061_v20  ;;  %v299_v16 = vld [vmem:[%s4223_s27 + $0x152] sm:$0xff] }
 0x274   : > { %v1198_v13 = vpop.permute.xlu1 %1197  ;;  %v1032_v46 = vpop.permute.xlu0 %1031 }
 0x275   : > { %v1934_v28 = vsel %vm1907_vm5, %v1891_v10, %v1198_v13  ;;  %v1892_v20 = vsel %vm1864_vm4, %v1849_v15, %v1032_v46  ;;  %v466_v13 = vld [vmem:[%s4223_s27 + $0x14e] sm:$0xff] }
 0x276   : > { %v5438_v36 = vpop.f32.mrb[6].mxu0  ;;  %1677 = vrot.lane.b32.xlu1 %v463_v56, %s4144_s28  ;;  %1511 = vrot.lane.b32.xlu0 %v422_v60, %s4143_s24 }
 0x277   : > { %7459 = vst [vmem:[#allocation9_spill] sm:$0xff] %v5438_v36  ;;  %v5443_v33 = vpop.f32.mrb[7].mxu0 }
 0x278   : > { %7460 = vst [vmem:[#allocation34_spill] sm:$0xff] %v5443_v33  ;;  %v1200_v52 = vpop.permute.xlu1 %1199  ;;  %v1660_v25 = vpop.permute.xlu0 %1659 }
 0x279   : > { %v2062_v9 = vsel %vm2036_vm8, %v2019_v44, %v1660_v25  ;;  %v1935_v11 = vsel %vm1907_vm5, %v1892_v20, %v1200_v52  ;;  %v7467_v25 = vld [vmem:[#allocation17_spill] sm:$0xff] }
 0x27a   : > { %1217 = vrot.lane.b32.xlu1 %v379_v40, %s4141_s6  ;;  %1051 = vrot.lane.b32.xlu0 %v338_v59, %s4140_s3  ;;  %v383_v59 = vld [vmem:[%s4223_s27 + $0x154] sm:$0xff]  ;;  %v468_v20 = vld [vmem:[%s4223_s27 + $0x15e] sm:$0xff] }
 0x27b   : > { %3847 = vmatmul.mubr.msk.f32.gmra.mrb[2].mxu1 %vm2084_vm9, %v2062_v9  ;;  %v1764_v9 = vsel %vm1735_vm1, %v201_v27, %v7467_v25  ;;  %v7474_v27 = vld [vmem:[#allocation44_spill] sm:$0xff] }
 0x27c   : > { %v5452_v54 = vpop.permute.xlu1 %865  ;;  %v1326_v3 = vpop.permute.xlu0 %1325 }
 0x27d   : > { %v1977_v49 = vsel %vm1950_vm6, %v1934_v28, %v1326_v3 }
 0x27e   : > { %1219 = vrot.lane.b32.xlu1 %v380_v39, %s4141_s6  ;;  %1679 = vrot.lane.b32.xlu0 %v464_v14, %s4144_s28  ;;  %v7468_v14 = vld [vmem:[#allocation42_spill] sm:$0xff] }
 0x27f   : > { %v1807_v3 = vsel %vm1778_vm2, %v1764_v9, %v7468_v14 }
 0x280   : > { %v1494_v5 = vpop.permute.xlu1 %1493  ;;  %v1328_v51 = vpop.permute.xlu0 %1327 }
 0x281   : > { %v2020_v35 = vsel %vm1993_vm7, %v1977_v49, %v1494_v5  ;;  %v1978_v57 = vsel %vm1950_vm6, %v1935_v11, %v1328_v51  ;;  %v1850_v5 = vsel %vm1821_vm3, %v1807_v3, %v5452_v54  ;;  %v7470_v49 = vld [vmem:[#allocation41_spill] sm:$0xff] }
 0x282   : > { %885 = vrot.lane.b32.xlu1 %v4055_v37, %s4139_s30  ;;  %1345 = vrot.lane.b32.xlu0 %v381_v61, %s4142_s15 }
 0x284   : > { %v1034_v40 = vpop.permute.xlu1 %1033  ;;  %v5469_v21 = vpop.permute.xlu0 %867 }
 0x285   : > { %v1893_v12 = vsel %vm1864_vm4, %v1850_v5, %v1034_v40  ;;  %v7469_v40 = vld [vmem:[#allocation16_spill] sm:$0xff]  ;;  %v470_v5 = vld [vmem:[%s4223_s27 + $0x16e] sm:$0xff] }
 0x286   : > { %1513 = vrot.lane.b32.xlu1 %v423_v23, %s4143_s24  ;;  %1347 = vrot.lane.b32.xlu0 %v382_v24, %s4142_s15  ;;  %v341_v23 = vld [vmem:[%s4223_s27 + $0x153] sm:$0xff]  ;;  %v1765_v58 = vsel %vm1735_vm1, %v202_v6, %v7469_v40 }
 0x288   : > { %v1662_v43 = vpop.permute.xlu1 %1661  ;;  %v1496_v2 = vpop.permute.xlu0 %1495 }
 0x289   : > { %v2063_v39 = vsel %vm2036_vm8, %v2020_v35, %v1662_v43  ;;  %v2021_v32 = vsel %vm1993_vm7, %v1978_v57, %v1496_v2  ;;  %v467_v35 = vld [vmem:[%s4223_s27 + $0x156] sm:$0xff] }
 0x28a   : > { %1053 = vrot.lane.b32.xlu1 %v339_v0, %s4140_s3  ;;  %887 = vrot.lane.b32.xlu0 %v4056_v42, %s4139_s30  ;;  %v1808_v0 = vsel %vm1778_vm2, %v1765_v58, %v7470_v49  ;;  %v426_v43 = vld [vmem:[%s4223_s27 + $0x15d] sm:$0xff] }
 0x28b   : > { %3849 = vmatprep.mubr.msk.f32.mxu1 %vm2084_vm9, %v2063_v39  ;;  %v1851_v2 = vsel %vm1821_vm3, %v1808_v0, %v5469_v21  ;;  %v342_v21 = vld [vmem:[%s4223_s27 + $0x15b] sm:$0xff] }
 0x28c   : > { %v1202_v47 = vpop.permute.xlu1 %1201  ;;  %v1036_v19 = vpop.permute.xlu0 %1035 }
 0x28d   : > { %v1936_v37 = vsel %vm1907_vm5, %v1893_v12, %v1202_v47  ;;  %v1894_v53 = vsel %vm1864_vm4, %v1851_v2, %v1036_v19  ;;  %v469_v12 = vld [vmem:[%s4223_s27 + $0x166] sm:$0xff] }
 0x28e   : > { %v5494_v34 = vpop.f32.mrb[8].mxu0  ;;  %1681 = vrot.lane.b32.xlu1 %v465_v55, %s4144_s28  ;;  %1515 = vrot.lane.b32.xlu0 %v424_v29, %s4143_s24 }
 0x28f   : > { %7465 = vst [vmem:[#allocation8_spill] sm:$0xff] %v5494_v34  ;;  %v5499_v50 = vpop.f32.mrb[9].mxu0 }
 0x290   : > { %7466 = vst [vmem:[#allocation33_spill] sm:$0xff] %v5499_v50  ;;  %v1204_v56 = vpop.permute.xlu1 %1203  ;;  %v1664_v60 = vpop.permute.xlu0 %1663 }
 0x291   : > { %v2064_v26 = vsel %vm2036_vm8, %v2021_v32, %v1664_v60  ;;  %v1937_v42 = vsel %vm1907_vm5, %v1894_v53, %v1204_v56  ;;  %v386_v32 = vld [vmem:[%s4223_s27 + $0x16c] sm:$0xff]  ;;  %v385_v56 = vld [vmem:[%s4223_s27 + $0x164] sm:$0xff] }
 0x292   : > { %1221 = vrot.lane.b32.xlu1 %v381_v61, %s4141_s6  ;;  %1055 = vrot.lane.b32.xlu0 %v340_v62, %s4140_s3  ;;  %v384_v61 = vld [vmem:[%s4223_s27 + $0x15c] sm:$0xff]  ;;  %v203_v62 = vld [vmem:[%s4223_s27 + $0xf0] sm:$0xff] }
 0x293   : > { %3850 = vmatmul.mubr.msk.f32.gmra.mrb[4].mxu1 %vm2084_vm9, %v2064_v26 }
 0x294   : > { %v5508_v46 = vpop.permute.xlu1 %869  ;;  %v1330_v7 = vpop.permute.xlu0 %1329 }
 0x295   : > { %v1979_v38 = vsel %vm1950_vm6, %v1936_v37, %v1330_v7 }
 0x296   : > { %1223 = vrot.lane.b32.xlu1 %v382_v24, %s4141_s6  ;;  %1683 = vrot.lane.b32.xlu0 %v466_v13, %s4144_s28  ;;  %v300_v24 = vld [vmem:[%s4223_s27 + $0x15a] sm:$0xff]  ;;  %v7473_v13 = vld [vmem:[#allocation19_spill] sm:$0xff] }
 0x297   : > { %v1766_v7 = vsel %vm1735_vm1, %v203_v62, %v7473_v13 }
 0x298   : > { %v1498_v44 = vpop.permute.xlu1 %1497  ;;  %v1332_v52 = vpop.permute.xlu0 %1331 }
 0x299   : > { %v2022_v54 = vsel %vm1993_vm7, %v1979_v38, %v1498_v44  ;;  %v1980_v17 = vsel %vm1950_vm6, %v1937_v42, %v1332_v52  ;;  %v427_v44 = vld [vmem:[%s4223_s27 + $0x165] sm:$0xff] }
 0x29a   : > { %889 = vrot.lane.b32.xlu1 %v299_v16, %s4139_s30  ;;  %1349 = vrot.lane.b32.xlu0 %v383_v59, %s4142_s15  ;;  %v1809_v16 = vsel %vm1778_vm2, %v1766_v7, %v7474_v27 }
 0x29b   : > { %v1852_v52 = vsel %vm1821_vm3, %v1809_v16, %v5508_v46 }
 0x29c   : > { %v1038_v51 = vpop.permute.xlu1 %1037  ;;  %v5525_v18 = vpop.permute.xlu0 %871 }
 0x29d   : > { %v1895_v14 = vsel %vm1864_vm4, %v1852_v52, %v1038_v51 }
 0x29e   : > { %1517 = vrot.lane.b32.xlu1 %v425_v45, %s4143_s24  ;;  %1351 = vrot.lane.b32.xlu0 %v384_v61, %s4142_s15  ;;  %v204_v45 = vld [vmem:[%s4223_s27 + $0xf8] sm:$0xff] }
 0x2a0   : > { %v1666_v63 = vpop.permute.xlu1 %1665  ;;  %v1500_v10 = vpop.permute.xlu0 %1499 }
 0x2a1   : > { %v2065_v28 = vsel %vm2036_vm8, %v2022_v54, %v1666_v63  ;;  %v2023_v29 = vsel %vm1993_vm7, %v1980_v17, %v1500_v10 }
 0x2a2   : > { %1057 = vrot.lane.b32.xlu1 %v341_v23, %s4140_s3  ;;  %891 = vrot.lane.b32.xlu0 %v300_v24, %s4139_s30  ;;  %v7475_v23 = vld [vmem:[#allocation18_spill] sm:$0xff]  ;;  %v7476_v24 = vld [vmem:[#allocation43_spill] sm:$0xff] }
 0x2a3   : > { %3852 = vmatprep.mubr.msk.f32.mxu1 %vm2084_vm9, %v2065_v28  ;;  %v1767_v51 = vsel %vm1735_vm1, %v204_v45, %v7475_v23 }
 0x2a4   : > { %v1206_v39 = vpop.permute.xlu1 %1205  ;;  %v1040_v4 = vpop.permute.xlu0 %1039  ;;  %v1810_v54 = vsel %vm1778_vm2, %v1767_v51, %v7476_v24  ;;  %v207_v24 = vld [vmem:[%s4223_s27 + $0x110] sm:$0xff] }
 0x2a5   : > { %v1938_v3 = vsel %vm1907_vm5, %v1895_v14, %v1206_v39  ;;  %v1853_v63 = vsel %vm1821_vm3, %v1810_v54, %v5525_v18 }
 0x2a6   : > { %v5550_v30 = vpop.f32.mrb[10].mxu0  ;;  %1685 = vrot.lane.b32.xlu1 %v467_v35, %s4144_s28  ;;  %1519 = vrot.lane.b32.xlu0 %v426_v43, %s4143_s24  ;;  %v1896_v40 = vsel %vm1864_vm4, %v1853_v63, %v1040_v4  ;;  %v205_v4 = vld [vmem:[%s4223_s27 + $0x100] sm:$0xff] }
 0x2a7   : > { %7471 = vst [vmem:[#allocation11_spill] sm:$0xff] %v5550_v30  ;;  %v5555_v55 = vpop.f32.mrb[11].mxu0 }
 0x2a8   : > { %7472 = vst [vmem:[#allocation36_spill] sm:$0xff] %v5555_v55  ;;  %v1208_v15 = vpop.permute.xlu1 %1207  ;;  %v1668_v47 = vpop.permute.xlu0 %1667 }
 0x2a9   : > { %v2066_v19 = vsel %vm2036_vm8, %v2023_v29, %v1668_v47  ;;  %v1939_v58 = vsel %vm1907_vm5, %v1896_v40, %v1208_v15  ;;  %v7479_v29 = vld [vmem:[#allocation21_spill] sm:$0xff]  ;;  %v7480_v47 = vld [vmem:[#allocation46_spill] sm:$0xff]  ;;  %v7486_v40 = vld [vmem:[#allocation48_spill] sm:$0xff] }
 0x2aa   : > { %1225 = vrot.lane.b32.xlu1 %v383_v59, %s4141_s6  ;;  %1059 = vrot.lane.b32.xlu0 %v342_v21, %s4140_s3  ;;  %v428_v59 = vld [vmem:[%s4223_s27 + $0x16d] sm:$0xff]  ;;  %v1768_v15 = vsel %vm1735_vm1, %v205_v4, %v7479_v29 }
 0x2ab   : > { %3853 = vmatmul.mubr.msk.f32.gmra.mrb[6].mxu1 %vm2084_vm9, %v2066_v19  ;;  %v1811_v19 = vsel %vm1778_vm2, %v1768_v15, %v7480_v47  ;;  %v7487_v47 = vld [vmem:[#allocation22_spill] sm:$0xff] }
 0x2ac   : > { %v874_v11 = vpop.permute.xlu1 %873  ;;  %v1334_v57 = vpop.permute.xlu0 %1333 }
 0x2ae   : > { %1227 = vrot.lane.b32.xlu1 %v384_v61, %s4141_s6  ;;  %1687 = vrot.lane.b32.xlu0 %v468_v20, %s4144_s28  ;;  %v1981_v61 = vsel %vm1950_vm6, %v1938_v3, %v1334_v57  ;;  %v1854_v20 = vsel %vm1821_vm3, %v1811_v19, %v874_v11  ;;  %v7482_v11 = vld [vmem:[#allocation45_spill] sm:$0xff] }
 0x2b0   : > { %v1502_v60 = vpop.permute.xlu1 %1501  ;;  %v1336_v26 = vpop.permute.xlu0 %1335 }
 0x2b1   : > { %v2024_v37 = vsel %vm1993_vm7, %v1981_v61, %v1502_v60  ;;  %v1982_v0 = vsel %vm1950_vm6, %v1939_v58, %v1336_v26  ;;  %v206_v60 = vld [vmem:[%s4223_s27 + $0x108] sm:$0xff] }
 0x2b2   : > { %1355 = vrot.lane.b32.xlu1 %v386_v32, %s4142_s15  ;;  %1353 = vrot.lane.b32.xlu0 %v385_v56, %s4142_s15 }
 0x2b4   : > { %v1042_v25 = vpop.permute.xlu1 %1041  ;;  %v876_v9 = vpop.permute.xlu0 %875 }
 0x2b5   : > { %v1897_v32 = vsel %vm1864_vm4, %v1854_v20, %v1042_v25 }
 0x2b6   : > { %1523 = vrot.lane.b32.xlu1 %v428_v59, %s4143_s24  ;;  %1521 = vrot.lane.b32.xlu0 %v427_v44, %s4143_s24  ;;  %v7481_v59 = vld [vmem:[#allocation20_spill] sm:$0xff] }
 0x2b7   : > { %v1769_v44 = vsel %vm1735_vm1, %v206_v60, %v7481_v59 }
 0x2b8   : > { %v1670_v6 = vpop.permute.xlu1 %1669  ;;  %v1504_v38 = vpop.permute.xlu0 %1503  ;;  %v1812_v52 = vsel %vm1778_vm2, %v1769_v44, %v7482_v11 }
 0x2b9   : > { %v2067_v46 = vsel %vm2036_vm8, %v2024_v37, %v1670_v6  ;;  %v2025_v43 = vsel %vm1993_vm7, %v1982_v0, %v1504_v38  ;;  %v1855_v25 = vsel %vm1821_vm3, %v1812_v52, %v876_v9 }
 0x2ba   : > { %1691 = vrot.lane.b32.xlu1 %v470_v5, %s4144_s28  ;;  %1689 = vrot.lane.b32.xlu0 %v469_v12, %s4144_s28 }
 0x2bb   : > { %3855 = vmatprep.mubr.msk.f32.mxu1 %vm2084_vm9, %v2067_v46 }
 0x2bc   : > { %v1210_v10 = vpop.permute.xlu1 %1209  ;;  %v1044_v28 = vpop.permute.xlu0 %1043 }
 0x2bd   : > { %v1940_v56 = vsel %vm1907_vm5, %v1897_v32, %v1210_v10  ;;  %v1898_v45 = vsel %vm1864_vm4, %v1855_v25, %v1044_v28  ;;  %v7485_v10 = vld [vmem:[#allocation23_spill] sm:$0xff]  ;;  %v209_v25 = vld [vmem:[%s4223_s27 + $0x120] sm:$0xff] }
 0x2be   : > { %v5600_v49 = vpop.f32.mrb[12].mxu0  ;;  %v1770_v28 = vsel %vm1735_vm1, %v207_v24, %v7485_v10 }
 0x2bf   : > { %7477 = vst [vmem:[#allocation10_spill] sm:$0xff] %v5600_v49  ;;  %v5603_v35 = vpop.f32.mrb[13].mxu0  ;;  %v1813_v58 = vsel %vm1778_vm2, %v1770_v28, %v7486_v40 }
 0x2c0   : > { %7478 = vst [vmem:[#allocation35_spill] sm:$0xff] %v5603_v35  ;;  %v1212_v2 = vpop.permute.xlu1 %1211  ;;  %v1672_v39 = vpop.permute.xlu0 %1671 }
 0x2c1   : > { %v2068_v53 = vsel %vm2036_vm8, %v2025_v43, %v1672_v39  ;;  %v1941_v61 = vsel %vm1907_vm5, %v1898_v45, %v1212_v2  ;;  %v7491_v45 = vld [vmem:[#allocation25_spill] sm:$0xff] }
 0x2c2   : > { %3856 = vmatmul.mubr.msk.f32.gmra.mrb[8].mxu1 %vm2084_vm9, %v2068_v53 }
 0x2c4   : > { %v878_v18 = vpop.permute.xlu1 %877  ;;  %v1338_v42 = vpop.permute.xlu0 %1337 }
 0x2c5   : > { %v1983_v26 = vsel %vm1950_vm6, %v1940_v56, %v1338_v42  ;;  %v1856_v0 = vsel %vm1821_vm3, %v1813_v58, %v878_v18  ;;  %v208_v42 = vld [vmem:[%s4223_s27 + $0x118] sm:$0xff]  ;;  %v7488_v18 = vld [vmem:[#allocation47_spill] sm:$0xff] }
 0x2c6   : > { %v1771_v19 = vsel %vm1735_vm1, %v208_v42, %v7487_v47 }
 0x2c7   : > { %v1814_v20 = vsel %vm1778_vm2, %v1771_v19, %v7488_v18 }
 0x2c8   : > { %v1506_v17 = vpop.permute.xlu1 %1505  ;;  %v1340_v21 = vpop.permute.xlu0 %1339 }
 0x2c9   : > { %v2026_v13 = vsel %vm1993_vm7, %v1983_v26, %v1506_v17  ;;  %v1984_v12 = vsel %vm1950_vm6, %v1941_v61, %v1340_v21  ;;  %v1772_v61 = vsel %vm1735_vm1, %v209_v25, %v7491_v45  ;;  %v212_v45 = vld [vmem:[%s4223_s27 + $0x138] sm:$0xff] }
 0x2cc   : > { %v1046_v57 = vpop.permute.xlu1 %1045  ;;  %v880_v62 = vpop.permute.xlu0 %879 }
 0x2cd   : > { %v1899_v39 = vsel %vm1864_vm4, %v1856_v0, %v1046_v57  ;;  %v1857_v57 = vsel %vm1821_vm3, %v1814_v20, %v880_v62  ;;  %v7493_v0 = vld [vmem:[#allocation24_spill] sm:$0xff] }
 0x2d0   : > { %v1674_v7 = vpop.permute.xlu1 %1673  ;;  %v1508_v27 = vpop.permute.xlu0 %1507 }
 0x2d1   : > { %v2069_v16 = vsel %vm2036_vm8, %v2026_v13, %v1674_v7  ;;  %v2027_v6 = vsel %vm1993_vm7, %v1984_v12, %v1508_v27  ;;  %v7492_v12 = vld [vmem:[#allocation50_spill] sm:$0xff] }
 0x2d2   : > { %3858 = vmatprep.mubr.msk.f32.mxu1 %vm2084_vm9, %v2069_v16 }
 0x2d4   : > { %v1214_v14 = vpop.permute.xlu1 %1213  ;;  %v1048_v3 = vpop.permute.xlu0 %1047 }
 0x2d5   : > { %v1942_v53 = vsel %vm1907_vm5, %v1899_v39, %v1214_v14  ;;  %v1900_v60 = vsel %vm1864_vm4, %v1857_v57, %v1048_v3 }
 0x2d6   : > { %v5628_v5 = vpop.f32.mrb[14].mxu0 }
 0x2d7   : > { %7483 = vst [vmem:[#allocation13_spill] sm:$0xff] %v5628_v5  ;;  %v5631_v37 = vpop.f32.mrb[15].mxu0 }
 0x2d8   : > { %7484 = vst [vmem:[#allocation38_spill] sm:$0xff] %v5631_v37  ;;  %v1216_v38 = vpop.permute.xlu1 %1215  ;;  %v1676_v46 = vpop.permute.xlu0 %1675 }
 0x2d9   : > { %v2070_v23 = vsel %vm2036_vm8, %v2027_v6, %v1676_v46  ;;  %v1943_v26 = vsel %vm1907_vm5, %v1900_v60, %v1216_v38  ;;  %v1815_v6 = vsel %vm1778_vm2, %v1772_v61, %v7492_v12 }
 0x2da   : > { %3859 = vmatmul.mubr.msk.f32.gmra.mrb[10].mxu1 %vm2084_vm9, %v2070_v23 }
 0x2dc   : > { %v882_v9 = vpop.permute.xlu1 %881  ;;  %v1342_v51 = vpop.permute.xlu0 %1341 }
 0x2dd   : > { %v1985_v4 = vsel %vm1950_vm6, %v1942_v53, %v1342_v51  ;;  %v1858_v38 = vsel %vm1821_vm3, %v1815_v6, %v882_v9  ;;  %v7494_v9 = vld [vmem:[#allocation49_spill] sm:$0xff] }
 0x2e0   : > { %v1510_v54 = vpop.permute.xlu1 %1509  ;;  %v1344_v63 = vpop.permute.xlu0 %1343 }
 0x2e1   : > { %v2028_v17 = vsel %vm1993_vm7, %v1985_v4, %v1510_v54  ;;  %v1986_v7 = vsel %vm1950_vm6, %v1943_v26, %v1344_v63  ;;  %v210_v54 = vld [vmem:[%s4223_s27 + $0x128] sm:$0xff] }
 0x2e2   : > { %v1773_v39 = vsel %vm1735_vm1, %v210_v54, %v7493_v0 }
 0x2e3   : > { %v1816_v53 = vsel %vm1778_vm2, %v1773_v39, %v7494_v9 }
 0x2e4   : > { %v1050_v43 = vpop.permute.xlu1 %1049  ;;  %v884_v2 = vpop.permute.xlu0 %883 }
 0x2e5   : > { %v1901_v51 = vsel %vm1864_vm4, %v1858_v38, %v1050_v43  ;;  %v1859_v43 = vsel %vm1821_vm3, %v1816_v53, %v884_v2 }
 0x2e8   : > { %v1678_v21 = vpop.permute.xlu1 %1677  ;;  %v1512_v29 = vpop.permute.xlu0 %1511 }
 0x2e9   : > { %v2071_v15 = vsel %vm2036_vm8, %v2028_v17, %v1678_v21  ;;  %v2029_v16 = vsel %vm1993_vm7, %v1986_v7, %v1512_v29  ;;  %v7497_v7 = vld [vmem:[#allocation27_spill] sm:$0xff] }
 0x2ea   : > { %3861 = vmatprep.mubr.msk.f32.mxu1 %vm2084_vm9, %v2071_v15 }
 0x2ec   : > { %v1218_v32 = vpop.permute.xlu1 %1217  ;;  %v1052_v56 = vpop.permute.xlu0 %1051 }
 0x2ed   : > { %v1944_v24 = vsel %vm1907_vm5, %v1901_v51, %v1218_v32  ;;  %v1902_v17 = vsel %vm1864_vm4, %v1859_v43, %v1052_v56  ;;  %v211_v56 = vld [vmem:[%s4223_s27 + $0x130] sm:$0xff] }
 0x2ee   : > { %v5656_v13 = vpop.f32.mrb[16].mxu0 }
 0x2ef   : > { %7489 = vst [vmem:[#allocation12_spill] sm:$0xff] %v5656_v13  ;;  %v5659_v27 = vpop.f32.mrb[17].mxu0 }
 0x2f0   : > { %7490 = vst [vmem:[#allocation37_spill] sm:$0xff] %v5659_v27  ;;  %v1220_v59 = vpop.permute.xlu1 %1219  ;;  %v1680_v44 = vpop.permute.xlu0 %1679 }
 0x2f1   : > { %v2072_v11 = vsel %vm2036_vm8, %v2029_v16, %v1680_v44  ;;  %v1945_v21 = vsel %vm1907_vm5, %v1902_v17, %v1220_v59  ;;  %v1774_v16 = vsel %vm1735_vm1, %v211_v56, %v7497_v7  ;;  %v7498_v59 = vld [vmem:[#allocation52_spill] sm:$0xff] }
 0x2f2   : > { %3862 = vmatmul.mubr.msk.f32.gmra.mrb[12].mxu1 %vm2084_vm9, %v2072_v11  ;;  %v1817_v44 = vsel %vm1778_vm2, %v1774_v16, %v7498_v59 }
 0x2f4   : > { %v886_v62 = vpop.permute.xlu1 %885  ;;  %v1346_v52 = vpop.permute.xlu0 %1345 }
 0x2f5   : > { %v1987_v63 = vsel %vm1950_vm6, %v1944_v24, %v1346_v52  ;;  %v1860_v11 = vsel %vm1821_vm3, %v1817_v44, %v886_v62  ;;  %v7499_v24 = vld [vmem:[#allocation26_spill] sm:$0xff]  ;;  %v7500_v62 = vld [vmem:[#allocation51_spill] sm:$0xff] }
 0x2f6   : > { %v1775_v54 = vsel %vm1735_vm1, %v212_v45, %v7499_v24 }
 0x2f8   : > { %v1514_v14 = vpop.permute.xlu1 %1513  ;;  %v1348_v3 = vpop.permute.xlu0 %1347 }
 0x2f9   : > { %v2030_v10 = vsel %vm1993_vm7, %v1987_v63, %v1514_v14  ;;  %v1988_v15 = vsel %vm1950_vm6, %v1945_v21, %v1348_v3  ;;  %v213_v21 = vld [vmem:[%s4223_s27 + $0x140] sm:$0xff] }
 0x2fc   : > { %v1054_v46 = vpop.permute.xlu1 %1053  ;;  %v888_v23 = vpop.permute.xlu0 %887 }
 0x2fd   : > { %v1903_v14 = vsel %vm1864_vm4, %v1860_v11, %v1054_v46  ;;  %v1818_v46 = vsel %vm1778_vm2, %v1775_v54, %v7500_v62  ;;  %v2490_v62 = vlaneseq }
 0x2fe   : > { %v1861_v63 = vsel %vm1821_vm3, %v1818_v46, %v888_v23  ;;  %v214_v23 = vld [vmem:[%s4223_s27 + $0x148] sm:$0xff]  ;;  %s161_s27 = sand.u32 1, %s4119_s10  }
 0x2ff   : > { %v5748_v46 = vshrl.u32 %v2490_v62, 7  ;;  %s3887_s30 = smul.u32 336, %s161_s27  ;;  %s7253_s12 = scalar_lea.sflag [#allocation3], %s161_s27 }
 0x300   : > { %v1682_v28 = vpop.permute.xlu1 %1681  ;;  %v1516_v40 = vpop.permute.xlu0 %1515 }
 0x301   : > { %v2073_v58 = vsel %vm2036_vm8, %v2030_v10, %v1682_v28  ;;  %v2031_v19 = vsel %vm1993_vm7, %v1988_v15, %v1516_v40  ;;  %s7041_s3 = scalar_lea.vmem [#allocation2], %s3887_s30 }
 0x302   : > { %3864 = vmatprep.mubr.msk.f32.mxu1 %vm2084_vm9, %v2073_v58  ;;  %s3572_s5 = sshll.u32 %s7041_s3, 4  ;;  %s7242_s5 = int_to_ptr.vmem [resolvable:$true] %s3572_s5 }
 0x303   : > { %s4057_s15 = scalar_lea.vmem %s7242_s5, 5376  ;;  %p4064_p1 = scmp.lt.s32.totalorder %s7242_s5, %s4062_s18 }
 0x304   : > { %v1222_v42 = vpop.permute.xlu1 %1221  ;;  %v1056_v4 = vpop.permute.xlu0 %1055  ;;  %p4058_p12 = scmp.ne.s32.totalorder %s7242_s5, %s4057_s15  ;;  %p4065_p2 = scmp.lt.s32.totalorder %s4063_s20, %s4057_s15 }
 0x305   : > { %v1946_v3 = vsel %vm1907_vm5, %v1903_v14, %v1222_v42  ;;  %v1904_v40 = vsel %vm1864_vm4, %v1861_v63, %v1056_v4  ;;  %v5751_v63 = vadd.s32 8, %v5748_v46 }
 0x306   : > { %v5684_v29 = vpop.f32.mrb[18].mxu0  ;;  %p4059_p13 = pnand %p4058_p12, %p4203_p4  ;;  %p4066_p3 = por %p4065_p2, %p4064_p1 }
 0x307   : > { %7495 = vst [vmem:[#allocation15_spill] sm:$0xff] %v5684_v29  ;;  %v5687_v47 = vpop.f32.mrb[19].mxu0 }
 0x308   : > { %7496 = vst [vmem:[#allocation40_spill] sm:$0xff] %v5687_v47  ;;  %v1224_v18 = vpop.permute.xlu1 %1223  ;;  %v1684_v20 = vpop.permute.xlu0 %1683  ;;  %p4060_p0 = pneg %p4059_p13 }
 0x309   : > { %v2074_v57 = vsel %vm2036_vm8, %v2031_v19, %v1684_v20  ;;  %v1947_v58 = vsel %vm1907_vm5, %v1904_v40, %v1224_v18  ;;  %v7503_v19 = vld [vmem:[#allocation28_spill] sm:$0xff]  ;;  %v7504_v20 = vld [vmem:[#allocation29_spill] sm:$0xff]  ;;  %v2534_v40 = vcvt.s32.f32 %v5751_v63 }
 0x30a   : > { %3865 = vmatmul.mubr.msk.f32.gmra.mrb[14].mxu1 %vm2084_vm9, %v2074_v57  ;;  %v1777_v18 = vsel %vm1735_vm1, %v214_v23, %v7503_v19  ;;  %v1776_v57 = vsel %vm1735_vm1, %v213_v21, %v7504_v20  ;;  %v5770_v23 = vadd.s32 32, %v5748_v46  ;;  %p4067_p5 = pnand %p4066_p3, %p4060_p0 }
 0x30c   : > { %v890_v2 = vpop.permute.xlu1 %889  ;;  %v1350_v32 = vpop.permute.xlu0 %1349 }
 0x30d   : > { %v1989_v61 = vsel %vm1950_vm6, %v1946_v3, %v1350_v32  ;;  %v7505_v32 = vld [vmem:[#allocation53_spill] sm:$0xff] }
 0x30e   : > { %v1820_v56 = vsel %vm1778_vm2, %v1777_v18, %v7505_v32  ;;  %v5779_v32 = vadd.s32 48, %v5748_v46 }
 0x310   : > { %v1518_v60 = vpop.permute.xlu1 %1517  ;;  %v1352_v26 = vpop.permute.xlu0 %1351 }
 0x311   : > { %v2032_v12 = vsel %vm1993_vm7, %v1989_v61, %v1518_v60  ;;  %v1990_v39 = vsel %vm1950_vm6, %v1947_v58, %v1352_v26  ;;  %v7506_v60 = vld [vmem:[#allocation54_spill] sm:$0xff]  ;;  %v5759_v58 = vadd.s32 24, %v5748_v46 }
 0x312   : > { %v1819_v26 = vsel %vm1778_vm2, %v1776_v57, %v7506_v60  ;;  %v2537_v57 = vcvt.s32.f32 %v5770_v23 }
 0x313   : > { %v1862_v7 = vsel %vm1821_vm3, %v1819_v26, %v890_v2 }
 0x314   : > { %v1058_v52 = vpop.permute.xlu1 %1057  ;;  %v892_v25 = vpop.permute.xlu0 %891 }
 0x315   : > { %v1863_v16 = vsel %vm1821_vm3, %v1820_v56, %v892_v25  ;;  %v1905_v11 = vsel %vm1864_vm4, %v1862_v7, %v1058_v52 }
 0x318   : > { %v1686_v6 = vpop.permute.xlu1 %1685  ;;  %v1520_v38 = vpop.permute.xlu0 %1519 }
 0x319   : > { %v2075_v51 = vsel %vm2036_vm8, %v2032_v12, %v1686_v6  ;;  %v2033_v53 = vsel %vm1993_vm7, %v1990_v39, %v1520_v38  ;;  %v2533_v39 = vcvt.s32.f32 %v5748_v46 }
 0x31a   : > { %3867 = vmatprep.mubr.msk.f32.mxu1 %vm2084_vm9, %v2075_v51 }
 0x31b   : > { %v2575_v21 = vadd.f32 0.5, %v2533_v39 }
 0x31c   : > { %v1226_v10 = vpop.permute.xlu1 %1225  ;;  %v1060_v28 = vpop.permute.xlu0 %1059 }
 0x31d   : > { %v1906_v14 = vsel %vm1864_vm4, %v1863_v16, %v1060_v28  ;;  %v1948_v3 = vsel %vm1907_vm5, %v1905_v11, %v1226_v10  ;;  %v2617_v56 = vmul.f32 0.055555556, %v2575_v21  ;;  %v2539_v11 = vcvt.s32.f32 %v5779_v32 }
 0x31e   : > { %v5712_v0 = vpop.f32.mrb[20].mxu0 }
 0x31f   : > { %7501 = vst [vmem:[#allocation14_spill] sm:$0xff] %v5712_v0  ;;  %v5715_v9 = vpop.f32.mrb[21].mxu0 }
 0x320   : > { %7502 = vst [vmem:[#allocation39_spill] sm:$0xff] %v5715_v9  ;;  %v1228_v43 = vpop.permute.xlu1 %1227  ;;  %v1688_v42 = vpop.permute.xlu0 %1687 }
 0x321   : > { %v2076_v17 = vsel %vm2036_vm8, %v2033_v53, %v1688_v42  ;;  %v1949_v45 = vsel %vm1907_vm5, %v1906_v14, %v1228_v43  ;;  %v5763_v53 = vadd.s32 16, %v5748_v46  ;;  %v2576_v43 = vadd.f32 0.5, %v2534_v40 }
 0x322   : > { %3868 = vmatmul.mubr.msk.f32.gmra.mrb[16].mxu1 %vm2084_vm9, %v2076_v17  ;;  %v2536_v42 = vcvt.s32.f32 %v5759_v58  ;;  %v5767_v17 = vadd.s32 40, %v5748_v46  ;;  %v2659_v14 = vfloor.f32 %v2617_v56  ;;  %v5796_v56 = vadd.s32 88, %v5748_v46 }
 0x323   : > { %v2618_v19 = vmul.f32 0.055555556, %v2576_v43 }
 0x324   : > { %v1356_v15 = vpop.permute.xlu1 %1355  ;;  %v1354_v4 = vpop.permute.xlu0 %1353  ;;  %v2578_v18 = vadd.f32 0.5, %v2536_v42  ;;  %v2538_v20 = vcvt.s32.f32 %v5767_v17 }
 0x325   : > { %v1992_v61 = vsel %vm1950_vm6, %v1949_v45, %v1356_v15  ;;  %v1991_v12 = vsel %vm1950_vm6, %v1948_v3, %v1354_v4  ;;  %v2535_v15 = vcvt.s32.f32 %v5763_v53  ;;  %v5774_v4 = vadd.s32 56, %v5748_v46 }
 0x326   : > { %v2660_v7 = vfloor.f32 %v2618_v19  ;;  %v2620_v16 = vmul.f32 0.055555556, %v2578_v18 }
 0x327   : > { %v2577_v60 = vadd.f32 0.5, %v2535_v15  ;;  %v2540_v26 = vcvt.s32.f32 %v5774_v4 }
 0x328   : > { %v1524_v59 = vpop.permute.xlu1 %1523  ;;  %v1522_v44 = vpop.permute.xlu0 %1521 }
 0x329   : > { %v2035_v6 = vsel %vm1993_vm7, %v1992_v61, %v1524_v59  ;;  %v2034_v2 = vsel %vm1993_vm7, %v1991_v12, %v1522_v44  ;;  %v2580_v59 = vadd.f32 0.5, %v2538_v20  ;;  %v2579_v44 = vadd.f32 0.5, %v2537_v57 }
 0x32a   : > { %v2619_v3 = vmul.f32 0.055555556, %v2577_v60  ;;  %v2582_v45 = vadd.f32 0.5, %v2540_v26  ;;  %v5784_v61 = vadd.s32 72, %v5748_v46  ;;  %v3891_v12 = vtrunc.f32 %v2660_v7 }
 0x32c   : > { %v1692_v38 = vpop.permute.xlu1 %1691  ;;  %v1690_v25 = vpop.permute.xlu0 %1689  ;;  %v2661_v62 = vfloor.f32 %v2619_v3  ;;  %v2624_v40 = vmul.f32 0.055555556, %v2582_v45  ;;  %v2542_v39 = vcvt.s32.f32 %v5784_v61  ;;  %v3892_v43 = vcvt.f32.s32 %v3891_v12 }
 0x32d   : > { %v2078_v51 = vsel %vm2036_vm8, %v2035_v6, %v1692_v38  ;;  %v2077_v52 = vsel %vm2036_vm8, %v2034_v2, %v1690_v25  ;;  %v2662_v6 = vfloor.f32 %v2620_v16  ;;  %v2622_v2 = vmul.f32 0.055555556, %v2580_v59 }
 0x32e   : > { %3870 = vmatprep.mubr.msk.f32.mxu1 %vm2084_vm9, %v2077_v52  ;;  %v5787_v38 = vadd.s32 64, %v5748_v46  ;;  %v2621_v25 = vmul.f32 0.055555556, %v2579_v44  ;;  %v3889_v52 = vtrunc.f32 %v2659_v14  ;;  %v3893_v26 = vtrunc.f32 %v2661_v62 }
 0x32f   : > { %3871 = vmatmul.mubr.msk.f32.gmra.mrb[18].mxu1 %vm2084_vm9, %v2078_v51  ;;  %v2581_v51 = vadd.f32 0.5, %v2539_v11  ;;  %v3895_v21 = vtrunc.f32 %v2662_v6  ;;  %v2664_v15 = vfloor.f32 %v2622_v2  ;;  %v2666_v7 = vfloor.f32 %v2624_v40 }
 0x330   : > { %v2541_v19 = vcvt.s32.f32 %v5787_v38  ;;  %v2663_v20 = vfloor.f32 %v2621_v25  ;;  %v3890_v60 = vcvt.f32.s32 %v3889_v52  ;;  %v2584_v16 = vadd.f32 0.5, %v2542_v39 }
 0x331   : > { %v2623_v57 = vmul.f32 0.055555556, %v2581_v51  ;;  %v2744_v59 = vmul.u32 18, %v3892_v43  ;;  %v5799_v44 = vadd.s32 80, %v5748_v46  ;;  %v3896_v11 = vcvt.f32.s32 %v3895_v21 }
 0x332   : > { %v5801_v14 = vtrunc.f32 %v2664_v15  ;;  %v2583_v3 = vadd.f32 0.5, %v2541_v19  ;;  %v5803_v45 = vtrunc.f32 %v2663_v20  ;;  %v2544_v6 = vcvt.s32.f32 %v5796_v56 }
 0x333   : > { %v2665_v12 = vfloor.f32 %v2623_v57  ;;  %v5807_v2 = vadd.s32 104, %v5748_v46  ;;  %v2743_v25 = vmul.u32 18, %v3890_v60  ;;  %v3894_v51 = vcvt.f32.s32 %v3893_v26 }
 0x334   : > { %v5809_v52 = vtrunc.f32 %v2666_v7  ;;  %v2626_v62 = vmul.f32 0.055555556, %v2584_v16  ;;  %v2786_v40 = vsub.s32 %v5751_v63, %v2744_v59  ;;  %v2543_v39 = vcvt.s32.f32 %v5799_v44 }
 0x335   : > { %v5814_v21 = vadd.s32 96, %v5748_v46  ;;  %v2746_v15 = vmul.u32 18, %v3896_v11  ;;  %v3900_v19 = vcvt.f32.s32 %v5801_v14  ;;  %v2625_v20 = vmul.f32 0.055555556, %v2583_v3 }
 0x336   : > { %v5744_v24 = vpop.f32.mrb[0].mxu1  ;;  %v3898_v57 = vcvt.f32.s32 %v5803_v45  ;;  %v2546_v26 = vcvt.s32.f32 %v5807_v2  ;;  %v2785_v7 = vsub.s32 %v5748_v46, %v2743_v25  ;;  %v2745_v16 = vmul.u32 18, %v3894_v51 }
 0x337   : > { %7507 = vst [vmem:[#allocation17_spill] sm:$0xff] %v5744_v24  ;;  %v5746_v54 = vpop.f32.mrb[1].mxu1  ;;  %v3904_v63 = vcvt.f32.s32 %v5809_v52  ;;  %v2668_v59 = vfloor.f32 %v2626_v62  ;;  %vm5823_vm10 = vcmp.lt.s32.totalorder %v3892_v43, 16  ;;  %vm5827_vm11 = vcmp.lt.s32.totalorder %v2786_v40, 16 }
 0x338   : > { %7508 = vst [vmem:[#allocation42_spill] sm:$0xff] %v5746_v54  ;;  %v2585_v3 = vadd.f32 0.5, %v2543_v39  ;;  %v2545_v45 = vcvt.s32.f32 %v5814_v21  ;;  %v2747_v25 = vmul.u32 18, %v3898_v57  ;;  %v2588_v62 = vadd.f32 0.5, %v2546_v26  ;;  %vm2996_vm15 = vmand %vm5823_vm10, %vm5827_vm11 }
 0x339   : > { %vm5834_vm12 = vcmp.lt.s32.totalorder %v3890_v60, 16  ;;  %v2787_v40 = vsub.s32 %v5763_v53, %v2745_v16  ;;  %v2750_v54 = vmul.u32 18, %v3904_v63  ;;  %v5839_v0 = vtrunc.f32 %v2668_v59 }
 0x33a   : > { %vm5841_vm13 = vcmp.lt.s32.totalorder %v2785_v7, 16  ;;  %vm5845_vm14 = vcmp.lt.s32.totalorder %v3896_v11, 16  ;;  %vm5857_vm1 = vcmp.lt.s32.totalorder %v3894_v51, 16  ;;  %v2630_v16 = vmul.f32 0.055555556, %v2588_v62 }
 0x33b   : > { %vm5865_vm2 = vcmp.lt.s32.totalorder %v2787_v40, 16  ;;  %v2792_v59 = vsub.s32 %v5774_v4, %v2750_v54  ;;  %v3908_v51 = vcvt.f32.s32 %v5839_v0  ;;  %v5872_v14 = vadd.s32 120, %v5748_v46  ;;  %vm2995_vm3 = vmand %vm5834_vm12, %vm5841_vm13 }
 0x33c   : > { %vm5888_vm5 = vcmp.lt.s32.totalorder %v3900_v19, 16  ;;  %vm5896_vm7 = vcmp.lt.s32.totalorder %v3898_v57, 16  ;;  %vm2997_vm8 = vmand %vm5857_vm1, %vm5865_vm2  ;;  %vm5912_vm10 = vcmp.lt.s32.totalorder %v3904_v63, 16 }
 0x33d   : > { %vm5916_vm11 = vcmp.lt.s32.totalorder %v2792_v59, 16  ;;  %v2752_v40 = vmul.u32 18, %v3908_v51  ;;  %vm6018_vm2 = vcmp.lt.s32.totalorder %v3908_v51, 16 }
 0x33e   : > { %vm3002_vm13 = vmand %vm5912_vm10, %vm5916_vm11 }
 0x33f   : > { %v2794_v59 = vsub.s32 %v5784_v61, %v2752_v40 }
 0x34e   : > { %v5753_v10 = vpop.f32.mrb[2].mxu1 }
 0x34f   : > { %7509 = vst [vmem:[#allocation16_spill] sm:$0xff] %v5753_v10  ;;  %v5755_v28 = vpop.f32.mrb[3].mxu1 }
 0x350   : > { %7510 = vst [vmem:[#allocation41_spill] sm:$0xff] %v5755_v28  ;;  %v2667_v28 = vfloor.f32 %v2625_v20  ;;  %v2789_v20 = vsub.s32 %v5770_v23, %v2747_v25 }
 0x352   : > { %vm5905_vm9 = vcmp.lt.s32.totalorder %v2789_v20, 16 }
 0x353   : > { %vm2999_vm12 = vmand %vm5896_vm7, %vm5905_vm9 }
 0x366   : > { %v5790_v42 = vpop.f32.mrb[4].mxu1 }
 0x367   : > { %7511 = vst [vmem:[#allocation19_spill] sm:$0xff] %v5790_v42  ;;  %v5793_v18 = vpop.f32.mrb[5].mxu1  ;;  %v5818_v42 = vtrunc.f32 %v2665_v12  ;;  %v2788_v12 = vsub.s32 %v5759_v58, %v2746_v15  ;;  %v5862_v15 = vtrunc.f32 %v2667_v28 }
 0x368   : > { %7512 = vst [vmem:[#allocation44_spill] sm:$0xff] %v5793_v18  ;;  %v2586_v18 = vadd.f32 0.5, %v2544_v6  ;;  %v2748_v6 = vmul.u32 18, %v3900_v19  ;;  %v6016_v19 = vadd.s32 144, %v5748_v46 }
 0x369   : > { %v3902_v24 = vcvt.f32.s32 %v5818_v42  ;;  %v2627_v42 = vmul.f32 0.055555556, %v2585_v3  ;;  %vm5853_vm0 = vcmp.lt.s32.totalorder %v2788_v12, 16  ;;  %v7312_v3 = vmov 0.0  }
 0x36a   : > { %v2628_v52 = vmul.f32 0.055555556, %v2586_v18  ;;  %v2587_v18 = vadd.f32 0.5, %v2545_v45  ;;  %v2790_v11 = vsub.s32 %v5767_v17, %v2748_v6  ;;  %v5875_v28 = vsel %vm2996_vm15, 1.0, %v7312_v3  ;;  %vm2998_vm4 = vmand %vm5845_vm14, %vm5853_vm0 }
 0x36b   : > { %v2749_v26 = vmul.u32 18, %v3902_v24  ;;  %7529 = vst [vmem:[#allocation18_spill] sm:$0xff] %v5875_v28  ;;  %v2669_v17 = vfloor.f32 %v2627_v42  ;;  %v5882_v45 = vadd.s32 112, %v5748_v46  ;;  %v3906_v12 = vcvt.f32.s32 %v5862_v15 }
 0x36c   : > { %v2670_v7 = vfloor.f32 %v2628_v52  ;;  %v2629_v23 = vmul.f32 0.055555556, %v2587_v18  ;;  %vm5892_vm6 = vcmp.lt.s32.totalorder %v2790_v11, 16  ;;  %v2672_v52 = vfloor.f32 %v2630_v16 }
 0x36d   : > { %v2791_v6 = vsub.s32 %v5779_v32, %v2749_v26  ;;  %v2548_v42 = vcvt.s32.f32 %v5872_v14  ;;  %vm3000_vm15 = vmand %vm5888_vm5, %vm5892_vm6  ;;  %v5925_v32 = vtrunc.f32 %v2669_v17  ;;  %v2547_v63 = vcvt.s32.f32 %v5882_v45 }
 0x36e   : > { %v5910_v25 = vtrunc.f32 %v2670_v7  ;;  %v2671_v18 = vfloor.f32 %v2629_v23  ;;  %v5929_v11 = vadd.s32 136, %v5748_v46  ;;  %v5939_v20 = vsel %vm2995_vm3, 1.0, %v7312_v3 }
 0x36f   : > { %7543 = vst [vmem:[#allocation21_spill] sm:$0xff] %v5939_v20  ;;  %v5947_v26 = vsel %vm2998_vm4, 1.0, %v7312_v3  ;;  %v5955_v43 = vsel %vm2997_vm8, 1.0, %v7312_v3  ;;  %v2751_v39 = vmul.u32 18, %v3906_v12  ;;  %vm5967_vm14 = vcmp.lt.s32.totalorder %v3902_v24, 16 }
 0x370   : > { %7544 = vst [vmem:[#allocation46_spill] sm:$0xff] %v5955_v43  ;;  %v3912_v60 = vcvt.f32.s32 %v5910_v25  ;;  %v5972_v7 = vtrunc.f32 %v2672_v52  ;;  %v5975_v16 = vadd.s32 128, %v5748_v46  ;;  %vm5977_vm0 = vcmp.lt.s32.totalorder %v2791_v6, 16 }
 0x371   : > { %v2590_v17 = vadd.f32 0.5, %v2548_v42  ;;  %v5983_v23 = vadd.s32 152, %v5748_v46  ;;  %v3910_v24 = vcvt.f32.s32 %v5925_v32  ;;  %v5986_v57 = vtrunc.f32 %v2671_v18  ;;  %vm3001_vm1 = vmand %vm5967_vm14, %vm5977_vm0 }
 0x372   : > { %v2589_v25 = vadd.f32 0.5, %v2547_v63  ;;  %v2550_v52 = vcvt.s32.f32 %v5929_v11  ;;  %v5995_v6 = vsel %vm3000_vm15, 1.0, %v7312_v3  ;;  %v6003_v61 = vsel %vm2999_vm12, 1.0, %v7312_v3 }
 0x373   : > { %7550 = vst [vmem:[#allocation45_spill] sm:$0xff] %v5995_v6  ;;  %v6006_v62 = vsel %vm3002_vm13, 1.0, %v7312_v3  ;;  %v2793_v40 = vsub.s32 %v5787_v38, %v2751_v39  ;;  %v2754_v0 = vmul.u32 18, %v3912_v60  ;;  %v3916_v54 = vcvt.f32.s32 %v5972_v7 }
 0x374   : > { %7551 = vst [vmem:[#allocation23_spill] sm:$0xff] %v6006_v62  ;;  %v2549_v4 = vcvt.s32.f32 %v5975_v16  ;;  %vm6022_vm3 = vcmp.lt.s32.totalorder %v2794_v59, 16  ;;  %v2632_v38 = vmul.f32 0.055555556, %v2590_v17  ;;  %v2552_v18 = vcvt.s32.f32 %v5983_v23 }
 0x375   : > { %v2753_v63 = vmul.u32 18, %v3910_v24  ;;  %v3914_v39 = vcvt.f32.s32 %v5986_v57  ;;  %v2631_v53 = vmul.f32 0.055555556, %v2589_v25  ;;  %v2592_v7 = vadd.f32 0.5, %v2550_v52  ;;  %vm3004_vm5 = vmand %vm6018_vm2, %vm6022_vm3 }
 0x376   : > { %v6030_v10 = vmul.f32 %v5270_v31, %v5875_v28  ;;  %v6034_v51 = vmul.f32 %v5939_v20, %v5275_v1  ;;  %v6037_v59 = vsel %vm3001_vm1, 1.0, %v7312_v3  ;;  %vm6039_vm4 = vcmp.lt.s32.totalorder %v3906_v12, 16 }
 0x377   : > { %7558 = vst [vmem:[#allocation47_spill] sm:$0xff] %v6037_v59  ;;  %v2796_v57 = vsub.s32 %v5796_v56, %v2754_v0  ;;  %v2756_v25 = vmul.u32 18, %v3916_v54  ;;  %v2591_v52 = vadd.f32 0.5, %v2549_v4  ;;  %v2551_v31 = vcvt.s32.f32 %v6016_v19 }
 0x378   : > { %7556 = vst [vmem:[#allocation48_spill] sm:$0xff] %v6030_v10  ;;  %7557 = vst [vmem:[#allocation22_spill] sm:$0xff] %v6034_v51  ;;  %v6051_v1 = vmul.f32 %v5955_v43, %v5331_v8  ;;  %vm6053_vm6 = vcmp.lt.s32.totalorder %v2793_v40, 16  ;;  %v2674_v3 = vfloor.f32 %v2632_v38  ;;  %v2594_v28 = vadd.f32 0.5, %v2552_v18 }
 0x379   : > { %v2795_v32 = vsub.s32 %v5799_v44, %v2753_v63  ;;  %v2755_v42 = vmul.u32 18, %v3914_v39  ;;  %v2673_v20 = vfloor.f32 %v2631_v53  ;;  %v3163_v56 = vadd.f32 %v6030_v10, %v6034_v51  ;;  %vm3003_vm11 = vmand %vm6039_vm4, %vm6053_vm6 }
 0x37a   : > { %7561 = vst [vmem:[#allocation25_spill] sm:$0xff] %v6051_v1  ;;  %v7564_v0 = vmov 0.0   ;;  %vm6063_vm7 = vcmp.lt.s32.totalorder %v3912_v60, 16  ;;  %v6068_v40 = vadd.s32 160, %v5748_v46  ;;  %vm6070_vm8 = vcmp.lt.s32.totalorder %v2796_v57, 16 }
 0x37b   : > { %v6061_v4 = vsel %vm3004_vm5, 1.0, %v7564_v0  ;;  %v2798_v44 = vsub.s32 %v5807_v2, %v2756_v25  ;;  %v2633_v18 = vmul.f32 0.055555556, %v2591_v52  ;;  %v2593_v63 = vadd.f32 0.5, %v2551_v31  ;;  %vm3006_vm12 = vmand %vm6063_vm7, %vm6070_vm8 }
 0x37c   : > { %v3164_v53 = vadd.f32 %v3163_v56, %v6051_v1  ;;  %vm6076_vm9 = vcmp.lt.s32.totalorder %v3910_v24, 16  ;;  %v6080_v60 = vtrunc.f32 %v2674_v3  ;;  %v2636_v10 = vmul.f32 0.055555556, %v2594_v28 }
 0x37d   : > { %vm6082_vm10 = vcmp.lt.s32.totalorder %v2795_v32, 16  ;;  %v2797_v57 = vsub.s32 %v5814_v21, %v2755_v42  ;;  %v6087_v43 = vtrunc.f32 %v2673_v20  ;;  %v6091_v31 = vmul.f32 %v5326_v22, %v5947_v26 }
 0x37e   : > { %v5931_v15 = vpop.f32.mrb[6].mxu1  ;;  %v6095_v24 = vmul.f32 %v6003_v61, %v5387_v48  ;;  %vm6101_vm15 = vcmp.lt.s32.totalorder %v3916_v54, 16  ;;  %v2553_v21 = vcvt.s32.f32 %v6068_v40  ;;  %vm6110_vm13 = vcmp.lt.s32.totalorder %v2798_v44, 16  ;;  %vm3005_vm14 = vmand %vm6076_vm9, %vm6082_vm10 }
 0x37f   : > { %7542 = vst [vmem:[#allocation43_spill] sm:$0xff] %v5931_v15  ;;  %v5961_v58 = vpop.f32.mrb[7].mxu1  ;;  %v2634_v15 = vmul.f32 0.055555556, %v2592_v7  ;;  %7573 = vst [vmem:[#allocation50_spill] sm:$0xff] %v6091_v31  ;;  %v6115_v25 = vadd.s32 168, %v5748_v46  ;;  %v3165_v54 = vadd.f32 %v3164_v53, %v6091_v31  ;;  %v3920_v32 = vcvt.f32.s32 %v6080_v60 }
 0x380   : > { %7545 = vst [vmem:[#allocation20_spill] sm:$0xff] %v5961_v58  ;;  %7574 = vst [vmem:[#allocation24_spill] sm:$0xff] %v6095_v24  ;;  %v2635_v20 = vmul.f32 0.055555556, %v2593_v63  ;;  %vm6122_vm0 = vcmp.lt.s32.totalorder %v3914_v39, 16  ;;  %v2678_v42 = vfloor.f32 %v2636_v10  ;;  %vm6127_vm1 = vcmp.lt.s32.totalorder %v2797_v57, 16 }
 0x381   : > { %v2676_v2 = vfloor.f32 %v2634_v15  ;;  %v2675_v15 = vfloor.f32 %v2633_v18  ;;  %v3918_v44 = vcvt.f32.s32 %v6087_v43  ;;  %v6133_v63 = vadd.s32 184, %v5748_v46  ;;  %vm3008_vm2 = vmand %vm6101_vm15, %vm6110_vm13 }
 0x382   : > { %v3166_v51 = vadd.f32 %v3165_v54, %v6095_v24  ;;  %v6142_v39 = vsel %vm3003_vm11, 1.0, %v7564_v0  ;;  %v6150_v43 = vsel %vm3006_vm12, 1.0, %v7564_v0  ;;  %v2595_v10 = vadd.f32 0.5, %v2553_v21  ;;  %vm3007_vm3 = vmand %vm6122_vm0, %vm6127_vm1 }
 0x383   : > { %v3923_v18 = vtrunc.f32 %v2676_v2  ;;  %7583 = vst [vmem:[#allocation49_spill] sm:$0xff] %v6142_v39  ;;  %v6153_v53 = vsel %vm3005_vm14, 1.0, %v7564_v0  ;;  %v6159_v17 = vtrunc.f32 %v2675_v15  ;;  %v2677_v12 = vfloor.f32 %v2635_v20 }
 0x384   : > { %v2554_v7 = vcvt.s32.f32 %v6115_v25  ;;  %v6164_v8 = vmul.f32 %v5382_v41, %v5995_v6  ;;  %v6168_v38 = vmul.f32 %v6037_v59, %v5443_v33  ;;  %v2758_v60 = vmul.u32 18, %v3920_v32 }
 0x385   : > { %v6174_v57 = vtrunc.f32 %v2678_v42  ;;  %v2757_v21 = vmul.u32 18, %v3918_v44  ;;  %v3924_v15 = vcvt.f32.s32 %v3923_v18  ;;  %v2556_v20 = vcvt.s32.f32 %v6133_v63 }
 0x386   : > { %7584 = vst [vmem:[#allocation27_spill] sm:$0xff] %v6164_v8  ;;  %7585 = vst [vmem:[#allocation52_spill] sm:$0xff] %v6168_v38  ;;  %v6180_v54 = vadd.s32 176, %v5748_v46  ;;  %v3167_v33 = vadd.f32 %v3166_v51, %v6164_v8  ;;  %v6191_v52 = vsel %vm3008_vm2, 1.0, %v7564_v0  ;;  %v2637_v42 = vmul.f32 0.055555556, %v2595_v10 }
 0x387   : > { %v6194_v56 = vadd.s32 200, %v5748_v46  ;;  %v6197_v18 = vsel %vm3007_vm3, 1.0, %v7564_v0  ;;  %v3922_v48 = vcvt.f32.s32 %v6159_v17  ;;  %v6200_v22 = vtrunc.f32 %v2677_v12 }
 0x388   : > { %v2596_v51 = vadd.f32 0.5, %v2554_v7  ;;  %v3168_v8 = vadd.f32 %v3167_v33, %v6168_v38  ;;  %v2800_v3 = vsub.s32 %v5872_v14, %v2758_v60  ;;  %v3928_v28 = vcvt.f32.s32 %v6174_v57 }
 0x389   : > { %v6206_v24 = vadd.s32 192, %v5748_v46  ;;  %v2799_v10 = vsub.s32 %v5882_v45, %v2757_v21  ;;  %v2760_v59 = vmul.u32 18, %v3924_v15  ;;  %v2598_v31 = vadd.f32 0.5, %v2556_v20 }
 0x38a   : > { %v2555_v6 = vcvt.s32.f32 %v6180_v54  ;;  %v6212_v17 = vmul.f32 %v5438_v36, %v6006_v62  ;;  %v6216_v33 = vmul.f32 %v6142_v39, %v5499_v50  ;;  %v2679_v14 = vfloor.f32 %v2637_v42 }
 0x38b   : > { %v2558_v12 = vcvt.s32.f32 %v6194_v56  ;;  %vm6219_vm4 = vcmp.lt.s32.totalorder %v3920_v32, 16  ;;  %v2759_v45 = vmul.u32 18, %v3922_v48  ;;  %v3926_v60 = vcvt.f32.s32 %v6200_v22 }
 0x38c   : > { %7588 = vst [vmem:[#allocation28_spill] sm:$0xff] %v6212_v17  ;;  %v2638_v57 = vmul.f32 0.055555556, %v2596_v51  ;;  %v3169_v21 = vadd.f32 %v3168_v8, %v6212_v17  ;;  %vm6225_vm5 = vcmp.lt.s32.totalorder %v2800_v3, 16  ;;  %v2762_v36 = vmul.u32 18, %v3928_v28 }
 0x38d   : > { %v2557_v50 = vcvt.s32.f32 %v6206_v24  ;;  %vm6230_vm6 = vcmp.lt.s32.totalorder %v3918_v44, 16  ;;  %v2802_v32 = vsub.s32 %v5929_v11, %v2760_v59  ;;  %v2640_v38 = vmul.f32 0.055555556, %v2598_v31  ;;  %vm3010_vm11 = vmand %vm6219_vm4, %vm6225_vm5 }
 0x38e   : > { %v2597_v39 = vadd.f32 0.5, %v2555_v6  ;;  %v3170_v22 = vadd.f32 %v3169_v21, %v6216_v33  ;;  %vm6236_vm7 = vcmp.lt.s32.totalorder %v2799_v10, 16  ;;  %v6240_v8 = vtrunc.f32 %v2679_v14 }
 0x38f   : > { %v2600_v3 = vadd.f32 0.5, %v2558_v12  ;;  %vm6242_vm8 = vcmp.lt.s32.totalorder %v3924_v15, 16  ;;  %v2801_v44 = vsub.s32 %v5975_v16, %v2759_v45  ;;  %v2761_v62 = vmul.u32 18, %v3926_v60  ;;  %vm3009_vm12 = vmand %vm6230_vm6, %vm6236_vm7 }
 0x390   : > { %v2680_v1 = vfloor.f32 %v2638_v57  ;;  %v6249_v11 = vmul.f32 %v5494_v34, %v6061_v4  ;;  %v6253_v6 = vmul.f32 %v6153_v53, %v5555_v55  ;;  %v2804_v59 = vsub.s32 %v5983_v23, %v2762_v36 }
 0x391   : > { %v2599_v31 = vadd.f32 0.5, %v2557_v50  ;;  %vm6256_vm9 = vcmp.lt.s32.totalorder %v2802_v32, 16  ;;  %v2682_v10 = vfloor.f32 %v2640_v38  ;;  %v2639_v14 = vmul.f32 0.055555556, %v2597_v39 }
 0x392   : > { %v6261_v16 = vadd.s32 216, %v5748_v46  ;;  %v3171_v12 = vadd.f32 %v3170_v22, %v6249_v11  ;;  %vm6264_vm10 = vcmp.lt.s32.totalorder %v3922_v48, 16  ;;  %v3930_v57 = vcvt.f32.s32 %v6240_v8  ;;  %vm3012_vm0 = vmand %vm6242_vm8, %vm6256_vm9 }
 0x393   : > { %v2642_v21 = vmul.f32 0.055555556, %v2600_v3  ;;  %vm6273_vm15 = vcmp.lt.s32.totalorder %v2801_v44, 16  ;;  %v2803_v50 = vsub.s32 %v6016_v19, %v2761_v62  ;;  %v3931_v23 = vtrunc.f32 %v2680_v1 }
 0x394   : > { %v6279_v48 = vadd.s32 208, %v5748_v46  ;;  %v3172_v39 = vadd.f32 %v3171_v12, %v6253_v6  ;;  %vm6286_vm13 = vcmp.lt.s32.totalorder %v3928_v28, 16  ;;  %vm6290_vm14 = vcmp.lt.s32.totalorder %v2804_v59, 16  ;;  %vm3011_vm1 = vmand %vm6264_vm10, %vm6273_vm15 }
 0x395   : > { %v6176_v2 = vpop.f32.mrb[8].mxu1  ;;  %v2641_v62 = vmul.f32 0.055555556, %v2599_v31  ;;  %v6298_v1 = vtrunc.f32 %v2682_v10  ;;  %v2681_v19 = vfloor.f32 %v2639_v14  ;;  %v2560_v42 = vcvt.s32.f32 %v6261_v16  ;;  %vm3014_vm3 = vmand %vm6286_vm13, %vm6290_vm14 }
 0x396   : > { %7586 = vst [vmem:[#allocation26_spill] sm:$0xff] %v6176_v2  ;;  %v6182_v41 = vpop.f32.mrb[9].mxu1  ;;  %v6302_v28 = vadd.s32 224, %v5748_v46  ;;  %v6306_v22 = vmul.f32 %v5550_v30, %v6150_v43  ;;  %v6310_v51 = vmul.f32 %v6197_v18, %v5603_v35  ;;  %v2763_v8 = vmul.u32 18, %v3930_v57 }
 0x397   : > { %7587 = vst [vmem:[#allocation51_spill] sm:$0xff] %v6182_v41  ;;  %v2684_v3 = vfloor.f32 %v2642_v21  ;;  %v6318_v17 = vsel %vm3010_vm11, 1.0, %v7564_v0  ;;  %v6321_v44 = vsel %vm3009_vm12, 1.0, %v7564_v0  ;;  %v3932_v59 = vcvt.f32.s32 %v3931_v23 }
 0x398   : > { %7609 = vst [vmem:[#allocation29_spill] sm:$0xff] %v6318_v17  ;;  %v2559_v31 = vcvt.s32.f32 %v6279_v48  ;;  %v3173_v15 = vadd.f32 %v3172_v39, %v6306_v22  ;;  %v6326_v10 = vsel %vm3012_vm0, 1.0, %v7564_v0  ;;  %vm6332_vm2 = vcmp.lt.s32.totalorder %v3926_v60, 16 }
 0x399   : > { %v2683_v20 = vfloor.f32 %v2641_v62  ;;  %v3936_v14 = vcvt.f32.s32 %v6298_v1  ;;  %v3933_v12 = vtrunc.f32 %v2681_v19  ;;  %v2602_v21 = vadd.f32 0.5, %v2560_v42 }
 0x39a   : > { %v2561_v23 = vcvt.s32.f32 %v6302_v28  ;;  %v3174_v36 = vadd.f32 %v3173_v15, %v6310_v51  ;;  %vm6343_vm4 = vcmp.lt.s32.totalorder %v2803_v50, 16  ;;  %v2805_v60 = vsub.s32 %v6068_v40, %v2763_v8 }
 0x39b   : > { %v6348_v39 = vtrunc.f32 %v2684_v3  ;;  %v6351_v32 = vsel %vm3011_vm1, 1.0, %v7564_v0  ;;  %v2764_v38 = vmul.u32 18, %v3932_v59  ;;  %v2601_v62 = vadd.f32 0.5, %v2559_v31  ;;  %vm3013_vm5 = vmand %vm6332_vm2, %vm6343_vm4 }
 0x39c   : > { %7614 = vst [vmem:[#allocation53_spill] sm:$0xff] %v6351_v32  ;;  %v6354_v1 = vadd.s32 232, %v5748_v46  ;;  %v6358_v19 = vmul.f32 %v5600_v49, %v6191_v52  ;;  %v6362_v50 = vmul.f32 %v6321_v44, %v5631_v37  ;;  %v6365_v40 = vsel %vm3014_vm3, 1.0, %v7564_v0 }
 0x39d   : > { %7617 = vst [vmem:[#allocation56_spill] sm:$0xff] %v6365_v40  ;;  %v6367_v42 = vtrunc.f32 %v2683_v20  ;;  %v2766_v3 = vmul.u32 18, %v3936_v14  ;;  %v3934_v31 = vcvt.f32.s32 %v3933_v12  ;;  %v2644_v15 = vmul.f32 0.055555556, %v2602_v21 }
 0x39e   : > { %7615 = vst [vmem:[#allocation54_spill] sm:$0xff] %v6358_v19  ;;  %7616 = vst [vmem:[#allocation55_spill] sm:$0xff] %v6362_v50  ;;  %v2603_v49 = vadd.f32 0.5, %v2561_v23  ;;  %v3175_v37 = vadd.f32 %v3174_v36, %v6358_v19  ;;  %vm6378_vm6 = vcmp.lt.s32.totalorder %v3930_v57, 16  ;;  %vm6382_vm7 = vcmp.lt.s32.totalorder %v2805_v60, 16 }
 0x39f   : > { %v3940_v45 = vcvt.f32.s32 %v6348_v39  ;;  %v2806_v7 = vsub.s32 %v6115_v25, %v2764_v38  ;;  %v2643_v55 = vmul.f32 0.055555556, %v2601_v62  ;;  %v2562_v12 = vcvt.s32.f32 %v6354_v1  ;;  %vm3015_vm9 = vmand %vm6378_vm6, %vm6382_vm7 }
 0x3a0   : > { %v6390_v21 = vadd.s32 240, %v5748_v46  ;;  %v3176_v23 = vadd.f32 %v3175_v37, %v6362_v50  ;;  %v6394_v57 = vsel %vm3013_vm5, 1.0, %v7564_v0  ;;  %vm6396_vm8 = vcmp.lt.s32.totalorder %v3932_v59, 16 }
 0x3a1   : > { %v3938_v60 = vcvt.f32.s32 %v6367_v42  ;;  %v2808_v25 = vsub.s32 %v6133_v63, %v2766_v3  ;;  %v2765_v39 = vmul.u32 18, %v3934_v31  ;;  %v2686_v38 = vfloor.f32 %v2644_v15 }
 0x3a2   : > { %v2645_v62 = vmul.f32 0.055555556, %v2603_v49  ;;  %v6408_v37 = vmul.f32 %v5628_v5, %v6318_v17  ;;  %v6412_v59 = vmul.f32 %v6351_v32, %v5659_v27  ;;  %v2768_v34 = vmul.u32 18, %v3940_v45 }
 0x3a3   : > { %v6415_v42 = vadd.s32 248, %v5748_v46  ;;  %vm6417_vm10 = vcmp.lt.s32.totalorder %v2806_v7, 16  ;;  %v2685_v63 = vfloor.f32 %v2643_v55  ;;  %v2604_v3 = vadd.f32 0.5, %v2562_v12 }
 0x3a4   : > { %7626 = vst [vmem:[#allocation59_spill] sm:$0xff] %v6408_v37  ;;  %v2563_v49 = vcvt.s32.f32 %v6390_v21  ;;  %v3177_v15 = vadd.f32 %v3176_v23, %v6408_v37  ;;  %v6424_v20 = vsel %vm3015_vm9, 1.0, %v7564_v0  ;;  %v2767_v5 = vmul.u32 18, %v3938_v60  ;;  %vm3016_vm13 = vmand %vm6396_vm8, %vm6417_vm10 }
 0x3a5   : > { %7629 = vst [vmem:[#allocation60_spill] sm:$0xff] %v6424_v20  ;;  %v6427_v27 = vadd.s32 256, %v5748_v46  ;;  %vm6429_vm11 = vcmp.lt.s32.totalorder %v3936_v14, 16  ;;  %v2807_v7 = vsub.s32 %v6180_v54, %v2765_v39  ;;  %v6434_v32 = vtrunc.f32 %v2686_v38 }
 0x3a6   : > { %v2687_v55 = vfloor.f32 %v2645_v62  ;;  %v3178_v12 = vadd.f32 %v3177_v15, %v6412_v59  ;;  %vm6437_vm15 = vcmp.lt.s32.totalorder %v2808_v25, 16  ;;  %v2810_v37 = vsub.s32 %v6194_v56, %v2768_v34 }
 0x3a7   : > { %v2564_v19 = vcvt.s32.f32 %v6415_v42  ;;  %vm6443_vm12 = vcmp.lt.s32.totalorder %v3934_v31, 16  ;;  %v6447_v17 = vtrunc.f32 %v2685_v63  ;;  %v2646_v54 = vmul.f32 0.055555556, %v2604_v3  ;;  %vm3018_vm1 = vmand %vm6429_vm11, %vm6437_vm15 }
 0x3a8   : > { %v2605_v39 = vadd.f32 0.5, %v2563_v49  ;;  %v6451_v38 = vmul.f32 %v5656_v13, %v6326_v10  ;;  %v6455_v25 = vmul.f32 %v6394_v57, %v5687_v47  ;;  %v2809_v34 = vsub.s32 %v6206_v24, %v2767_v5 }
 0x3a9   : > { %v2565_v56 = vcvt.s32.f32 %v6427_v27  ;;  %vm6463_vm14 = vcmp.lt.s32.totalorder %v2807_v7, 16  ;;  %vm6467_vm0 = vcmp.lt.s32.totalorder %v3940_v45, 16  ;;  %v3944_v63 = vcvt.f32.s32 %v6434_v32 }
 0x3aa   : > { %7636 = vst [vmem:[#allocation61_spill] sm:$0xff] %v6451_v38  ;;  %7637 = vst [vmem:[#allocation62_spill] sm:$0xff] %v6455_v25  ;;  %v6472_v3 = vtrunc.f32 %v2687_v55  ;;  %v3179_v5 = vadd.f32 %v3178_v12, %v6451_v38  ;;  %vm6479_vm2 = vcmp.lt.s32.totalorder %v2810_v37, 16  ;;  %v2606_v49 = vadd.f32 0.5, %v2564_v19 }
 0x3ab   : > { %v6484_v45 = vadd.s32 264, %v5748_v46  ;;  %v3942_v15 = vcvt.f32.s32 %v6447_v17  ;;  %v2688_v32 = vfloor.f32 %v2646_v54  ;;  %v2647_v7 = vmul.f32 0.055555556, %v2605_v39  ;;  %vm3017_vm5 = vmand %vm6443_vm12, %vm6463_vm14 }
 0x3ac   : > { %v6488_v55 = vadd.s32 272, %v5748_v46  ;;  %v3180_v12 = vadd.f32 %v3179_v5, %v6455_v25  ;;  %vm6491_vm3 = vcmp.lt.s32.totalorder %v3938_v60, 16  ;;  %vm6495_vm4 = vcmp.lt.s32.totalorder %v2809_v34, 16  ;;  %vm3020_vm6 = vmand %vm6467_vm0, %vm6479_vm2 }
 0x3ad   : > { %v6369_v8 = vpop.f32.mrb[10].mxu1  ;;  %v2607_v19 = vadd.f32 0.5, %v2565_v56  ;;  %v6505_v17 = vsel %vm3016_vm13, 1.0, %v7564_v0  ;;  %v6508_v23 = vsel %vm3018_vm1, 1.0, %v7564_v0  ;;  %v2770_v60 = vmul.u32 18, %v3944_v63  ;;  %vm3019_vm7 = vmand %vm6491_vm3, %vm6495_vm4 }
 0x3ae   : > { %7618 = vst [vmem:[#allocation57_spill] sm:$0xff] %v6369_v8  ;;  %v6375_v35 = vpop.f32.mrb[11].mxu1  ;;  %7648 = vst [vmem:[#allocation63_spill] sm:$0xff] %v6505_v17  ;;  %v3946_v54 = vcvt.f32.s32 %v6472_v3  ;;  %v6517_v39 = vmul.f32 %v5684_v29, %v6365_v40  ;;  %v6521_v36 = vmul.f32 %v6424_v20, %v5715_v9  ;;  %v2648_v30 = vmul.f32 0.055555556, %v2606_v49  ;;  %v7657_v20 = vld [vmem:[#allocation42_spill] sm:$0xff] }
 0x3af   : > { %7619 = vst [vmem:[#allocation58_spill] sm:$0xff] %v6375_v35  ;;  %7649 = vst [vmem:[#allocation64_spill] sm:$0xff] %v6508_v23  ;;  %v2566_v14 = vcvt.s32.f32 %v6484_v45  ;;  %v2769_v34 = vmul.u32 18, %v3942_v15  ;;  %v6532_v56 = vtrunc.f32 %v2688_v32  ;;  %v2689_v31 = vfloor.f32 %v2647_v7 }
 0x3b0   : > { %7650 = vst [vmem:[#allocation65_spill] sm:$0xff] %v6517_v39  ;;  %7651 = vst [vmem:[#allocation66_spill] sm:$0xff] %v6521_v36  ;;  %v2567_v3 = vcvt.s32.f32 %v6488_v55  ;;  %v3181_v5 = vadd.f32 %v3180_v12, %v6517_v39  ;;  %v6537_v24 = vsel %vm3017_vm5, 1.0, %v7564_v0  ;;  %v2649_v62 = vmul.f32 0.055555556, %v2607_v19 }
 0x3b1   : > { %7652 = vst [vmem:[#allocation67_spill] sm:$0xff] %v6537_v24  ;;  %v6540_v49 = vadd.s32 280, %v5748_v46  ;;  %v6543_v37 = vsel %vm3020_vm6, 1.0, %v7564_v0  ;;  %v2812_v50 = vsub.s32 %v6261_v16, %v2770_v60  ;;  %v2771_v9 = vmul.u32 18, %v3946_v54  ;;  %v7655_v16 = vld [vmem:[#allocation14_spill] sm:$0xff] }
 0x3b2   : > { %7653 = vst [vmem:[#allocation68_spill] sm:$0xff] %v6543_v37  ;;  %v6547_v32 = vadd.s32 288, %v5748_v46  ;;  %v3182_v7 = vadd.f32 %v3181_v5, %v6521_v36  ;;  %v6551_v12 = vsel %vm3019_vm7, 1.0, %v7564_v0  ;;  %v2690_v29 = vfloor.f32 %v2648_v30 }
 0x3b3   : > { %7654 = vst [vmem:[#allocation69_spill] sm:$0xff] %v6551_v12  ;;  %v2608_v47 = vadd.f32 0.5, %v2566_v14  ;;  %v2811_v19 = vsub.s32 %v6279_v48, %v2769_v34  ;;  %v3948_v13 = vcvt.f32.s32 %v6532_v56  ;;  %v6555_v39 = vtrunc.f32 %v2689_v31 }
 0x3b4   : > { %v2609_v25 = vadd.f32 0.5, %v2567_v3  ;;  %v6559_v60 = vmul.f32 %v7655_v16, %v6505_v17  ;;  %v6563_v38 = vmul.f32 %v6537_v24, %v7657_v20  ;;  %v2691_v5 = vfloor.f32 %v2649_v62 }
 0x3b5   : > { %v2568_v30 = vcvt.s32.f32 %v6540_v49  ;;  %vm6568_vm8 = vcmp.lt.s32.totalorder %v3944_v63, 16  ;;  %vm6572_vm9 = vcmp.lt.s32.totalorder %v2812_v50, 16  ;;  %v2813_v34 = vsub.s32 %v6302_v28, %v2771_v9 }
 0x3b6   : > { %7656 = vst [vmem:[#allocation70_spill] sm:$0xff] %v6559_v60  ;;  %7658 = vst [vmem:[#allocation71_spill] sm:$0xff] %v6563_v38  ;;  %v2569_v31 = vcvt.s32.f32 %v6547_v32  ;;  %v3183_v3 = vadd.f32 %v3182_v7, %v6559_v60  ;;  %vm6581_vm10 = vcmp.lt.s32.totalorder %v3942_v15, 16  ;;  %v3951_v63 = vtrunc.f32 %v2690_v29 }
 0x3b7   : > { %v2650_v20 = vmul.f32 0.055555556, %v2608_v47  ;;  %vm6585_vm11 = vcmp.lt.s32.totalorder %v2811_v19, 16  ;;  %v3950_v50 = vcvt.f32.s32 %v6555_v39  ;;  %v2651_v24 = vmul.f32 0.055555556, %v2609_v25  ;;  %vm3022_vm15 = vmand %vm6568_vm8, %vm6572_vm9  ;;  %v7673_v19 = vld [vmem:[#allocation17_spill] sm:$0xff] }
 0x3b8   : > { %v6591_v9 = vadd.s32 296, %v5748_v46  ;;  %v3184_v28 = vadd.f32 %v3183_v3, %v6563_v38  ;;  %v2772_v17 = vmul.u32 18, %v3948_v13  ;;  %v6594_v7 = vtrunc.f32 %v2691_v5  ;;  %vm3021_vm14 = vmand %vm6581_vm10, %vm6585_vm11 }
 0x3b9   : > { %v2610_v15 = vadd.f32 0.5, %v2568_v30  ;;  %vm6600_vm12 = vcmp.lt.s32.totalorder %v3946_v54, 16  ;;  %vm6604_vm13 = vcmp.lt.s32.totalorder %v2813_v34, 16  ;;  %v2611_v25 = vadd.f32 0.5, %v2569_v31  ;;  %v7675_v30 = vld [vmem:[#allocation41_spill] sm:$0xff] }
 0x3ba   : > { %v6609_v39 = vadd.s32 304, %v5748_v46  ;;  %v6613_v5 = vmul.f32 %v7673_v19, %v6508_v23  ;;  %v6617_v48 = vmul.f32 %v6551_v12, %v7675_v30  ;;  %v3952_v54 = vcvt.f32.s32 %v3951_v63  ;;  %vm3023_vm1 = vmand %vm6600_vm12, %vm6604_vm13 }
 0x3bb   : > { %v2692_v14 = vfloor.f32 %v2650_v20  ;;  %v2773_v34 = vmul.u32 18, %v3950_v50  ;;  %v2693_v31 = vfloor.f32 %v2651_v24  ;;  %v2570_v3 = vcvt.s32.f32 %v6591_v9 }
 0x3bc   : > { %7674 = vst [vmem:[#allocation74_spill] sm:$0xff] %v6613_v5  ;;  %7676 = vst [vmem:[#allocation75_spill] sm:$0xff] %v6617_v48  ;;  %v6625_v38 = vadd.s32 312, %v5748_v46  ;;  %v3185_v19 = vadd.f32 %v3184_v28, %v6613_v5  ;;  %v6629_v60 = vsel %vm3022_vm15, 1.0, %v7564_v0  ;;  %v3954_v30 = vcvt.f32.s32 %v6594_v7 }
 0x3bd   : > { %v2652_v16 = vmul.f32 0.055555556, %v2610_v15  ;;  %v6633_v62 = vsel %vm3021_vm14, 1.0, %v7564_v0  ;;  %v2814_v20 = vsub.s32 %v6354_v1, %v2772_v17  ;;  %v2653_v63 = vmul.f32 0.055555556, %v2611_v25  ;;  %v7680_v25 = vld [vmem:[#allocation16_spill] sm:$0xff] }
 0x3be   : > { %7677 = vst [vmem:[#allocation76_spill] sm:$0xff] %v6633_v62  ;;  %v2571_v24 = vcvt.s32.f32 %v6609_v39  ;;  %v3186_v12 = vadd.f32 %v3185_v19, %v6617_v48  ;;  %vm6638_vm0 = vcmp.lt.s32.totalorder %v3948_v13, 16  ;;  %v2774_v28 = vmul.u32 18, %v3952_v54  ;;  %v7681_v19 = vld [vmem:[#allocation44_spill] sm:$0xff] }
 0x3bf   : > { %v3955_v7 = vtrunc.f32 %v2692_v14  ;;  %v2815_v15 = vsub.s32 %v6390_v21, %v2773_v34  ;;  %v6647_v5 = vtrunc.f32 %v2693_v31  ;;  %v2612_v1 = vadd.f32 0.5, %v2570_v3 }
 0x3c0   : > { %v2572_v17 = vcvt.s32.f32 %v6625_v38  ;;  %v6652_v13 = vmul.f32 %v7680_v25, %v6543_v37  ;;  %v6656_v48 = vmul.f32 %v6633_v62, %v7681_v19  ;;  %v2775_v47 = vmul.u32 18, %v3954_v30 }
 0x3c1   : > { %v2694_v29 = vfloor.f32 %v2652_v16  ;;  %vm6658_vm2 = vcmp.lt.s32.totalorder %v2814_v20, 16  ;;  %v6663_v21 = vsel %vm3023_vm1, 1.0, %v7564_v0  ;;  %v2695_v14 = vfloor.f32 %v2653_v63 }
 0x3c2   : > { %v2613_v34 = vadd.f32 0.5, %v2571_v24  ;;  %v3187_v31 = vadd.f32 %v3186_v12, %v6652_v13  ;;  %v2816_v3 = vsub.s32 %v6415_v42, %v2774_v28  ;;  %vm6667_vm3 = vcmp.lt.s32.totalorder %v3950_v50, 16  ;;  %vm3024_vm5 = vmand %vm6638_vm0, %vm6658_vm2 }
 0x3c3   : > { %v3956_v19 = vcvt.f32.s32 %v3955_v7  ;;  %vm6671_vm4 = vcmp.lt.s32.totalorder %v2815_v15, 16  ;;  %v3958_v20 = vcvt.f32.s32 %v6647_v5  ;;  %v2654_v62 = vmul.f32 0.055555556, %v2612_v1  ;;  %v7690_v5 = vld [vmem:[#allocation19_spill] sm:$0xff] }
 0x3c4   : > { %v2614_v37 = vadd.f32 0.5, %v2572_v17  ;;  %v3188_v63 = vadd.f32 %v3187_v31, %v6656_v48  ;;  %v2817_v24 = vsub.s32 %v6427_v27, %v2775_v47  ;;  %v3959_v12 = vtrunc.f32 %v2694_v29  ;;  %vm3025_vm7 = vmand %vm6667_vm3, %vm6671_vm4 }
 0x3c5   : > { %v6565_v36 = vpop.f32.mrb[12].mxu1  ;;  %vm6682_vm6 = vcmp.lt.s32.totalorder %v3952_v54, 16  ;;  %v3961_v50 = vtrunc.f32 %v2695_v14  ;;  %v2655_v28 = vmul.f32 0.055555556, %v2613_v34  ;;  %v6688_v7 = vmul.f32 %v7690_v5, %v6629_v60 }
 0x3c6   : > { %7659 = vst [vmem:[#allocation72_spill] sm:$0xff] %v6565_v36  ;;  %v6577_v56 = vpop.f32.mrb[13].mxu1  ;;  %v6692_v15 = vmul.f32 %v6663_v21, %v5961_v58  ;;  %v2776_v27 = vmul.u32 18, %v3956_v19  ;;  %v6699_v54 = vadd.s32 320, %v5748_v46  ;;  %vm6701_vm8 = vcmp.lt.s32.totalorder %v2816_v3, 16 }
 0x3c7   : > { %7664 = vst [vmem:[#allocation73_spill] sm:$0xff] %v6577_v56  ;;  %v2777_v17 = vmul.u32 18, %v3958_v20  ;;  %v2696_v47 = vfloor.f32 %v2654_v62  ;;  %v2656_v29 = vmul.f32 0.055555556, %v2614_v37  ;;  %v3189_v14 = vadd.f32 %v3188_v63, %v6688_v7  ;;  %vm3026_vm11 = vmand %vm6682_vm6, %vm6701_vm8 }
 0x3c8   : > { %vm6706_vm9 = vcmp.lt.s32.totalorder %v3954_v30, 16  ;;  %vm6710_vm10 = vcmp.lt.s32.totalorder %v2817_v24, 16  ;;  %v3960_v31 = vcvt.f32.s32 %v3959_v12  ;;  %v6720_v46 = vsel %vm3024_vm5, 1.0, %v7564_v0  ;;  %v7697_v12 = vld [vmem:[#allocation43_spill] sm:$0xff] }
 0x3c9   : > { %v6723_v37 = vsel %vm3025_vm7, 1.0, %v7564_v0  ;;  %v3962_v30 = vcvt.f32.s32 %v3961_v50  ;;  %v2697_v62 = vfloor.f32 %v2655_v28  ;;  %v3190_v3 = vadd.f32 %v3189_v14, %v6692_v15  ;;  %vm3027_vm15 = vmand %vm6706_vm9, %vm6710_vm10 }
 0x3ca   : > { %v2818_v16 = vsub.s32 %v6484_v45, %v2776_v27  ;;  %v2573_v23 = vcvt.s32.f32 %v6699_v54  ;;  %v2819_v40 = vsub.s32 %v6488_v55, %v2777_v17  ;;  %v3963_v63 = vtrunc.f32 %v2696_v47 }
 0x3cb   : > { %v2698_v24 = vfloor.f32 %v2656_v29  ;;  %v6739_v50 = vmul.f32 %v7697_v12, %v6720_v46  ;;  %v6743_v42 = vmul.f32 %v6723_v37, %v6182_v41  ;;  %v2778_v45 = vmul.u32 18, %v3960_v31 }
 0x3cc   : > { %v6748_v27 = vsel %vm3026_vm11, 1.0, %v7564_v0  ;;  %vm6750_vm12 = vcmp.lt.s32.totalorder %v3956_v19, 16  ;;  %v2779_v17 = vmul.u32 18, %v3962_v30  ;;  %v3965_v47 = vtrunc.f32 %v2697_v62 }
 0x3cd   : > { %v3191_v29 = vadd.f32 %v3190_v3, %v6739_v50  ;;  %vm6757_vm13 = vcmp.lt.s32.totalorder %v2818_v16, 16  ;;  %v6762_v34 = vsel %vm3027_vm15, 1.0, %v7564_v0  ;;  %v2615_v25 = vadd.f32 0.5, %v2573_v23 }
 0x3ce   : > { %vm6764_vm14 = vcmp.lt.s32.totalorder %v3958_v20, 16  ;;  %vm6768_vm0 = vcmp.lt.s32.totalorder %v2819_v40, 16  ;;  %v3964_v12 = vcvt.f32.s32 %v3963_v63  ;;  %v3967_v62 = vtrunc.f32 %v2698_v24  ;;  %vm3028_vm1 = vmand %vm6750_vm12, %vm6757_vm13 }
 0x3cf   : > { %v3192_v3 = vadd.f32 %v3191_v29, %v6743_v42  ;;  %v2820_v16 = vsub.s32 %v6540_v49, %v2778_v45  ;;  %v2821_v20 = vsub.s32 %v6547_v32, %v2779_v17  ;;  %v3966_v23 = vcvt.f32.s32 %v3965_v47  ;;  %vm3029_vm2 = vmand %vm6764_vm14, %vm6768_vm0 }
 0x3d0   : > { %v6781_v40 = vmul.f32 %v6176_v2, %v6748_v27  ;;  %v6785_v63 = vmul.f32 %v6762_v34, %v6375_v35  ;;  %v2657_v49 = vmul.f32 0.055555556, %v2615_v25  ;;  %v2780_v24 = vmul.u32 18, %v3964_v12 }
 0x3d1   : > { %v3968_v45 = vcvt.f32.s32 %v3967_v62  ;;  %v6792_v1 = vsel %vm3028_vm1, 1.0, %v7564_v0  ;;  %vm6795_vm3 = vcmp.lt.s32.totalorder %v3960_v31, 16  ;;  %vm2988_vm4 = vcmp.lt.s32.totalorder %v2820_v16, 16 }
 0x3d2   : > { %v3193_v32 = vadd.f32 %v3192_v3, %v6781_v40  ;;  %v6800_v47 = vsel %vm3029_vm2, 1.0, %v7564_v0  ;;  %vm6802_vm5 = vcmp.lt.s32.totalorder %v3962_v30, 16  ;;  %vm6806_vm6 = vcmp.lt.s32.totalorder %v2821_v20, 16  ;;  %vm3030_vm7 = vmand %vm6795_vm3, %vm2988_vm4 }
 0x3d3   : > { %v2781_v14 = vmul.u32 18, %v3966_v23  ;;  %v2699_v19 = vfloor.f32 %v2657_v49  ;;  %v2822_v31 = vsub.s32 %v6591_v9, %v2780_v24  ;;  %v2782_v62 = vmul.u32 18, %v3968_v45  ;;  %vm3031_vm8 = vmand %vm6802_vm5, %vm6806_vm6 }
 0x3d4   : > { %v3194_v25 = vadd.f32 %v3193_v32, %v6785_v63  ;;  %v6816_v30 = vmul.f32 %v6369_v8, %v6792_v1  ;;  %v6820_v3 = vmul.f32 %v6800_v47, %v6577_v56  ;;  %v6828_v20 = vsel %vm3030_vm7, 1.0, %v7564_v0 }
 0x3d5   : > { %v2823_v16 = vsub.s32 %v6609_v39, %v2781_v14  ;;  %v3969_v49 = vtrunc.f32 %v2699_v19  ;;  %vm6831_vm9 = vcmp.lt.s32.totalorder %v3964_v12, 16  ;;  %vm2990_vm10 = vcmp.lt.s32.totalorder %v2822_v31, 16 }
 0x3d6   : > { %v3195_v9 = vadd.f32 %v3194_v25, %v6816_v30  ;;  %v6836_v32 = vsel %vm3031_vm8, 1.0, %v7564_v0  ;;  %v2824_v17 = vsub.s32 %v6625_v38, %v2782_v62  ;;  %vm2907_vm11 = vcmp.lt.s32.totalorder %v3966_v23, 16  ;;  %vm3032_vm12 = vmand %vm6831_vm9, %vm2990_vm10 }
 0x3d7   : > { %vm2991_vm15 = vcmp.lt.s32.totalorder %v2823_v16, 16  ;;  %v6842_v39 = vmul.f32 %v6565_v36, %v6828_v20  ;;  %v3970_v41 = vcvt.f32.s32 %v3969_v49  ;;  %vm2908_vm13 = vcmp.lt.s32.totalorder %v3968_v45, 16 }
 0x3d8   : > { %v3196_v29 = vadd.f32 %v3195_v9, %v6820_v3  ;;  %vm2992_vm14 = vcmp.lt.s32.totalorder %v2824_v17, 16  ;;  %vm3033_vm0 = vmand %vm2907_vm11, %vm2991_vm15  ;;  %v6852_v23 = vsel %vm3032_vm12, 1.0, %v7564_v0  ;;  %vm2867_vm2 = vcmp.lt.s32.totalorder %v6699_v54, 324 }
 0x3d9   : > { %vm3034_vm1 = vmand %vm2908_vm13, %vm2992_vm14  ;;  %v2783_v25 = vmul.u32 18, %v3970_v41  ;;  %v3747_v19 = vsel %vm3033_vm0, 1.0, %v7564_v0  ;;  %vm2909_vm3 = vcmp.lt.s32.totalorder %v3970_v41, 16 }
 0x3da   : > { %v3197_v38 = vadd.f32 %v3196_v29, %v6842_v39  ;;  %v3748_v45 = vsel %vm3034_vm1, 1.0, %v7564_v0  ;;  %vm2951_vm4 = vmand %vm2867_vm2, %vm2909_vm3 }
 0x3db   : > { %v2825_v24 = vsub.s32 %v6699_v54, %v2783_v25 }
 0x3dd   : > { %v6745_v28 = vpop.f32.mrb[14].mxu1  ;;  %vm2993_vm5 = vcmp.lt.s32.totalorder %v2825_v24, 16 }
 0x3de   : > { %7698 = vst [vmem:[#allocation77_spill] sm:$0xff] %v6745_v28  ;;  %v6754_v55 = vpop.f32.mrb[15].mxu1  ;;  %v6858_v31 = vmul.f32 %v6745_v28, %v6852_v23  ;;  %vm3035_vm6 = vmand %vm2951_vm4, %vm2993_vm5 }
 0x3df   : > { %7701 = vst [vmem:[#allocation78_spill] sm:$0xff] %v6754_v55  ;;  %v6848_v12 = vmul.f32 %v6836_v32, %v6754_v55  ;;  %v3749_v28 = vsel %vm3035_vm6, 1.0, %v7564_v0 }
 0x3e1   : > { %v3198_v14 = vadd.f32 %v3197_v38, %v6848_v12 }
 0x3e3   : > { %v3199_v49 = vadd.f32 %v3198_v14, %v6858_v31 }
 0x3f5   : > { %v6860_v62 = vpop.f32.mrb[16].mxu1 }
 0x3f6   : > { %7716 = vst [vmem:[#allocation79_spill] sm:$0xff] %v6860_v62  ;;  %v6863_v16 = vpop.f32.mrb[17].mxu1  ;;  %v3160_v17 = vmul.f32 %v6860_v62, %v3748_v45 }
 0x3f7   : > { %7717 = vst [vmem:[#allocation80_spill] sm:$0xff] %v6863_v16  ;;  %v3159_v9 = vmul.f32 %v3747_v19, %v6863_v16 }
 0x3f9   : > { %v3200_v29 = vadd.f32 %v3199_v49, %v3159_v9 }
 0x3fb   : > { %v3201_v38 = vadd.f32 %v3200_v29, %v3160_v17 }
 0x402   : > { %v6871_v55 = vpop.f32.mrb[18].mxu1 }
 0x403   : > { %7718 = vst [vmem:[#allocation81_spill] sm:$0xff] %v6871_v55  ;;  %v6873_v36 = vpop.f32.mrb[19].mxu1  ;;  %v3162_v25 = vmul.f32 0.0, %v6871_v55  ;;  %v7720_v55 = vld [vmem:[#allocation21_spill] sm:$0xff] }
 0x404   : > { %7719 = vst [vmem:[#allocation82_spill] sm:$0xff] %v6873_v36  ;;  %v3161_v14 = vmul.f32 %v3749_v28, %v6873_v36 }
 0x406   : > { %v3202_v16 = vadd.f32 %v3201_v38, %v3161_v14 }
 0x408   : > { %v3203_v54 = vadd.f32 %v3202_v16, %v3162_v25  ;;  %v7721_v16 = vld [vmem:[#allocation18_spill] sm:$0xff] }
 0x40a   : > { %v3204_v41 = vrot.slane %v3203_v54, 4 }
 0x40c   : > { %v3205_v56 = vadd.f32 %v3204_v41, %v3203_v54 }
 0x40e   : > { %v3206_v62 = vrot.slane %v3205_v56, 2 }
 0x410   : > { %v3207_v49 = vadd.f32 %v3206_v62, %v3205_v56 }
 0x412   : > { %v3208_v8 = vrot.slane %v3207_v49, 1 }
 0x414   : > { %v3209_v24 = vadd.f32 %v3208_v8, %v3207_v49 }
 0x416   : > { %v6877_v29 = vmul.f32 0.00390625, %v3209_v24  ;;  %v7727_v24 = vld [vmem:[#allocation48_spill] sm:$0xff] }
 0x418   : > { %v3249_v0 = vmul.f32 %v3747_v19, %v6877_v29  ;;  %v3250_v35 = vmul.f32 %v3748_v45, %v6877_v29  ;;  %v3251_v2 = vmul.f32 %v3749_v28, %v6877_v29  ;;  %v3252_v58 = vmul.f32 0.0, %v6877_v29  ;;  %v7725_v19 = vld [vmem:[#allocation46_spill] sm:$0xff] }
 0x419   : > { %v3211_v38 = vmul.f32 %v7720_v55, %v6877_v29  ;;  %v3212_v54 = vmul.f32 %v7721_v16, %v6877_v29  ;;  %v3213_v45 = vmul.f32 %v7725_v19, %v6877_v29  ;;  %v7726_v28 = vld [vmem:[#allocation22_spill] sm:$0xff]  ;;  %v3214_v55 = vmul.f32 %v5947_v26, %v6877_v29  ;;  %v7731_v19 = vld [vmem:[#allocation47_spill] sm:$0xff] }
 0x41a   : > { %v6887_v41 = vsub.f32 %v3159_v9, %v3249_v0  ;;  %v6889_v56 = vsub.f32 %v3160_v17, %v3250_v35  ;;  %v6891_v8 = vsub.f32 %v3161_v14, %v3251_v2  ;;  %v6893_v62 = vsub.f32 %v3162_v25, %v3252_v58  ;;  %v7728_v0 = vld [vmem:[#allocation25_spill] sm:$0xff]  ;;  %v7730_v25 = vld [vmem:[#allocation50_spill] sm:$0xff]  ;;  %v7733_v26 = vld [vmem:[#allocation23_spill] sm:$0xff] }
 0x41b   : > { %v3253_v49 = vsub.f32 %v7726_v28, %v3211_v38  ;;  %v3254_v5 = vsub.f32 %v7727_v24, %v3212_v54  ;;  %v3215_v9 = vmul.f32 %v6003_v61, %v6877_v29  ;;  %v3255_v35 = vsub.f32 %v7728_v0, %v3213_v45  ;;  %v7729_v58 = vld [vmem:[#allocation45_spill] sm:$0xff]  ;;  %v7732_v28 = vld [vmem:[#allocation24_spill] sm:$0xff]  ;;  %v7734_v61 = vld [vmem:[#allocation27_spill] sm:$0xff] }
 0x41c   : > { %7722 = vst [vmem:[#allocation21_spill] sm:$0xff] %v6889_v56  ;;  %7723 = vst [vmem:[#allocation18_spill] sm:$0xff] %v6891_v8  ;;  %v3216_v14 = vmul.f32 %v7729_v58, %v6877_v29  ;;  %v3256_v16 = vsub.f32 %v7730_v25, %v3214_v55  ;;  %v3217_v38 = vmul.f32 %v7731_v19, %v6877_v29  ;;  %v7736_v58 = vld [vmem:[#allocation52_spill] sm:$0xff] }
 0x41d   : > { %7724 = vst [vmem:[#allocation83_spill] sm:$0xff] %v6893_v62  ;;  %v3295_v17 = vmul.f32 %v3253_v49, %v3253_v49  ;;  %v3296_v2 = vmul.f32 %v3254_v5, %v3254_v5  ;;  %v3257_v54 = vsub.f32 %v7732_v28, %v3215_v9  ;;  %v3297_v24 = vmul.f32 %v3255_v35, %v3255_v35  ;;  %v7735_v5 = vld [vmem:[#allocation49_spill] sm:$0xff]  ;;  %v7737_v9 = vld [vmem:[#allocation28_spill] sm:$0xff] }
 0x41e   : > { %v3218_v62 = vmul.f32 %v7733_v26, %v6877_v29  ;;  %v3258_v8 = vsub.f32 %v7734_v61, %v3216_v14  ;;  %v3298_v45 = vmul.f32 %v3256_v16, %v3256_v16  ;;  %v3219_v0 = vmul.f32 %v7735_v5, %v6877_v29 }
 0x41f   : > { %v3337_v36 = vadd.f32 %v3296_v2, %v3295_v17  ;;  %v3259_v56 = vsub.f32 %v7736_v58, %v3217_v38  ;;  %v3299_v55 = vmul.f32 %v3257_v54, %v3257_v54  ;;  %v3220_v19 = vmul.f32 %v6061_v4, %v6877_v29 }
 0x420   : > { %v3260_v35 = vsub.f32 %v7737_v9, %v3218_v62  ;;  %v3300_v17 = vmul.f32 %v3258_v8, %v3258_v8  ;;  %v3221_v28 = vmul.f32 %v6153_v53, %v6877_v29  ;;  %v3261_v14 = vsub.f32 %v6216_v33, %v3219_v0 }
 0x421   : > { %v3338_v49 = vadd.f32 %v3337_v36, %v3297_v24  ;;  %v3301_v36 = vmul.f32 %v3259_v56, %v3259_v56  ;;  %v3222_v24 = vmul.f32 %v6150_v43, %v6877_v29  ;;  %v3262_v38 = vsub.f32 %v6249_v11, %v3220_v19 }
 0x422   : > { %v3302_v54 = vmul.f32 %v3260_v35, %v3260_v35  ;;  %v3223_v4 = vmul.f32 %v6197_v18, %v6877_v29  ;;  %v3263_v8 = vsub.f32 %v6253_v6, %v3221_v28  ;;  %v3303_v62 = vmul.f32 %v3261_v14, %v3261_v14  ;;  %v7738_v18 = vld [vmem:[#allocation29_spill] sm:$0xff]  ;;  %v7739_v6 = vld [vmem:[#allocation54_spill] sm:$0xff] }
 0x423   : > { %v3339_v25 = vadd.f32 %v3338_v49, %v3298_v45  ;;  %v3224_v53 = vmul.f32 %v6191_v52, %v6877_v29  ;;  %v3264_v33 = vsub.f32 %v6306_v22, %v3222_v24  ;;  %v3304_v56 = vmul.f32 %v3262_v38, %v3262_v38  ;;  %v7740_v52 = vld [vmem:[#allocation53_spill] sm:$0xff]  ;;  %v7741_v22 = vld [vmem:[#allocation55_spill] sm:$0xff] }
 0x424   : > { %v3225_v43 = vmul.f32 %v6321_v44, %v6877_v29  ;;  %v3265_v11 = vsub.f32 %v6310_v51, %v3223_v4  ;;  %v3305_v49 = vmul.f32 %v3263_v8, %v3263_v8  ;;  %v3226_v0 = vmul.f32 %v7738_v18, %v6877_v29  ;;  %v7742_v51 = vld [vmem:[#allocation59_spill] sm:$0xff]  ;;  %v7744_v4 = vld [vmem:[#allocation61_spill] sm:$0xff] }
 0x425   : > { %v3340_v2 = vadd.f32 %v3339_v25, %v3299_v55  ;;  %v3266_v58 = vsub.f32 %v7739_v6, %v3224_v53  ;;  %v3306_v55 = vmul.f32 %v3264_v33, %v3264_v33  ;;  %v3227_v19 = vmul.f32 %v7740_v52, %v6877_v29  ;;  %v7746_v33 = vld [vmem:[#allocation62_spill] sm:$0xff] }
 0x426   : > { %v3267_v9 = vsub.f32 %v7741_v22, %v3225_v43  ;;  %v3307_v35 = vmul.f32 %v3265_v11, %v3265_v11  ;;  %v3228_v44 = vmul.f32 %v6326_v10, %v6877_v29  ;;  %v7745_v10 = vld [vmem:[#allocation60_spill] sm:$0xff] }
 0x427   : > { %v3341_v16 = vadd.f32 %v3340_v2, %v3300_v17  ;;  %v3268_v2 = vsub.f32 %v7742_v51, %v3226_v0  ;;  %v3308_v28 = vmul.f32 %v3266_v58, %v3266_v58  ;;  %v3231_v53 = vmul.f32 %v7745_v10, %v6877_v29  ;;  %v7749_v0 = vld [vmem:[#allocation67_spill] sm:$0xff]  ;;  %v7750_v58 = vld [vmem:[#allocation66_spill] sm:$0xff]  ;;  %v7753_v51 = vld [vmem:[#allocation69_spill] sm:$0xff] }
 0x428   : > { %v3309_v24 = vmul.f32 %v3267_v9, %v3267_v9  ;;  %v3270_v8 = vsub.f32 %v7744_v4, %v3228_v44  ;;  %v3233_v6 = vmul.f32 %v7749_v0, %v6877_v29  ;;  %v7752_v9 = vld [vmem:[#allocation70_spill] sm:$0xff]  ;;  %v7758_v10 = vld [vmem:[#allocation75_spill] sm:$0xff]  ;;  %v3240_v0 = vmul.f32 %v6720_v46, %v6877_v29 }
 0x429   : > { %v3342_v26 = vadd.f32 %v3341_v16, %v3301_v36  ;;  %v3229_v36 = vmul.f32 %v6394_v57, %v6877_v29  ;;  %v3269_v16 = vsub.f32 %v6412_v59, %v3227_v19  ;;  %v7747_v57 = vld [vmem:[#allocation63_spill] sm:$0xff]  ;;  %v7748_v59 = vld [vmem:[#allocation65_spill] sm:$0xff]  ;;  %v7751_v19 = vld [vmem:[#allocation64_spill] sm:$0xff]  ;;  %v3243_v46 = vmul.f32 %v6762_v34, %v6877_v29 }
 0x42a   : > { %v3232_v11 = vmul.f32 %v7747_v57, %v6877_v29  ;;  %v3234_v22 = vmul.f32 %v7751_v19, %v6877_v29  ;;  %v3246_v34 = vmul.f32 %v6828_v20, %v6877_v29 }
 0x42b   : > { %v3343_v61 = vadd.f32 %v3342_v26, %v3302_v54  ;;  %v7743_v54 = vld [vmem:[#allocation56_spill] sm:$0xff] }
 0x42c   : > { %v3230_v26 = vmul.f32 %v7743_v54, %v6877_v29  ;;  %v7756_v54 = vld [vmem:[#allocation74_spill] sm:$0xff] }
 0x42d   : > { %v3344_v45 = vadd.f32 %v3343_v61, %v3303_v62  ;;  %v3310_v62 = vmul.f32 %v3268_v2, %v3268_v2  ;;  %v3235_v2 = vmul.f32 %v7753_v51, %v6877_v29 }
 0x42f   : > { %v3345_v5 = vadd.f32 %v3344_v45, %v3304_v56  ;;  %v3271_v56 = vsub.f32 %v7746_v33, %v3229_v36  ;;  %v3311_v45 = vmul.f32 %v3269_v16, %v3269_v16 }
 0x431   : > { %v3346_v25 = vadd.f32 %v3345_v5, %v3305_v49  ;;  %v3272_v49 = vsub.f32 %v7748_v59, %v3230_v26  ;;  %v3312_v5 = vmul.f32 %v3270_v8, %v3270_v8  ;;  %v3276_v26 = vsub.f32 %v7756_v54, %v3234_v22 }
 0x432   : > { %v3239_v59 = vmul.f32 %v6663_v21, %v6877_v29  ;;  %v3242_v21 = vmul.f32 %v6748_v27, %v6877_v29  ;;  %v3245_v27 = vmul.f32 %v6800_v47, %v6877_v29  ;;  %v3248_v47 = vmul.f32 %v6852_v23, %v6877_v29 }
 0x433   : > { %v3347_v17 = vadd.f32 %v3346_v25, %v3306_v55  ;;  %v3273_v55 = vsub.f32 %v7750_v58, %v3231_v53  ;;  %v3313_v25 = vmul.f32 %v3271_v56, %v3271_v56  ;;  %v3277_v53 = vsub.f32 %v7758_v10, %v3235_v2 }
 0x434   : > { %v3318_v57 = vmul.f32 %v3276_v26, %v3276_v26  ;;  %v3290_v26 = vsub.f32 %v6858_v31, %v3248_v47  ;;  %v3333_v10 = vmul.f32 %v6887_v41, %v6887_v41  ;;  %v7761_v31 = vld [vmem:[#allocation83_spill] sm:$0xff] }
 0x435   : > { %v3348_v14 = vadd.f32 %v3347_v17, %v3307_v35  ;;  %v3274_v35 = vsub.f32 %v7752_v9, %v3232_v11  ;;  %v3314_v17 = vmul.f32 %v3272_v49, %v3272_v49  ;;  %v3315_v36 = vmul.f32 %v3273_v55, %v3273_v55  ;;  %v7775_v47 = vld [vmem:[#allocation35_spill] sm:$0xff] }
 0x437   : > { %v3349_v38 = vadd.f32 %v3348_v14, %v3308_v28  ;;  %v7754_v28 = vld [vmem:[#allocation71_spill] sm:$0xff]  ;;  %v3316_v4 = vmul.f32 %v3274_v35, %v3274_v35 }
 0x438   : > { %v3275_v14 = vsub.f32 %v7754_v28, %v3233_v6 }
 0x439   : > { %v3350_v61 = vadd.f32 %v3349_v38, %v3309_v24  ;;  %v7755_v24 = vld [vmem:[#allocation68_spill] sm:$0xff] }
 0x43a   : > { %v3236_v38 = vmul.f32 %v7755_v24, %v6877_v29  ;;  %v3317_v33 = vmul.f32 %v3275_v14, %v3275_v14 }
 0x43b   : > { %v3351_v43 = vadd.f32 %v3350_v61, %v3310_v62  ;;  %v7757_v62 = vld [vmem:[#allocation76_spill] sm:$0xff] }
 0x43c   : > { %v3237_v61 = vmul.f32 %v7757_v62, %v6877_v29 }
 0x43d   : > { %v3352_v18 = vadd.f32 %v3351_v43, %v3311_v45  ;;  %v3238_v45 = vmul.f32 %v6629_v60, %v6877_v29  ;;  %v3278_v43 = vsub.f32 %v6652_v13, %v3236_v38  ;;  %v3241_v60 = vmul.f32 %v6723_v37, %v6877_v29 }
 0x43e   : > { %v3279_v49 = vsub.f32 %v6656_v48, %v3237_v61  ;;  %v3281_v13 = vsub.f32 %v6692_v15, %v3239_v59  ;;  %v3282_v48 = vsub.f32 %v6739_v50, %v3240_v0  ;;  %v3244_v37 = vmul.f32 %v6792_v1, %v6877_v29 }
 0x43f   : > { %v3353_v52 = vadd.f32 %v3352_v18, %v3312_v5  ;;  %v3319_v5 = vmul.f32 %v3277_v53, %v3277_v53  ;;  %v3280_v6 = vsub.f32 %v6688_v7, %v3238_v45  ;;  %v3320_v58 = vmul.f32 %v3278_v43, %v3278_v43  ;;  %v7759_v53 = vld [vmem:[#allocation21_spill] sm:$0xff] }
 0x440   : > { %v3283_v7 = vsub.f32 %v6743_v42, %v3241_v60  ;;  %v3323_v9 = vmul.f32 %v3281_v13, %v3281_v13  ;;  %v3284_v15 = vsub.f32 %v6781_v40, %v3242_v21  ;;  %v3285_v50 = vsub.f32 %v6785_v63, %v3243_v46  ;;  %v7763_v21 = vld [vmem:[#allocation30_spill] sm:$0xff]  ;;  %v7765_v46 = vld [vmem:[#allocation32_spill] sm:$0xff] }
 0x441   : > { %v3354_v44 = vadd.f32 %v3353_v52, %v3313_v25  ;;  %v3321_v25 = vmul.f32 %v3279_v49, %v3279_v49  ;;  %v3322_v19 = vmul.f32 %v3280_v6, %v3280_v6  ;;  %v3286_v42 = vsub.f32 %v6816_v30, %v3244_v37  ;;  %v7767_v37 = vld [vmem:[#allocation31_spill] sm:$0xff] }
 0x442   : > { %v3325_v51 = vmul.f32 %v3283_v7, %v3283_v7  ;;  %v3326_v28 = vmul.f32 %v3284_v15, %v3284_v15  ;;  %v3247_v1 = vmul.f32 %v6836_v32, %v6877_v29  ;;  %v3287_v40 = vsub.f32 %v6820_v3, %v3245_v27  ;;  %v7769_v27 = vld [vmem:[#allocation34_spill] sm:$0xff] }
 0x443   : > { %v3355_v16 = vadd.f32 %v3354_v44, %v3314_v17  ;;  %v3324_v17 = vmul.f32 %v3282_v48, %v3282_v48  ;;  %v3288_v63 = vsub.f32 %v6842_v39, %v3246_v34  ;;  %v3328_v24 = vmul.f32 %v3286_v42, %v3286_v42  ;;  %v7771_v34 = vld [vmem:[#allocation33_spill] sm:$0xff] }
 0x444   : > { %v3289_v20 = vsub.f32 %v6848_v12, %v3247_v1  ;;  %v3329_v54 = vmul.f32 %v3287_v40, %v3287_v40  ;;  %v3332_v3 = vmul.f32 %v3290_v26, %v3290_v26  ;;  %v3334_v39 = vmul.f32 %v7759_v53, %v7759_v53  ;;  %v7760_v12 = vld [vmem:[#allocation18_spill] sm:$0xff]  ;;  %v7773_v1 = vld [vmem:[#allocation36_spill] sm:$0xff]  ;;  %v7778_v26 = vld [vmem:[#allocation13_spill] sm:$0xff] }
 0x445   : > { %v3356_v8 = vadd.f32 %v3355_v16, %v3315_v36  ;;  %v3327_v36 = vmul.f32 %v3285_v50, %v3285_v50  ;;  %v3336_v43 = vmul.f32 %v7761_v31, %v7761_v31 }
 0x446   : > { %v3331_v32 = vmul.f32 %v3289_v20, %v3289_v20 }
 0x447   : > { %v3357_v56 = vadd.f32 %v3356_v8, %v3316_v4  ;;  %v3330_v4 = vmul.f32 %v3288_v63, %v3288_v63 }
 0x449   : > { %v3358_v11 = vadd.f32 %v3357_v56, %v3317_v33  ;;  %v3335_v56 = vmul.f32 %v7760_v12, %v7760_v12  ;;  %v7784_v12 = vld [vmem:[#allocation14_spill] sm:$0xff] }
 0x44b   : > { %v3359_v18 = vadd.f32 %v3358_v11, %v3318_v57 }
 0x44d   : > { %v3360_v55 = vadd.f32 %v3359_v18, %v3319_v5 }
 0x44f   : > { %v3361_v52 = vadd.f32 %v3360_v55, %v3320_v58  ;;  %v3387_v55 = vsub.f32 0.0, %v6877_v29 }
 0x451   : > { %v3362_v22 = vadd.f32 %v3361_v52, %v3321_v25  ;;  %v7762_v25 = vld [vmem:[#allocation82_spill] sm:$0xff] }
 0x453   : > { %v3363_v35 = vadd.f32 %v3362_v22, %v3322_v19  ;;  %v7764_v19 = vld [vmem:[#allocation5_spill] sm:$0xff] }
 0x455   : > { %v3364_v44 = vadd.f32 %v3363_v35, %v3323_v9  ;;  %v7766_v9 = vld [vmem:[#allocation7_spill] sm:$0xff] }
 0x457   : > { %v3365_v2 = vadd.f32 %v3364_v44, %v3324_v17  ;;  %v7768_v17 = vld [vmem:[#allocation6_spill] sm:$0xff] }
 0x459   : > { %v3366_v14 = vadd.f32 %v3365_v2, %v3325_v51  ;;  %v7770_v51 = vld [vmem:[#allocation9_spill] sm:$0xff] }
 0x45b   : > { %v3367_v16 = vadd.f32 %v3366_v14, %v3326_v28  ;;  %v7772_v28 = vld [vmem:[#allocation8_spill] sm:$0xff] }
 0x45d   : > { %v3368_v38 = vadd.f32 %v3367_v16, %v3327_v36  ;;  %v7774_v36 = vld [vmem:[#allocation11_spill] sm:$0xff] }
 0x45f   : > { %v3369_v30 = vadd.f32 %v3368_v38, %v3328_v24  ;;  %v7776_v38 = vld [vmem:[#allocation10_spill] sm:$0xff] }
 0x461   : > { %v3370_v8 = vadd.f32 %v3369_v30, %v3329_v54  ;;  %v7777_v54 = vld [vmem:[#allocation38_spill] sm:$0xff] }
 0x463   : > { %v3371_v62 = vadd.f32 %v3370_v8, %v3330_v4  ;;  %v7779_v8 = vld [vmem:[#allocation37_spill] sm:$0xff] }
 0x465   : > { %v3372_v61 = vadd.f32 %v3371_v62, %v3331_v32  ;;  %v7780_v62 = vld [vmem:[#allocation12_spill] sm:$0xff] }
 0x467   : > { %v3373_v23 = vadd.f32 %v3372_v61, %v3332_v3  ;;  %v7781_v61 = vld [vmem:[#allocation40_spill] sm:$0xff] }
 0x469   : > { %v3374_v33 = vadd.f32 %v3373_v23, %v3333_v10  ;;  %v7782_v23 = vld [vmem:[#allocation15_spill] sm:$0xff] }
 0x46b   : > { %v3375_v45 = vadd.f32 %v3374_v33, %v3334_v39  ;;  %v7783_v39 = vld [vmem:[#allocation39_spill] sm:$0xff] }
 0x46d   : > { %v3376_v57 = vadd.f32 %v3375_v45, %v3335_v56  ;;  %v7785_v45 = vld [vmem:[#allocation42_spill] sm:$0xff] }
 0x46f   : > { %v3377_v11 = vadd.f32 %v3376_v57, %v3336_v43  ;;  %v7786_v43 = vld [vmem:[#allocation17_spill] sm:$0xff] }
 0x471   : > { %v3378_v59 = vrot.slane %v3377_v11, 4 }
 0x473   : > { %v3379_v49 = vadd.f32 %v3378_v59, %v3377_v11  ;;  %v7787_v11 = vld [vmem:[#allocation41_spill] sm:$0xff] }
 0x475   : > { %v3380_v5 = vrot.slane %v3379_v49, 2 }
 0x477   : > { %v3381_v41 = vadd.f32 %v3380_v5, %v3379_v49  ;;  %v7788_v49 = vld [vmem:[#allocation16_spill] sm:$0xff] }
 0x479   : > { %v3382_v18 = vrot.slane %v3381_v41, 1 }
 0x47b   : > { %v3383_v0 = vadd.f32 %v3382_v18, %v3381_v41  ;;  %v7789_v41 = vld [vmem:[#allocation44_spill] sm:$0xff] }
 0x47d   : > { %v3384_v6 = vmul.f32 0.00390625, %v3383_v0  ;;  %v7790_v0 = vld [vmem:[#allocation19_spill] sm:$0xff] }
 0x47f   : > { %v3385_v58 = vadd.f32 1e-05, %v3384_v6 }
 0x481   : > { %4037 = vrsqrt.f32 %v3385_v58  ;;  %v7791_v58 = vld [vmem:[#allocation20_spill] sm:$0xff] }
 0x48b   : > { %v4038_v60 = vpop.eup %4037 }
 0x48c   : > { %v7017_v13 = vmul.f32 %v4038_v60, %v3387_v55  ;;  %v3429_v52 = vmul.f32 %v4038_v60, %v7762_v25  ;;  %v3389_v48 = vmul.f32 %v4038_v60, %v7763_v21  ;;  %v3390_v22 = vmul.f32 %v4038_v60, %v7764_v19  ;;  %v7792_v25 = vld [vmem:[#allocation43_spill] sm:$0xff] }
 0x48d   : > { %v3391_v7 = vmul.f32 %v4038_v60, %v7765_v46  ;;  %v3392_v35 = vmul.f32 %v4038_v60, %v7766_v9  ;;  %v3393_v15 = vmul.f32 %v4038_v60, %v7767_v37  ;;  %v3394_v44 = vmul.f32 %v4038_v60, %v7768_v17  ;;  %v7793_v21 = vld [vmem:[#allocation51_spill] sm:$0xff]  ;;  %v7794_v46 = vld [vmem:[#allocation26_spill] sm:$0xff] }
 0x48e   : > { %v3471_v29 = vadd.f32 %v3429_v52, %v7017_v13  ;;  %v3395_v50 = vmul.f32 %v4038_v60, %v7769_v27  ;;  %v3396_v2 = vmul.f32 %v4038_v60, %v7770_v51  ;;  %v3397_v42 = vmul.f32 %v4038_v60, %v7771_v34  ;;  %v7795_v37 = vld [vmem:[#allocation58_spill] sm:$0xff]  ;;  %v7797_v51 = vld [vmem:[#allocation73_spill] sm:$0xff] }
 0x48f   : > { %v3398_v14 = vmul.f32 %v4038_v60, %v7772_v28  ;;  %v3399_v40 = vmul.f32 %v4038_v60, %v7773_v1  ;;  %v3400_v16 = vmul.f32 %v4038_v60, %v7774_v36  ;;  %v3401_v63 = vmul.f32 %v4038_v60, %v7775_v47  ;;  %v7798_v28 = vld [vmem:[#allocation72_spill] sm:$0xff]  ;;  %v7799_v36 = vld [vmem:[#allocation78_spill] sm:$0xff] }
 0x490   : > { %v3513_v24 = vmax.f32 %v3471_v29, 0.0  ;;  %v3402_v20 = vmul.f32 %v4038_v60, %v7776_v38  ;;  %v3403_v30 = vmul.f32 %v4038_v60, %v7777_v54  ;;  %v3404_v4 = vmul.f32 %v4038_v60, %v7778_v26  ;;  %v7796_v29 = vld [vmem:[#allocation57_spill] sm:$0xff]  ;;  %v7801_v54 = vld [vmem:[#allocation80_spill] sm:$0xff] }
 0x491   : > { %v3405_v32 = vmul.f32 %v4038_v60, %v7779_v8  ;;  %v3406_v3 = vmul.f32 %v4038_v60, %v7780_v62  ;;  %v3407_v10 = vmul.f32 %v4038_v60, %v7781_v61  ;;  %v3408_v53 = vmul.f32 %v4038_v60, %v7782_v23  ;;  %v7802_v8 = vld [vmem:[#allocation79_spill] sm:$0xff]  ;;  %v7803_v61 = vld [vmem:[#allocation81_spill] sm:$0xff] }
 0x492   : > { %3555 = vst [vmem:[%s7041_s3 + $0x140] sm:$0xff] %v3513_v24  ;;  %v3409_v33 = vmul.f32 %v4038_v60, %v7783_v39  ;;  %v3410_v56 = vmul.f32 %v4038_v60, %v7784_v12  ;;  %v3411_v31 = vmul.f32 %v4038_v60, %v7785_v45  ;;  %v3412_v57 = vmul.f32 %v4038_v60, %v7786_v43  ;;  %v7800_v24 = vld [vmem:[#allocation77_spill] sm:$0xff] }
 0x493   : > { %v3413_v59 = vmul.f32 %v4038_v60, %v7787_v11  ;;  %v3414_v5 = vmul.f32 %v4038_v60, %v7788_v49  ;;  %v3415_v18 = vmul.f32 %v4038_v60, %v7789_v41  ;;  %v3416_v6 = vmul.f32 %v4038_v60, %v7790_v0 }
 0x494   : > { %v3417_v55 = vmul.f32 %v4038_v60, %v7791_v58  ;;  %v3418_v52 = vmul.f32 %v4038_v60, %v7792_v25  ;;  %v3419_v19 = vmul.f32 %v4038_v60, %v7793_v21  ;;  %v3420_v9 = vmul.f32 %v4038_v60, %v7794_v46 }
 0x495   : > { %v3421_v17 = vmul.f32 %v4038_v60, %v7795_v37  ;;  %v3422_v27 = vmul.f32 %v4038_v60, %v7796_v29  ;;  %v3423_v34 = vmul.f32 %v4038_v60, %v7797_v51  ;;  %v3424_v1 = vmul.f32 %v4038_v60, %v7798_v28 }
 0x496   : > { %v3425_v47 = vmul.f32 %v4038_v60, %v7799_v36  ;;  %v3426_v38 = vmul.f32 %v4038_v60, %v7800_v24  ;;  %v3427_v26 = vmul.f32 %v4038_v60, %v7801_v54  ;;  %v3428_v62 = vmul.f32 %v4038_v60, %v7802_v8 }
 0x497   : > { %v3430_v23 = vmul.f32 %v4038_v60, %v7803_v61  ;;  %v3431_v39 = vadd.f32 %v3389_v48, %v7017_v13  ;;  %v3432_v12 = vadd.f32 %v3390_v22, %v7017_v13  ;;  %v3433_v45 = vadd.f32 %v3391_v7, %v7017_v13 }
 0x498   : > { %v3434_v43 = vadd.f32 %v3392_v35, %v7017_v13  ;;  %v3435_v11 = vadd.f32 %v3393_v15, %v7017_v13  ;;  %v3436_v49 = vadd.f32 %v3394_v44, %v7017_v13  ;;  %v3437_v41 = vadd.f32 %v3395_v50, %v7017_v13 }
 0x499   : > { %v3438_v0 = vadd.f32 %v3396_v2, %v7017_v13  ;;  %v3439_v58 = vadd.f32 %v3397_v42, %v7017_v13  ;;  %v3440_v60 = vadd.f32 %v3398_v14, %v7017_v13  ;;  %v7076_v48 = vadd.f32 %v3399_v40, %v7017_v13 }
 0x49a   : > { %v7079_v22 = vadd.f32 %v3400_v16, %v7017_v13  ;;  %v7082_v7 = vadd.f32 %v3401_v63, %v7017_v13  ;;  %v7085_v35 = vadd.f32 %v3402_v20, %v7017_v13  ;;  %v7088_v15 = vadd.f32 %v3403_v30, %v7017_v13 }
 0x49b   : > { %v7091_v44 = vadd.f32 %v3404_v4, %v7017_v13  ;;  %v7094_v50 = vadd.f32 %v3405_v32, %v7017_v13  ;;  %v7097_v2 = vadd.f32 %v3406_v3, %v7017_v13  ;;  %v7100_v42 = vadd.f32 %v3407_v10, %v7017_v13 }
 0x49c   : > { %v7103_v14 = vadd.f32 %v3408_v53, %v7017_v13  ;;  %v7106_v40 = vadd.f32 %v3409_v33, %v7017_v13  ;;  %v7109_v16 = vadd.f32 %v3410_v56, %v7017_v13  ;;  %v7112_v63 = vadd.f32 %v3411_v31, %v7017_v13 }
 0x49d   : > { %v7115_v20 = vadd.f32 %v3412_v57, %v7017_v13  ;;  %v7118_v30 = vadd.f32 %v3413_v59, %v7017_v13  ;;  %v7121_v4 = vadd.f32 %v3414_v5, %v7017_v13  ;;  %v7124_v32 = vadd.f32 %v3415_v18, %v7017_v13 }
 0x49e   : > { %v7127_v3 = vadd.f32 %v3416_v6, %v7017_v13  ;;  %v7130_v10 = vadd.f32 %v3417_v55, %v7017_v13  ;;  %v7133_v53 = vadd.f32 %v3418_v52, %v7017_v13  ;;  %v7136_v33 = vadd.f32 %v3419_v19, %v7017_v13 }
 0x49f   : > { %v7139_v56 = vadd.f32 %v3420_v9, %v7017_v13  ;;  %v7142_v31 = vadd.f32 %v3421_v17, %v7017_v13  ;;  %v7145_v57 = vadd.f32 %v3422_v27, %v7017_v13  ;;  %v7148_v59 = vadd.f32 %v3423_v34, %v7017_v13 }
 0x4a0   : > { %v7151_v5 = vadd.f32 %v3424_v1, %v7017_v13  ;;  %v7154_v18 = vadd.f32 %v3425_v47, %v7017_v13  ;;  %v7157_v6 = vadd.f32 %v3426_v38, %v7017_v13  ;;  %v7160_v55 = vadd.f32 %v3427_v26, %v7017_v13 }
 0x4a1   : > { %v7163_v25 = vadd.f32 %v3428_v62, %v7017_v13  ;;  %v7166_v52 = vadd.f32 %v3430_v23, %v7017_v13  ;;  %v3473_v21 = vmax.f32 %v3431_v39, 0.0  ;;  %v3474_v19 = vmax.f32 %v3432_v12, 0.0 }
 0x4a2   : > { %v3475_v46 = vmax.f32 %v3433_v45, 0.0  ;;  %v3476_v9 = vmax.f32 %v3434_v43, 0.0  ;;  %v3477_v37 = vmax.f32 %v3435_v11, 0.0  ;;  %v3478_v17 = vmax.f32 %v3436_v49, 0.0 }
 0x4a3   : > { %v3479_v29 = vmax.f32 %v3437_v41, 0.0  ;;  %v3480_v27 = vmax.f32 %v3438_v0, 0.0  ;;  %v3481_v51 = vmax.f32 %v3439_v58, 0.0  ;;  %v3482_v34 = vmax.f32 %v3440_v60, 0.0  ;;  %3515 = vst [vmem:[%s7041_s3] sm:$0xff] %v3473_v21  ;;  %3516 = vst [vmem:[%s7041_s3 + $0x8] sm:$0xff] %v3474_v19 }
 0x4a4   : > { %v3483_v13 = vmax.f32 %v7076_v48, 0.0  ;;  %v3484_v28 = vmax.f32 %v7079_v22, 0.0  ;;  %v3485_v1 = vmax.f32 %v7082_v7, 0.0  ;;  %v3486_v36 = vmax.f32 %v7085_v35, 0.0  ;;  %3517 = vst [vmem:[%s7041_s3 + $0x10] sm:$0xff] %v3475_v46  ;;  %3518 = vst [vmem:[%s7041_s3 + $0x18] sm:$0xff] %v3476_v9 }
 0x4a5   : > { %3519 = vst [vmem:[%s7041_s3 + $0x20] sm:$0xff] %v3477_v37  ;;  %3520 = vst [vmem:[%s7041_s3 + $0x28] sm:$0xff] %v3478_v17  ;;  %v3487_v47 = vmax.f32 %v7088_v15, 0.0  ;;  %v3488_v24 = vmax.f32 %v7091_v44, 0.0  ;;  %v3489_v38 = vmax.f32 %v7094_v50, 0.0  ;;  %v3490_v54 = vmax.f32 %v7097_v2, 0.0 }
 0x4a6   : > { %3521 = vst [vmem:[%s7041_s3 + $0x30] sm:$0xff] %v3479_v29  ;;  %3522 = vst [vmem:[%s7041_s3 + $0x38] sm:$0xff] %v3480_v27  ;;  %v3491_v26 = vmax.f32 %v7100_v42, 0.0  ;;  %v3492_v8 = vmax.f32 %v7103_v14, 0.0  ;;  %v3493_v62 = vmax.f32 %v7106_v40, 0.0  ;;  %v3494_v61 = vmax.f32 %v7109_v16, 0.0 }
 0x4a7   : > { %3523 = vst [vmem:[%s7041_s3 + $0x40] sm:$0xff] %v3481_v51  ;;  %3524 = vst [vmem:[%s7041_s3 + $0x48] sm:$0xff] %v3482_v34  ;;  %v3495_v23 = vmax.f32 %v7112_v63, 0.0  ;;  %v3496_v39 = vmax.f32 %v7115_v20, 0.0  ;;  %v3497_v12 = vmax.f32 %v7118_v30, 0.0  ;;  %v3498_v45 = vmax.f32 %v7121_v4, 0.0 }
 0x4a8   : > { %3525 = vst [vmem:[%s7041_s3 + $0x50] sm:$0xff] %v3483_v13  ;;  %3526 = vst [vmem:[%s7041_s3 + $0x58] sm:$0xff] %v3484_v28  ;;  %v3499_v43 = vmax.f32 %v7124_v32, 0.0  ;;  %v3500_v11 = vmax.f32 %v7127_v3, 0.0  ;;  %v3501_v49 = vmax.f32 %v7130_v10, 0.0  ;;  %v3502_v41 = vmax.f32 %v7133_v53, 0.0 }
 0x4a9   : > { %3527 = vst [vmem:[%s7041_s3 + $0x60] sm:$0xff] %v3485_v1  ;;  %3528 = vst [vmem:[%s7041_s3 + $0x68] sm:$0xff] %v3486_v36  ;;  %v3503_v0 = vmax.f32 %v7136_v33, 0.0  ;;  %v3504_v58 = vmax.f32 %v7139_v56, 0.0  ;;  %v3505_v60 = vmax.f32 %v7142_v31, 0.0  ;;  %v3506_v48 = vmax.f32 %v7145_v57, 0.0 }
 0x4aa   : > { %3529 = vst [vmem:[%s7041_s3 + $0x70] sm:$0xff] %v3487_v47  ;;  %3530 = vst [vmem:[%s7041_s3 + $0x78] sm:$0xff] %v3488_v24  ;;  %v3507_v22 = vmax.f32 %v7148_v59, 0.0  ;;  %v3508_v7 = vmax.f32 %v7151_v5, 0.0  ;;  %v3509_v35 = vmax.f32 %v7154_v18, 0.0  ;;  %v3510_v15 = vmax.f32 %v7157_v6, 0.0 }
 0x4ab   : > { %3531 = vst [vmem:[%s7041_s3 + $0x80] sm:$0xff] %v3489_v38  ;;  %3532 = vst [vmem:[%s7041_s3 + $0x88] sm:$0xff] %v3490_v54  ;;  %v3511_v44 = vmax.f32 %v7160_v55, 0.0  ;;  %v3512_v50 = vmax.f32 %v7163_v25, 0.0  ;;  %v3514_v2 = vmax.f32 %v7166_v52, 0.0 }
 0x4ac   : > { %3533 = vst [vmem:[%s7041_s3 + $0x90] sm:$0xff] %v3491_v26  ;;  %3534 = vst [vmem:[%s7041_s3 + $0x98] sm:$0xff] %v3492_v8 }
 0x4ad   : > { %3535 = vst [vmem:[%s7041_s3 + $0xa0] sm:$0xff] %v3493_v62  ;;  %3536 = vst [vmem:[%s7041_s3 + $0xa8] sm:$0xff] %v3494_v61 }
 0x4ae   : > { %3537 = vst [vmem:[%s7041_s3 + $0xb0] sm:$0xff] %v3495_v23  ;;  %3538 = vst [vmem:[%s7041_s3 + $0xb8] sm:$0xff] %v3496_v39 }
 0x4af   : > { %3539 = vst [vmem:[%s7041_s3 + $0xc0] sm:$0xff] %v3497_v12  ;;  %3540 = vst [vmem:[%s7041_s3 + $0xc8] sm:$0xff] %v3498_v45 }
 0x4b0   : > { %3541 = vst [vmem:[%s7041_s3 + $0xd0] sm:$0xff] %v3499_v43  ;;  %3542 = vst [vmem:[%s7041_s3 + $0xd8] sm:$0xff] %v3500_v11 }
 0x4b1   : > { %3543 = vst [vmem:[%s7041_s3 + $0xe0] sm:$0xff] %v3501_v49  ;;  %3544 = vst [vmem:[%s7041_s3 + $0xe8] sm:$0xff] %v3502_v41 }
 0x4b2   : > { %3545 = vst [vmem:[%s7041_s3 + $0xf0] sm:$0xff] %v3503_v0  ;;  %3546 = vst [vmem:[%s7041_s3 + $0xf8] sm:$0xff] %v3504_v58 }
 0x4b3   : > { %3547 = vst [vmem:[%s7041_s3 + $0x100] sm:$0xff] %v3505_v60  ;;  %3548 = vst [vmem:[%s7041_s3 + $0x108] sm:$0xff] %v3506_v48 }
 0x4b4   : > { %3549 = vst [vmem:[%s7041_s3 + $0x110] sm:$0xff] %v3507_v22  ;;  %3550 = vst [vmem:[%s7041_s3 + $0x118] sm:$0xff] %v3508_v7 }
 0x4b5   : > { %3551 = vst [vmem:[%s7041_s3 + $0x120] sm:$0xff] %v3509_v35  ;;  %3552 = vst [vmem:[%s7041_s3 + $0x128] sm:$0xff] %v3510_v15 }
 0x4b6   : > { %3553 = vst [vmem:[%s7041_s3 + $0x130] sm:$0xff] %v3511_v44  ;;  %3554 = vst [vmem:[%s7041_s3 + $0x138] sm:$0xff] %v3512_v50 }
 0x4b7   : > { %3556 = vst [vmem:[%s7041_s3 + $0x148] sm:$0xff] %v3514_v2 }
 0x4b8   : > { %4070 = shalt.err (!%p4067_p5)
}
 0x4b9   : > { %s4071_s23 = scalar_lea.hbm %s7233_s8, 5376  ;;  %s4075_s26 = scalar_lea.hbm %s7302_s2, 10752 }
 0x4ba   : > { %p4072_p6 = scmp.ne.s32.totalorder %s7233_s8, %s4071_s23  ;;  %p4076_p10 = scmp.lt.u32.totalorder %s7233_s8, %s7302_s2 }
 0x4bb   : > { %p4077_p11 = scmp.lt.u32.totalorder %s4075_s26, %s4071_s23  ;;  %p4079_p13 = scmp.lt.u32.totalorder %s4071_s23, %s7233_s8 }
 0x4bc   : > { %p4073_p7 = pnand %p4072_p6, %p4203_p4 }
 0x4bd   : > { %p4078_p12 = por %p4077_p11, %p4076_p10 }
 0x4be   : > { %p4074_p9 = pneg %p4073_p7 }
 0x4bf   : > { %p4080_p0 = por %p4079_p13, %p4078_p12 }
 0x4c1   : > { %p4081_p1 = pnand %p4080_p0, %p4074_p9 }
 0x4c3   : > { %4084 = shalt.err (!%p4081_p1)
}
 0x4c4   : > { %s4147_s30 = smov 128  }
 0x4c5   : > { %3972 = dma.vmem_to_hbm [thread:$0]  (%p4203_p4), %s7242_s5, 5376, %s7233_s8, %s7253_s12, %s4147_s30, %s4147_s30, %s4138_s29  }
 0x4c6 PF: > { %p3978_p2 = scmp.ge.s32.totalorder %s4135_s14, 2  ;;  %s3587_s3 = sand.u32 1, %s4115_s9  }
 0x4c7   : > { %s3588_s4 = scalar_lea.sflag [#allocation3], %s3587_s3 }
 0x4c8   : > { %p3975_p3 = pnand %p3978_p2, %p4210_p8 }
 0x4ca   : > { %4110 = dma.done.wait (!%p3975_p3), %s3588_s4, 5376  }
 0x4cb   : > { %4112 = vsyncadd (!%p3975_p3), %s3588_s4, 4294961920  ;;  %s15_s14 = sadd.s32 1, %s4135_s14   ;;  %s7804_s9 = smov %s4119_s10 }
 0x4cc   : > { %p12_p5 = scmp.ge.s32.totalorder %s15_s14, 4   ;;  %s7805_s10 = smov %s4123_s11 }
 0x4cd   : > { %s7806_s11 = smov %s4216_s22  ;;  %s7807_s12 = smov %s4131_s13 }
 0x4ce   : > { %s7808_s13 = smov %s7810_s17  ;;  %14 = sbr.rel (!%p12_p5) target bundleno = 4 (0x4), region = 66 }
 0x4d5   :  { %3593 = vsyncpa [#allocation3], 1 }
 0x4d6   :  { %3595 = vsyncpa [#allocation3 + $0x1], 1 }

</bundles_post_ra>
